<compile_context>
chip_gen: v7x
topology: tpu7x:2x2x1
jax: 0.10.0
libtpu: 0.0.40
codegen_flags: <defaults>
</compile_context>

<pallas_src>
import jax
import jax.numpy as jnp
from jax.experimental import pallas as pl
from jax.experimental.pallas import tpu as pltpu


def _pick_channel_tile(cout, max_tc=16):
    """Output-channel tile per grid step: whole Cout when small, else the
    largest multiple-of-8 divisor <= max_tc (keeps the block 8-aligned)."""
    if cout <= max_tc:
        return cout
    for tc in range(max_tc, 7, -1):
        if cout % tc == 0 and tc % 8 == 0:
            return tc
    return cout  # single big tile (still a legal full-dim block)


def _make_selector_gather_kernel(*, Cin, TC, H, W, OH, OW, KH, KW,
                                 stride, padding):
    Hp, Wp = H + 2 * padding, W + 2 * padding
    win_h = (OH - 1) * stride + 1      # contiguous rows needed per window
    win_w = (OW - 1) * stride + 1      # contiguous cols needed per window

    def kernel(cin_ref, kh_ref, kw_ref, x_ref, o_ref, pad_ref):
        # cin_ref/kh_ref/kw_ref: SMEM int32[Cout] -- sampled (cin, kh, kw) per
        #                        output channel (scalar prefetch).
        # x_ref:   VMEM (1, Cin, H, W)   -- image n, resident across the
        #                                  channel-tile axis (index_map ignores ct).
        # o_ref:   VMEM (1, TC, OH*OW)   -- lane-dense output tile.
        # pad_ref: VMEM (Cin, Hp, Wp)    -- (-1)-padded sign-domain image,
        #                                  built once per image.
        ct = pl.program_id(1)

        # Build the padded image at the first channel tile of each image.
        # Zero padding in the binary domain equals -1 after bin_to_sign, so
        # gathering from this buffer reproduces the module exactly.
        @pl.when(ct == 0)
        def _():
            if padding > 0:
                pad_ref[...] = jnp.full_like(pad_ref, -1)
                pad_ref[:, padding:padding + H, padding:padding + W] = x_ref[0]
            else:
                pad_ref[...] = x_ref[0]

        co0 = ct * TC
        for c in range(TC):                       # static unroll (TC is small)
            cin = cin_ref[co0 + c]
            kh = kh_ref[co0 + c]
            kw = kw_ref[co0 + c]

            # One dynamic-sublane slice per output channel (no per-tap loads).
            rows = pad_ref[cin, pl.ds(kh, win_h), :]            # (win_h, Wp)

            # kw is a lane offset: select among KW *static* column windows so
            # no dynamic-start / strided access ever touches the lane axis.
            win = rows[:, 0:win_w]
            for kwc in range(1, KW):
                win = jnp.where(kw == kwc, rows[:, kwc:kwc + win_w], win)

            if stride > 1:
                # Contiguous window was loaded; downsample with static slices.
                win = win[::stride, ::stride]                    # (OH, OW)

            # Lane-dense output: write each window row into the flattened
            # OH*OW output row at static offsets (plain shifted stores).
            for oh in range(OH):
                o_ref[0, c, oh * OW:(oh + 1) * OW] = win[oh, :]

    return kernel


def conv2d_selector_forward(x, weight, key, *, stride=1, padding=0,
                            temperature=1.0, channel_tile=None):
    """Forward pass of Conv2d_Selector.

    x:      (N, Cin, H, W), values in {-1, +1} (sign domain).
    weight: (Cout, Cin, KH, KW) selector logits (the nn.Conv2d weight).
    Returns (y, mask): y == bin_to_sign(conv2d(sign_to_bin(x), mask)) and mask
    is the sampled one-hot filter reshaped to weight's shape.

    All values are exactly +/-1, so the kernel runs in x.dtype end-to-end
    (pass bf16 x at production sizes to halve HBM traffic, losslessly).
    """
    N, Cin, H, W = x.shape
    Cout, Cin_w, KH, KW = weight.shape
    assert Cin_w == Cin, "only groups=1, dilation=1 implemented"
    OH = (H + 2 * padding - KH) // stride + 1
    OW = (W + 2 * padding - KW) // stride + 1
    K = Cin * KH * KW

    # --- weighted_random: one-hot sample per output channel (plain JAX glue).
    # categorical(logits/T) samples from softmax(logits/T), matching
    # torch.multinomial(F.softmax(selector/T)) in distribution.
    selector = weight.reshape(Cout, K)
    idx = jax.random.categorical(key, selector / temperature, axis=-1)
    mask = jax.nn.one_hot(idx, K, dtype=weight.dtype)
    # TODO(synk): straight-through gradient (mask - selector.detach() + selector)
    # is backward-only; training use needs a custom_vjp, forward value is exact.

    # Decompose flat index k = cin*KH*KW + kh*KW + kw (weight.view(Cout,-1) order).
    idx = idx.astype(jnp.int32)
    cin_idx = idx // (KH * KW)
    kh_idx = (idx // KW) % KH
    kw_idx = idx % KW

    TC = channel_tile or _pick_channel_tile(Cout)
    assert Cout % TC == 0, "channel tile must divide Cout"
    Hp, Wp = H + 2 * padding, W + 2 * padding

    kernel = _make_selector_gather_kernel(
        Cin=Cin, TC=TC, H=H, W=W, OH=OH, OW=OW, KH=KH, KW=KW,
        stride=stride, padding=padding)

    # VMEM budget from the actual tile-padded, double-buffered footprint
    # (last dim padded to 128 lanes, second-last to 8 sublanes); capped well
    # under v7x's 64 MiB physical VMEM.
    isz = jnp.dtype(x.dtype).itemsize

    def _padded_bytes(shape):
        s = list(shape)
        s[-1] = -(-s[-1] // 128) * 128
        if len(s) >= 2:
            s[-2] = -(-s[-2] // 8) * 8
        b = isz
        for d in s:
            b *= d
        return b

    vmem_limit = (2 * _padded_bytes((1, Cin, H, W))
                  + 2 * _padded_bytes((1, TC, OH * OW))
                  + _padded_bytes((Cin, Hp, Wp))
                  + (2 << 20))
    vmem_limit = int(min(max(vmem_limit, 4 << 20), 48 << 20))

    out_flat = pl.pallas_call(
        kernel,
        out_shape=jax.ShapeDtypeStruct((N, Cout, OH * OW), x.dtype),
        grid_spec=pltpu.PrefetchScalarGridSpec(
            num_scalar_prefetch=3,
            grid=(N, Cout // TC),
            in_specs=[pl.BlockSpec(
                (1, Cin, H, W),
                # Same block index across the channel-tile axis -> the image
                # stays resident in VMEM and is not re-DMA'd per tile.
                lambda n, ct, cin_r, kh_r, kw_r: (n, 0, 0, 0))],
            out_specs=pl.BlockSpec(
                (1, TC, OH * OW),
                lambda n, ct, cin_r, kh_r, kw_r: (n, ct, 0)),
            scratch_shapes=[pltpu.VMEM((Cin, Hp, Wp), x.dtype)],
        ),
        compiler_params=pltpu.CompilerParams(
            # Batch axis parallel (keeps both v7x TensorCores busy for even N);
            # the channel-tile axis carries the padded-image scratch and the
            # resident input block, so it must remain sequential.
            dimension_semantics=("parallel", "arbitrary"),
            vmem_limit_bytes=vmem_limit,
        ),
    )(cin_idx, kh_idx, kw_idx, x)

    # Free reshape back to NCHW (the flattened layout is contiguous).
    return out_flat.reshape(N, Cout, OH, OW), mask.reshape(weight.shape)


if __name__ == "__main__":
    key = jax.random.PRNGKey(0)
    k_x, k_w, k_sel = jax.random.split(key, 3)

    N, Cin, H, W = 2, 4, 16, 16
    Cout, KH, KW = 8, 3, 3
    stride, padding = 1, 1

    # +/-1 ("sign domain") input, as the module expects.
    x = jnp.where(jax.random.bernoulli(k_x, 0.5, (N, Cin, H, W)),
                  1.0, -1.0).astype(jnp.float32)

    # torch.nn.init.xavier_uniform_ for a Conv2d weight (Cout, Cin, KH, KW).
    fan_in = Cin * KH * KW
    fan_out = Cout * KH * KW
    bound = (6.0 / (fan_in + fan_out)) ** 0.5
    weight = jax.random.uniform(k_w, (Cout, Cin, KH, KW), jnp.float32,
                                -bound, bound)

    y, mask_w = conv2d_selector_forward(x, weight, k_sel,
                                        stride=stride, padding=padding)
    y = jax.block_until_ready(y)

    # Reference: sign_to_bin -> conv2d with the same sampled one-hot mask ->
    # bin_to_sign, in plain JAX.
    x_bin = (x + 1.0) / 2.0
    y_ref = jax.lax.conv_general_dilated(
        x_bin, mask_w, window_strides=(stride, stride),
        padding=((padding, padding), (padding, padding)),
        dimension_numbers=("NCHW", "OIHW", "NCHW"))
    y_ref = y_ref * 2.0 - 1.0

    assert y.shape == y_ref.shape == (N, Cout, H, W)
    assert jnp.allclose(y, y_ref, atol=1e-5), "mismatch vs JAX conv reference"
    # A one-hot conv over binary inputs mapped through bin_to_sign is +/-1.
    # (The module's check_binary_tensor-after-bin_to_sign is inconsistent with
    # its own math; we assert the correct sign-domain invariant instead.)
    assert bool(jnp.all((y == -1.0) | (y == 1.0)))
    print("KERNEL_OK")
</pallas_src>

<mosaic_0001>
module attributes {stable_mosaic.version = 11 : i64} {
  func.func @kernel(%arg0: i32, %arg1: i32, %arg2: memref<8xi32, #tpu.memory_space<smem>>, %arg3: memref<8xi32, #tpu.memory_space<smem>>, %arg4: memref<8xi32, #tpu.memory_space<smem>>, %arg5: memref<1x4x16x16xf32, #tpu.memory_space<vmem>>, %arg6: memref<1x8x256xf32, #tpu.memory_space<vmem>>, %arg7: memref<4x18x18xf32, #tpu.memory_space<vmem>>) attributes {dimension_semantics = [#tpu.dimension_semantics<parallel>, #tpu.dimension_semantics<arbitrary>], iteration_bounds = array<i64: 2, 1>, scalar_prefetch = 3 : i64, scratch_operands = 1 : i64, tpu.core_type = #tpu.core_type<tc>, window_params = [{transform_indices = @transform_0, window_bounds = array<i64: 1, 4, 16, 16>}, {transform_indices = @transform_1, window_bounds = array<i64: 1, 8, 256>}]} {
    %c0_i32 = arith.constant 0 : i32
    %0 = arith.cmpi eq, %arg1, %c0_i32 : i32
    %1 = arith.extui %0 : i1 to i32
    %c0_i32_0 = arith.constant 0 : i32
    %2 = arith.cmpi ne, %1, %c0_i32_0 : i32
    scf.if %2 {
      %cst = arith.constant -1.000000e+00 : f32
      %804 = vector.broadcast %cst : f32 to vector<4x18x18xf32>
      %c0_403 = arith.constant 0 : index
      %c0_404 = arith.constant 0 : index
      %c0_405 = arith.constant 0 : index
      %805 = vector.load %arg7[%c0_403, %c0_404, %c0_405] : memref<4x18x18xf32, #tpu.memory_space<vmem>>, vector<4x18x18xf32>
      tpu.vector_store %arg7[%c0_403, %c0_404, %c0_405], %804 {strides = array<i32>} : memref<4x18x18xf32, #tpu.memory_space<vmem>>, vector<4x18x18xf32>,
      %c0_406 = arith.constant 0 : index
      %c0_407 = arith.constant 0 : index
      %c0_408 = arith.constant 0 : index
      %c0_409 = arith.constant 0 : index
      %806 = vector.load %arg5[%c0_406, %c0_407, %c0_408, %c0_409] : memref<1x4x16x16xf32, #tpu.memory_space<vmem>>, vector<1x4x16x16xf32>
      %807 = vector.shape_cast %806 : vector<1x4x16x16xf32> to vector<4x16x16xf32>
      %c0_410 = arith.constant 0 : index
      %c1_411 = arith.constant 1 : index
      %c1_412 = arith.constant 1 : index
      %808 = vector.load %arg7[%c0_410, %c1_411, %c1_412] : memref<4x18x18xf32, #tpu.memory_space<vmem>>, vector<4x16x16xf32>
      tpu.vector_store %arg7[%c0_410, %c1_411, %c1_412], %807 {strides = array<i32>} : memref<4x18x18xf32, #tpu.memory_space<vmem>>, vector<4x16x16xf32>,
    } else {
    }
    %c8_i32 = arith.constant 8 : i32
    %3 = arith.muli %arg1, %c8_i32 : i32
    %c0_i32_1 = arith.constant 0 : i32
    %4 = arith.addi %3, %c0_i32_1 : i32
    %5 = arith.index_cast %4 : i32 to index
    %6 = memref.load %arg2[%5] : memref<8xi32, #tpu.memory_space<smem>>
    %c0_i32_2 = arith.constant 0 : i32
    %7 = arith.addi %3, %c0_i32_2 : i32
    %8 = arith.index_cast %7 : i32 to index
    %9 = memref.load %arg3[%8] : memref<8xi32, #tpu.memory_space<smem>>
    %c0_i32_3 = arith.constant 0 : i32
    %10 = arith.addi %3, %c0_i32_3 : i32
    %11 = arith.index_cast %10 : i32 to index
    %12 = memref.load %arg4[%11] : memref<8xi32, #tpu.memory_space<smem>>
    %13 = arith.index_cast %6 : i32 to index
    %14 = arith.index_cast %9 : i32 to index
    %c0 = arith.constant 0 : index
    %15 = vector.load %arg7[%13, %14, %c0] : memref<4x18x18xf32, #tpu.memory_space<vmem>>, vector<1x16x18xf32>
    %16 = vector.shape_cast %15 : vector<1x16x18xf32> to vector<16x18xf32>
    %17 = vector.extract_strided_slice %16 {offsets = [0, 0], sizes = [16, 16], strides = [1, 1]} : vector<16x18xf32> to vector<16x16xf32>
    %c1_i32 = arith.constant 1 : i32
    %18 = arith.cmpi eq, %12, %c1_i32 : i32
    %19 = vector.extract_strided_slice %16 {offsets = [0, 1], sizes = [16, 16], strides = [1, 1]} : vector<16x18xf32> to vector<16x16xf32>
    %20 = arith.select %18, %19, %17 : vector<16x16xf32>
    %c2_i32 = arith.constant 2 : i32
    %21 = arith.cmpi eq, %12, %c2_i32 : i32
    %22 = vector.extract_strided_slice %16 {offsets = [0, 2], sizes = [16, 16], strides = [1, 1]} : vector<16x18xf32> to vector<16x16xf32>
    %23 = arith.select %21, %22, %20 : vector<16x16xf32>
    %24 = vector.extract_strided_slice %23 {offsets = [0, 0], sizes = [1, 16], strides = [1, 1]} : vector<16x16xf32> to vector<1x16xf32>
    %25 = vector.shape_cast %24 : vector<1x16xf32> to vector<16xf32>
    %c0_4 = arith.constant 0 : index
    %c0_5 = arith.constant 0 : index
    %c0_6 = arith.constant 0 : index
    %26 = vector.load %arg6[%c0_4, %c0_5, %c0_6] : memref<1x8x256xf32, #tpu.memory_space<vmem>>, vector<1x1x16xf32>
    %27 = vector.shape_cast %26 : vector<1x1x16xf32> to vector<16xf32>
    %28 = vector.shape_cast %25 : vector<16xf32> to vector<1x1x16xf32>
    tpu.vector_store %arg6[%c0_4, %c0_5, %c0_6], %28 {strides = array<i32>} : memref<1x8x256xf32, #tpu.memory_space<vmem>>, vector<1x1x16xf32>,
    %29 = vector.extract_strided_slice %23 {offsets = [1, 0], sizes = [1, 16], strides = [1, 1]} : vector<16x16xf32> to vector<1x16xf32>
    %30 = vector.shape_cast %29 : vector<1x16xf32> to vector<16xf32>
    %c0_7 = arith.constant 0 : index
    %c0_8 = arith.constant 0 : index
    %c16 = arith.constant 16 : index
    %31 = vector.load %arg6[%c0_7, %c0_8, %c16] : memref<1x8x256xf32, #tpu.memory_space<vmem>>, vector<1x1x16xf32>
    %32 = vector.shape_cast %31 : vector<1x1x16xf32> to vector<16xf32>
    %33 = vector.shape_cast %30 : vector<16xf32> to vector<1x1x16xf32>
    tpu.vector_store %arg6[%c0_7, %c0_8, %c16], %33 {strides = array<i32>} : memref<1x8x256xf32, #tpu.memory_space<vmem>>, vector<1x1x16xf32>,
    %34 = vector.extract_strided_slice %23 {offsets = [2, 0], sizes = [1, 16], strides = [1, 1]} : vector<16x16xf32> to vector<1x16xf32>
    %35 = vector.shape_cast %34 : vector<1x16xf32> to vector<16xf32>
    %c0_9 = arith.constant 0 : index
    %c0_10 = arith.constant 0 : index
    %c32 = arith.constant 32 : index
    %36 = vector.load %arg6[%c0_9, %c0_10, %c32] : memref<1x8x256xf32, #tpu.memory_space<vmem>>, vector<1x1x16xf32>
    %37 = vector.shape_cast %36 : vector<1x1x16xf32> to vector<16xf32>
    %38 = vector.shape_cast %35 : vector<16xf32> to vector<1x1x16xf32>
    tpu.vector_store %arg6[%c0_9, %c0_10, %c32], %38 {strides = array<i32>} : memref<1x8x256xf32, #tpu.memory_space<vmem>>, vector<1x1x16xf32>,
    %39 = vector.extract_strided_slice %23 {offsets = [3, 0], sizes = [1, 16], strides = [1, 1]} : vector<16x16xf32> to vector<1x16xf32>
    %40 = vector.shape_cast %39 : vector<1x16xf32> to vector<16xf32>
    %c0_11 = arith.constant 0 : index
    %c0_12 = arith.constant 0 : index
    %c48 = arith.constant 48 : index
    %41 = vector.load %arg6[%c0_11, %c0_12, %c48] : memref<1x8x256xf32, #tpu.memory_space<vmem>>, vector<1x1x16xf32>
    %42 = vector.shape_cast %41 : vector<1x1x16xf32> to vector<16xf32>
    %43 = vector.shape_cast %40 : vector<16xf32> to vector<1x1x16xf32>
    tpu.vector_store %arg6[%c0_11, %c0_12, %c48], %43 {strides = array<i32>} : memref<1x8x256xf32, #tpu.memory_space<vmem>>, vector<1x1x16xf32>,
    %44 = vector.extract_strided_slice %23 {offsets = [4, 0], sizes = [1, 16], strides = [1, 1]} : vector<16x16xf32> to vector<1x16xf32>
    %45 = vector.shape_cast %44 : vector<1x16xf32> to vector<16xf32>
    %c0_13 = arith.constant 0 : index
    %c0_14 = arith.constant 0 : index
    %c64 = arith.constant 64 : index
    %46 = vector.load %arg6[%c0_13, %c0_14, %c64] : memref<1x8x256xf32, #tpu.memory_space<vmem>>, vector<1x1x16xf32>
    %47 = vector.shape_cast %46 : vector<1x1x16xf32> to vector<16xf32>
    %48 = vector.shape_cast %45 : vector<16xf32> to vector<1x1x16xf32>
    tpu.vector_store %arg6[%c0_13, %c0_14, %c64], %48 {strides = array<i32>} : memref<1x8x256xf32, #tpu.memory_space<vmem>>, vector<1x1x16xf32>,
    %49 = vector.extract_strided_slice %23 {offsets = [5, 0], sizes = [1, 16], strides = [1, 1]} : vector<16x16xf32> to vector<1x16xf32>
    %50 = vector.shape_cast %49 : vector<1x16xf32> to vector<16xf32>
    %c0_15 = arith.constant 0 : index
    %c0_16 = arith.constant 0 : index
    %c80 = arith.constant 80 : index
    %51 = vector.load %arg6[%c0_15, %c0_16, %c80] : memref<1x8x256xf32, #tpu.memory_space<vmem>>, vector<1x1x16xf32>
    %52 = vector.shape_cast %51 : vector<1x1x16xf32> to vector<16xf32>
    %53 = vector.shape_cast %50 : vector<16xf32> to vector<1x1x16xf32>
    tpu.vector_store %arg6[%c0_15, %c0_16, %c80], %53 {strides = array<i32>} : memref<1x8x256xf32, #tpu.memory_space<vmem>>, vector<1x1x16xf32>,
    %54 = vector.extract_strided_slice %23 {offsets = [6, 0], sizes = [1, 16], strides = [1, 1]} : vector<16x16xf32> to vector<1x16xf32>
    %55 = vector.shape_cast %54 : vector<1x16xf32> to vector<16xf32>
    %c0_17 = arith.constant 0 : index
    %c0_18 = arith.constant 0 : index
    %c96 = arith.constant 96 : index
    %56 = vector.load %arg6[%c0_17, %c0_18, %c96] : memref<1x8x256xf32, #tpu.memory_space<vmem>>, vector<1x1x16xf32>
    %57 = vector.shape_cast %56 : vector<1x1x16xf32> to vector<16xf32>
    %58 = vector.shape_cast %55 : vector<16xf32> to vector<1x1x16xf32>
    tpu.vector_store %arg6[%c0_17, %c0_18, %c96], %58 {strides = array<i32>} : memref<1x8x256xf32, #tpu.memory_space<vmem>>, vector<1x1x16xf32>,
    %59 = vector.extract_strided_slice %23 {offsets = [7, 0], sizes = [1, 16], strides = [1, 1]} : vector<16x16xf32> to vector<1x16xf32>
    %60 = vector.shape_cast %59 : vector<1x16xf32> to vector<16xf32>
    %c0_19 = arith.constant 0 : index
    %c0_20 = arith.constant 0 : index
    %c112 = arith.constant 112 : index
    %61 = vector.load %arg6[%c0_19, %c0_20, %c112] : memref<1x8x256xf32, #tpu.memory_space<vmem>>, vector<1x1x16xf32>
    %62 = vector.shape_cast %61 : vector<1x1x16xf32> to vector<16xf32>
    %63 = vector.shape_cast %60 : vector<16xf32> to vector<1x1x16xf32>
    tpu.vector_store %arg6[%c0_19, %c0_20, %c112], %63 {strides = array<i32>} : memref<1x8x256xf32, #tpu.memory_space<vmem>>, vector<1x1x16xf32>,
    %64 = vector.extract_strided_slice %23 {offsets = [8, 0], sizes = [1, 16], strides = [1, 1]} : vector<16x16xf32> to vector<1x16xf32>
    %65 = vector.shape_cast %64 : vector<1x16xf32> to vector<16xf32>
    %c0_21 = arith.constant 0 : index
    %c0_22 = arith.constant 0 : index
    %c128 = arith.constant 128 : index
    %66 = vector.load %arg6[%c0_21, %c0_22, %c128] : memref<1x8x256xf32, #tpu.memory_space<vmem>>, vector<1x1x16xf32>
    %67 = vector.shape_cast %66 : vector<1x1x16xf32> to vector<16xf32>
    %68 = vector.shape_cast %65 : vector<16xf32> to vector<1x1x16xf32>
    tpu.vector_store %arg6[%c0_21, %c0_22, %c128], %68 {strides = array<i32>} : memref<1x8x256xf32, #tpu.memory_space<vmem>>, vector<1x1x16xf32>,
    %69 = vector.extract_strided_slice %23 {offsets = [9, 0], sizes = [1, 16], strides = [1, 1]} : vector<16x16xf32> to vector<1x16xf32>
    %70 = vector.shape_cast %69 : vector<1x16xf32> to vector<16xf32>
    %c0_23 = arith.constant 0 : index
    %c0_24 = arith.constant 0 : index
    %c144 = arith.constant 144 : index
    %71 = vector.load %arg6[%c0_23, %c0_24, %c144] : memref<1x8x256xf32, #tpu.memory_space<vmem>>, vector<1x1x16xf32>
    %72 = vector.shape_cast %71 : vector<1x1x16xf32> to vector<16xf32>
    %73 = vector.shape_cast %70 : vector<16xf32> to vector<1x1x16xf32>
    tpu.vector_store %arg6[%c0_23, %c0_24, %c144], %73 {strides = array<i32>} : memref<1x8x256xf32, #tpu.memory_space<vmem>>, vector<1x1x16xf32>,
    %74 = vector.extract_strided_slice %23 {offsets = [10, 0], sizes = [1, 16], strides = [1, 1]} : vector<16x16xf32> to vector<1x16xf32>
    %75 = vector.shape_cast %74 : vector<1x16xf32> to vector<16xf32>
    %c0_25 = arith.constant 0 : index
    %c0_26 = arith.constant 0 : index
    %c160 = arith.constant 160 : index
    %76 = vector.load %arg6[%c0_25, %c0_26, %c160] : memref<1x8x256xf32, #tpu.memory_space<vmem>>, vector<1x1x16xf32>
    %77 = vector.shape_cast %76 : vector<1x1x16xf32> to vector<16xf32>
    %78 = vector.shape_cast %75 : vector<16xf32> to vector<1x1x16xf32>
    tpu.vector_store %arg6[%c0_25, %c0_26, %c160], %78 {strides = array<i32>} : memref<1x8x256xf32, #tpu.memory_space<vmem>>, vector<1x1x16xf32>,
    %79 = vector.extract_strided_slice %23 {offsets = [11, 0], sizes = [1, 16], strides = [1, 1]} : vector<16x16xf32> to vector<1x16xf32>
    %80 = vector.shape_cast %79 : vector<1x16xf32> to vector<16xf32>
    %c0_27 = arith.constant 0 : index
    %c0_28 = arith.constant 0 : index
    %c176 = arith.constant 176 : index
    %81 = vector.load %arg6[%c0_27, %c0_28, %c176] : memref<1x8x256xf32, #tpu.memory_space<vmem>>, vector<1x1x16xf32>
    %82 = vector.shape_cast %81 : vector<1x1x16xf32> to vector<16xf32>
    %83 = vector.shape_cast %80 : vector<16xf32> to vector<1x1x16xf32>
    tpu.vector_store %arg6[%c0_27, %c0_28, %c176], %83 {strides = array<i32>} : memref<1x8x256xf32, #tpu.memory_space<vmem>>, vector<1x1x16xf32>,
    %84 = vector.extract_strided_slice %23 {offsets = [12, 0], sizes = [1, 16], strides = [1, 1]} : vector<16x16xf32> to vector<1x16xf32>
    %85 = vector.shape_cast %84 : vector<1x16xf32> to vector<16xf32>
    %c0_29 = arith.constant 0 : index
    %c0_30 = arith.constant 0 : index
    %c192 = arith.constant 192 : index
    %86 = vector.load %arg6[%c0_29, %c0_30, %c192] : memref<1x8x256xf32, #tpu.memory_space<vmem>>, vector<1x1x16xf32>
    %87 = vector.shape_cast %86 : vector<1x1x16xf32> to vector<16xf32>
    %88 = vector.shape_cast %85 : vector<16xf32> to vector<1x1x16xf32>
    tpu.vector_store %arg6[%c0_29, %c0_30, %c192], %88 {strides = array<i32>} : memref<1x8x256xf32, #tpu.memory_space<vmem>>, vector<1x1x16xf32>,
    %89 = vector.extract_strided_slice %23 {offsets = [13, 0], sizes = [1, 16], strides = [1, 1]} : vector<16x16xf32> to vector<1x16xf32>
    %90 = vector.shape_cast %89 : vector<1x16xf32> to vector<16xf32>
    %c0_31 = arith.constant 0 : index
    %c0_32 = arith.constant 0 : index
    %c208 = arith.constant 208 : index
    %91 = vector.load %arg6[%c0_31, %c0_32, %c208] : memref<1x8x256xf32, #tpu.memory_space<vmem>>, vector<1x1x16xf32>
    %92 = vector.shape_cast %91 : vector<1x1x16xf32> to vector<16xf32>
    %93 = vector.shape_cast %90 : vector<16xf32> to vector<1x1x16xf32>
    tpu.vector_store %arg6[%c0_31, %c0_32, %c208], %93 {strides = array<i32>} : memref<1x8x256xf32, #tpu.memory_space<vmem>>, vector<1x1x16xf32>,
    %94 = vector.extract_strided_slice %23 {offsets = [14, 0], sizes = [1, 16], strides = [1, 1]} : vector<16x16xf32> to vector<1x16xf32>
    %95 = vector.shape_cast %94 : vector<1x16xf32> to vector<16xf32>
    %c0_33 = arith.constant 0 : index
    %c0_34 = arith.constant 0 : index
    %c224 = arith.constant 224 : index
    %96 = vector.load %arg6[%c0_33, %c0_34, %c224] : memref<1x8x256xf32, #tpu.memory_space<vmem>>, vector<1x1x16xf32>
    %97 = vector.shape_cast %96 : vector<1x1x16xf32> to vector<16xf32>
    %98 = vector.shape_cast %95 : vector<16xf32> to vector<1x1x16xf32>
    tpu.vector_store %arg6[%c0_33, %c0_34, %c224], %98 {strides = array<i32>} : memref<1x8x256xf32, #tpu.memory_space<vmem>>, vector<1x1x16xf32>,
    %99 = vector.extract_strided_slice %23 {offsets = [15, 0], sizes = [1, 16], strides = [1, 1]} : vector<16x16xf32> to vector<1x16xf32>
    %100 = vector.shape_cast %99 : vector<1x16xf32> to vector<16xf32>
    %c0_35 = arith.constant 0 : index
    %c0_36 = arith.constant 0 : index
    %c240 = arith.constant 240 : index
    %101 = vector.load %arg6[%c0_35, %c0_36, %c240] : memref<1x8x256xf32, #tpu.memory_space<vmem>>, vector<1x1x16xf32>
    %102 = vector.shape_cast %101 : vector<1x1x16xf32> to vector<16xf32>
    %103 = vector.shape_cast %100 : vector<16xf32> to vector<1x1x16xf32>
    tpu.vector_store %arg6[%c0_35, %c0_36, %c240], %103 {strides = array<i32>} : memref<1x8x256xf32, #tpu.memory_space<vmem>>, vector<1x1x16xf32>,
    %c1_i32_37 = arith.constant 1 : i32
    %104 = arith.addi %3, %c1_i32_37 : i32
    %105 = arith.index_cast %104 : i32 to index
    %106 = memref.load %arg2[%105] : memref<8xi32, #tpu.memory_space<smem>>
    %c1_i32_38 = arith.constant 1 : i32
    %107 = arith.addi %3, %c1_i32_38 : i32
    %108 = arith.index_cast %107 : i32 to index
    %109 = memref.load %arg3[%108] : memref<8xi32, #tpu.memory_space<smem>>
    %c1_i32_39 = arith.constant 1 : i32
    %110 = arith.addi %3, %c1_i32_39 : i32
    %111 = arith.index_cast %110 : i32 to index
    %112 = memref.load %arg4[%111] : memref<8xi32, #tpu.memory_space<smem>>
    %113 = arith.index_cast %106 : i32 to index
    %114 = arith.index_cast %109 : i32 to index
    %c0_40 = arith.constant 0 : index
    %115 = vector.load %arg7[%113, %114, %c0_40] : memref<4x18x18xf32, #tpu.memory_space<vmem>>, vector<1x16x18xf32>
    %116 = vector.shape_cast %115 : vector<1x16x18xf32> to vector<16x18xf32>
    %117 = vector.extract_strided_slice %116 {offsets = [0, 0], sizes = [16, 16], strides = [1, 1]} : vector<16x18xf32> to vector<16x16xf32>
    %c1_i32_41 = arith.constant 1 : i32
    %118 = arith.cmpi eq, %112, %c1_i32_41 : i32
    %119 = vector.extract_strided_slice %116 {offsets = [0, 1], sizes = [16, 16], strides = [1, 1]} : vector<16x18xf32> to vector<16x16xf32>
    %120 = arith.select %118, %119, %117 : vector<16x16xf32>
    %c2_i32_42 = arith.constant 2 : i32
    %121 = arith.cmpi eq, %112, %c2_i32_42 : i32
    %122 = vector.extract_strided_slice %116 {offsets = [0, 2], sizes = [16, 16], strides = [1, 1]} : vector<16x18xf32> to vector<16x16xf32>
    %123 = arith.select %121, %122, %120 : vector<16x16xf32>
    %124 = vector.extract_strided_slice %123 {offsets = [0, 0], sizes = [1, 16], strides = [1, 1]} : vector<16x16xf32> to vector<1x16xf32>
    %125 = vector.shape_cast %124 : vector<1x16xf32> to vector<16xf32>
    %c0_43 = arith.constant 0 : index
    %c1 = arith.constant 1 : index
    %c0_44 = arith.constant 0 : index
    %126 = vector.load %arg6[%c0_43, %c1, %c0_44] : memref<1x8x256xf32, #tpu.memory_space<vmem>>, vector<1x1x16xf32>
    %127 = vector.shape_cast %126 : vector<1x1x16xf32> to vector<16xf32>
    %128 = vector.shape_cast %125 : vector<16xf32> to vector<1x1x16xf32>
    tpu.vector_store %arg6[%c0_43, %c1, %c0_44], %128 {strides = array<i32>} : memref<1x8x256xf32, #tpu.memory_space<vmem>>, vector<1x1x16xf32>,
    %129 = vector.extract_strided_slice %123 {offsets = [1, 0], sizes = [1, 16], strides = [1, 1]} : vector<16x16xf32> to vector<1x16xf32>
    %130 = vector.shape_cast %129 : vector<1x16xf32> to vector<16xf32>
    %c0_45 = arith.constant 0 : index
    %c1_46 = arith.constant 1 : index
    %c16_47 = arith.constant 16 : index
    %131 = vector.load %arg6[%c0_45, %c1_46, %c16_47] : memref<1x8x256xf32, #tpu.memory_space<vmem>>, vector<1x1x16xf32>
    %132 = vector.shape_cast %131 : vector<1x1x16xf32> to vector<16xf32>
    %133 = vector.shape_cast %130 : vector<16xf32> to vector<1x1x16xf32>
    tpu.vector_store %arg6[%c0_45, %c1_46, %c16_47], %133 {strides = array<i32>} : memref<1x8x256xf32, #tpu.memory_space<vmem>>, vector<1x1x16xf32>,
    %134 = vector.extract_strided_slice %123 {offsets = [2, 0], sizes = [1, 16], strides = [1, 1]} : vector<16x16xf32> to vector<1x16xf32>
    %135 = vector.shape_cast %134 : vector<1x16xf32> to vector<16xf32>
    %c0_48 = arith.constant 0 : index
    %c1_49 = arith.constant 1 : index
    %c32_50 = arith.constant 32 : index
    %136 = vector.load %arg6[%c0_48, %c1_49, %c32_50] : memref<1x8x256xf32, #tpu.memory_space<vmem>>, vector<1x1x16xf32>
    %137 = vector.shape_cast %136 : vector<1x1x16xf32> to vector<16xf32>
    %138 = vector.shape_cast %135 : vector<16xf32> to vector<1x1x16xf32>
    tpu.vector_store %arg6[%c0_48, %c1_49, %c32_50], %138 {strides = array<i32>} : memref<1x8x256xf32, #tpu.memory_space<vmem>>, vector<1x1x16xf32>,
    %139 = vector.extract_strided_slice %123 {offsets = [3, 0], sizes = [1, 16], strides = [1, 1]} : vector<16x16xf32> to vector<1x16xf32>
    %140 = vector.shape_cast %139 : vector<1x16xf32> to vector<16xf32>
    %c0_51 = arith.constant 0 : index
    %c1_52 = arith.constant 1 : index
    %c48_53 = arith.constant 48 : index
    %141 = vector.load %arg6[%c0_51, %c1_52, %c48_53] : memref<1x8x256xf32, #tpu.memory_space<vmem>>, vector<1x1x16xf32>
    %142 = vector.shape_cast %141 : vector<1x1x16xf32> to vector<16xf32>
    %143 = vector.shape_cast %140 : vector<16xf32> to vector<1x1x16xf32>
    tpu.vector_store %arg6[%c0_51, %c1_52, %c48_53], %143 {strides = array<i32>} : memref<1x8x256xf32, #tpu.memory_space<vmem>>, vector<1x1x16xf32>,
    %144 = vector.extract_strided_slice %123 {offsets = [4, 0], sizes = [1, 16], strides = [1, 1]} : vector<16x16xf32> to vector<1x16xf32>
    %145 = vector.shape_cast %144 : vector<1x16xf32> to vector<16xf32>
    %c0_54 = arith.constant 0 : index
    %c1_55 = arith.constant 1 : index
    %c64_56 = arith.constant 64 : index
    %146 = vector.load %arg6[%c0_54, %c1_55, %c64_56] : memref<1x8x256xf32, #tpu.memory_space<vmem>>, vector<1x1x16xf32>
    %147 = vector.shape_cast %146 : vector<1x1x16xf32> to vector<16xf32>
    %148 = vector.shape_cast %145 : vector<16xf32> to vector<1x1x16xf32>
    tpu.vector_store %arg6[%c0_54, %c1_55, %c64_56], %148 {strides = array<i32>} : memref<1x8x256xf32, #tpu.memory_space<vmem>>, vector<1x1x16xf32>,
    %149 = vector.extract_strided_slice %123 {offsets = [5, 0], sizes = [1, 16], strides = [1, 1]} : vector<16x16xf32> to vector<1x16xf32>
    %150 = vector.shape_cast %149 : vector<1x16xf32> to vector<16xf32>
    %c0_57 = arith.constant 0 : index
    %c1_58 = arith.constant 1 : index
    %c80_59 = arith.constant 80 : index
    %151 = vector.load %arg6[%c0_57, %c1_58, %c80_59] : memref<1x8x256xf32, #tpu.memory_space<vmem>>, vector<1x1x16xf32>
    %152 = vector.shape_cast %151 : vector<1x1x16xf32> to vector<16xf32>
    %153 = vector.shape_cast %150 : vector<16xf32> to vector<1x1x16xf32>
    tpu.vector_store %arg6[%c0_57, %c1_58, %c80_59], %153 {strides = array<i32>} : memref<1x8x256xf32, #tpu.memory_space<vmem>>, vector<1x1x16xf32>,
    %154 = vector.extract_strided_slice %123 {offsets = [6, 0], sizes = [1, 16], strides = [1, 1]} : vector<16x16xf32> to vector<1x16xf32>
    %155 = vector.shape_cast %154 : vector<1x16xf32> to vector<16xf32>
    %c0_60 = arith.constant 0 : index
    %c1_61 = arith.constant 1 : index
    %c96_62 = arith.constant 96 : index
    %156 = vector.load %arg6[%c0_60, %c1_61, %c96_62] : memref<1x8x256xf32, #tpu.memory_space<vmem>>, vector<1x1x16xf32>
    %157 = vector.shape_cast %156 : vector<1x1x16xf32> to vector<16xf32>
    %158 = vector.shape_cast %155 : vector<16xf32> to vector<1x1x16xf32>
    tpu.vector_store %arg6[%c0_60, %c1_61, %c96_62], %158 {strides = array<i32>} : memref<1x8x256xf32, #tpu.memory_space<vmem>>, vector<1x1x16xf32>,
    %159 = vector.extract_strided_slice %123 {offsets = [7, 0], sizes = [1, 16], strides = [1, 1]} : vector<16x16xf32> to vector<1x16xf32>
    %160 = vector.shape_cast %159 : vector<1x16xf32> to vector<16xf32>
    %c0_63 = arith.constant 0 : index
    %c1_64 = arith.constant 1 : index
    %c112_65 = arith.constant 112 : index
    %161 = vector.load %arg6[%c0_63, %c1_64, %c112_65] : memref<1x8x256xf32, #tpu.memory_space<vmem>>, vector<1x1x16xf32>
    %162 = vector.shape_cast %161 : vector<1x1x16xf32> to vector<16xf32>
    %163 = vector.shape_cast %160 : vector<16xf32> to vector<1x1x16xf32>
    tpu.vector_store %arg6[%c0_63, %c1_64, %c112_65], %163 {strides = array<i32>} : memref<1x8x256xf32, #tpu.memory_space<vmem>>, vector<1x1x16xf32>,
    %164 = vector.extract_strided_slice %123 {offsets = [8, 0], sizes = [1, 16], strides = [1, 1]} : vector<16x16xf32> to vector<1x16xf32>
    %165 = vector.shape_cast %164 : vector<1x16xf32> to vector<16xf32>
    %c0_66 = arith.constant 0 : index
    %c1_67 = arith.constant 1 : index
    %c128_68 = arith.constant 128 : index
    %166 = vector.load %arg6[%c0_66, %c1_67, %c128_68] : memref<1x8x256xf32, #tpu.memory_space<vmem>>, vector<1x1x16xf32>
    %167 = vector.shape_cast %166 : vector<1x1x16xf32> to vector<16xf32>
    %168 = vector.shape_cast %165 : vector<16xf32> to vector<1x1x16xf32>
    tpu.vector_store %arg6[%c0_66, %c1_67, %c128_68], %168 {strides = array<i32>} : memref<1x8x256xf32, #tpu.memory_space<vmem>>, vector<1x1x16xf32>,
    %169 = vector.extract_strided_slice %123 {offsets = [9, 0], sizes = [1, 16], strides = [1, 1]} : vector<16x16xf32> to vector<1x16xf32>
    %170 = vector.shape_cast %169 : vector<1x16xf32> to vector<16xf32>
    %c0_69 = arith.constant 0 : index
    %c1_70 = arith.constant 1 : index
    %c144_71 = arith.constant 144 : index
    %171 = vector.load %arg6[%c0_69, %c1_70, %c144_71] : memref<1x8x256xf32, #tpu.memory_space<vmem>>, vector<1x1x16xf32>
    %172 = vector.shape_cast %171 : vector<1x1x16xf32> to vector<16xf32>
    %173 = vector.shape_cast %170 : vector<16xf32> to vector<1x1x16xf32>
    tpu.vector_store %arg6[%c0_69, %c1_70, %c144_71], %173 {strides = array<i32>} : memref<1x8x256xf32, #tpu.memory_space<vmem>>, vector<1x1x16xf32>,
    %174 = vector.extract_strided_slice %123 {offsets = [10, 0], sizes = [1, 16], strides = [1, 1]} : vector<16x16xf32> to vector<1x16xf32>
    %175 = vector.shape_cast %174 : vector<1x16xf32> to vector<16xf32>
    %c0_72 = arith.constant 0 : index
    %c1_73 = arith.constant 1 : index
    %c160_74 = arith.constant 160 : index
    %176 = vector.load %arg6[%c0_72, %c1_73, %c160_74] : memref<1x8x256xf32, #tpu.memory_space<vmem>>, vector<1x1x16xf32>
    %177 = vector.shape_cast %176 : vector<1x1x16xf32> to vector<16xf32>
    %178 = vector.shape_cast %175 : vector<16xf32> to vector<1x1x16xf32>
    tpu.vector_store %arg6[%c0_72, %c1_73, %c160_74], %178 {strides = array<i32>} : memref<1x8x256xf32, #tpu.memory_space<vmem>>, vector<1x1x16xf32>,
    %179 = vector.extract_strided_slice %123 {offsets = [11, 0], sizes = [1, 16], strides = [1, 1]} : vector<16x16xf32> to vector<1x16xf32>
    %180 = vector.shape_cast %179 : vector<1x16xf32> to vector<16xf32>
    %c0_75 = arith.constant 0 : index
    %c1_76 = arith.constant 1 : index
    %c176_77 = arith.constant 176 : index
    %181 = vector.load %arg6[%c0_75, %c1_76, %c176_77] : memref<1x8x256xf32, #tpu.memory_space<vmem>>, vector<1x1x16xf32>
    %182 = vector.shape_cast %181 : vector<1x1x16xf32> to vector<16xf32>
    %183 = vector.shape_cast %180 : vector<16xf32> to vector<1x1x16xf32>
    tpu.vector_store %arg6[%c0_75, %c1_76, %c176_77], %183 {strides = array<i32>} : memref<1x8x256xf32, #tpu.memory_space<vmem>>, vector<1x1x16xf32>,
    %184 = vector.extract_strided_slice %123 {offsets = [12, 0], sizes = [1, 16], strides = [1, 1]} : vector<16x16xf32> to vector<1x16xf32>
    %185 = vector.shape_cast %184 : vector<1x16xf32> to vector<16xf32>
    %c0_78 = arith.constant 0 : index
    %c1_79 = arith.constant 1 : index
    %c192_80 = arith.constant 192 : index
    %186 = vector.load %arg6[%c0_78, %c1_79, %c192_80] : memref<1x8x256xf32, #tpu.memory_space<vmem>>, vector<1x1x16xf32>
    %187 = vector.shape_cast %186 : vector<1x1x16xf32> to vector<16xf32>
    %188 = vector.shape_cast %185 : vector<16xf32> to vector<1x1x16xf32>
    tpu.vector_store %arg6[%c0_78, %c1_79, %c192_80], %188 {strides = array<i32>} : memref<1x8x256xf32, #tpu.memory_space<vmem>>, vector<1x1x16xf32>,
    %189 = vector.extract_strided_slice %123 {offsets = [13, 0], sizes = [1, 16], strides = [1, 1]} : vector<16x16xf32> to vector<1x16xf32>
    %190 = vector.shape_cast %189 : vector<1x16xf32> to vector<16xf32>
    %c0_81 = arith.constant 0 : index
    %c1_82 = arith.constant 1 : index
    %c208_83 = arith.constant 208 : index
    %191 = vector.load %arg6[%c0_81, %c1_82, %c208_83] : memref<1x8x256xf32, #tpu.memory_space<vmem>>, vector<1x1x16xf32>
    %192 = vector.shape_cast %191 : vector<1x1x16xf32> to vector<16xf32>
    %193 = vector.shape_cast %190 : vector<16xf32> to vector<1x1x16xf32>
    tpu.vector_store %arg6[%c0_81, %c1_82, %c208_83], %193 {strides = array<i32>} : memref<1x8x256xf32, #tpu.memory_space<vmem>>, vector<1x1x16xf32>,
    %194 = vector.extract_strided_slice %123 {offsets = [14, 0], sizes = [1, 16], strides = [1, 1]} : vector<16x16xf32> to vector<1x16xf32>
    %195 = vector.shape_cast %194 : vector<1x16xf32> to vector<16xf32>
    %c0_84 = arith.constant 0 : index
    %c1_85 = arith.constant 1 : index
    %c224_86 = arith.constant 224 : index
    %196 = vector.load %arg6[%c0_84, %c1_85, %c224_86] : memref<1x8x256xf32, #tpu.memory_space<vmem>>, vector<1x1x16xf32>
    %197 = vector.shape_cast %196 : vector<1x1x16xf32> to vector<16xf32>
    %198 = vector.shape_cast %195 : vector<16xf32> to vector<1x1x16xf32>
    tpu.vector_store %arg6[%c0_84, %c1_85, %c224_86], %198 {strides = array<i32>} : memref<1x8x256xf32, #tpu.memory_space<vmem>>, vector<1x1x16xf32>,
    %199 = vector.extract_strided_slice %123 {offsets = [15, 0], sizes = [1, 16], strides = [1, 1]} : vector<16x16xf32> to vector<1x16xf32>
    %200 = vector.shape_cast %199 : vector<1x16xf32> to vector<16xf32>
    %c0_87 = arith.constant 0 : index
    %c1_88 = arith.constant 1 : index
    %c240_89 = arith.constant 240 : index
    %201 = vector.load %arg6[%c0_87, %c1_88, %c240_89] : memref<1x8x256xf32, #tpu.memory_space<vmem>>, vector<1x1x16xf32>
    %202 = vector.shape_cast %201 : vector<1x1x16xf32> to vector<16xf32>
    %203 = vector.shape_cast %200 : vector<16xf32> to vector<1x1x16xf32>
    tpu.vector_store %arg6[%c0_87, %c1_88, %c240_89], %203 {strides = array<i32>} : memref<1x8x256xf32, #tpu.memory_space<vmem>>, vector<1x1x16xf32>,
    %c2_i32_90 = arith.constant 2 : i32
    %204 = arith.addi %3, %c2_i32_90 : i32
    %205 = arith.index_cast %204 : i32 to index
    %206 = memref.load %arg2[%205] : memref<8xi32, #tpu.memory_space<smem>>
    %c2_i32_91 = arith.constant 2 : i32
    %207 = arith.addi %3, %c2_i32_91 : i32
    %208 = arith.index_cast %207 : i32 to index
    %209 = memref.load %arg3[%208] : memref<8xi32, #tpu.memory_space<smem>>
    %c2_i32_92 = arith.constant 2 : i32
    %210 = arith.addi %3, %c2_i32_92 : i32
    %211 = arith.index_cast %210 : i32 to index
    %212 = memref.load %arg4[%211] : memref<8xi32, #tpu.memory_space<smem>>
    %213 = arith.index_cast %206 : i32 to index
    %214 = arith.index_cast %209 : i32 to index
    %c0_93 = arith.constant 0 : index
    %215 = vector.load %arg7[%213, %214, %c0_93] : memref<4x18x18xf32, #tpu.memory_space<vmem>>, vector<1x16x18xf32>
    %216 = vector.shape_cast %215 : vector<1x16x18xf32> to vector<16x18xf32>
    %217 = vector.extract_strided_slice %216 {offsets = [0, 0], sizes = [16, 16], strides = [1, 1]} : vector<16x18xf32> to vector<16x16xf32>
    %c1_i32_94 = arith.constant 1 : i32
    %218 = arith.cmpi eq, %212, %c1_i32_94 : i32
    %219 = vector.extract_strided_slice %216 {offsets = [0, 1], sizes = [16, 16], strides = [1, 1]} : vector<16x18xf32> to vector<16x16xf32>
    %220 = arith.select %218, %219, %217 : vector<16x16xf32>
    %c2_i32_95 = arith.constant 2 : i32
    %221 = arith.cmpi eq, %212, %c2_i32_95 : i32
    %222 = vector.extract_strided_slice %216 {offsets = [0, 2], sizes = [16, 16], strides = [1, 1]} : vector<16x18xf32> to vector<16x16xf32>
    %223 = arith.select %221, %222, %220 : vector<16x16xf32>
    %224 = vector.extract_strided_slice %223 {offsets = [0, 0], sizes = [1, 16], strides = [1, 1]} : vector<16x16xf32> to vector<1x16xf32>
    %225 = vector.shape_cast %224 : vector<1x16xf32> to vector<16xf32>
    %c0_96 = arith.constant 0 : index
    %c2 = arith.constant 2 : index
    %c0_97 = arith.constant 0 : index
    %226 = vector.load %arg6[%c0_96, %c2, %c0_97] : memref<1x8x256xf32, #tpu.memory_space<vmem>>, vector<1x1x16xf32>
    %227 = vector.shape_cast %226 : vector<1x1x16xf32> to vector<16xf32>
    %228 = vector.shape_cast %225 : vector<16xf32> to vector<1x1x16xf32>
    tpu.vector_store %arg6[%c0_96, %c2, %c0_97], %228 {strides = array<i32>} : memref<1x8x256xf32, #tpu.memory_space<vmem>>, vector<1x1x16xf32>,
    %229 = vector.extract_strided_slice %223 {offsets = [1, 0], sizes = [1, 16], strides = [1, 1]} : vector<16x16xf32> to vector<1x16xf32>
    %230 = vector.shape_cast %229 : vector<1x16xf32> to vector<16xf32>
    %c0_98 = arith.constant 0 : index
    %c2_99 = arith.constant 2 : index
    %c16_100 = arith.constant 16 : index
    %231 = vector.load %arg6[%c0_98, %c2_99, %c16_100] : memref<1x8x256xf32, #tpu.memory_space<vmem>>, vector<1x1x16xf32>
    %232 = vector.shape_cast %231 : vector<1x1x16xf32> to vector<16xf32>
    %233 = vector.shape_cast %230 : vector<16xf32> to vector<1x1x16xf32>
    tpu.vector_store %arg6[%c0_98, %c2_99, %c16_100], %233 {strides = array<i32>} : memref<1x8x256xf32, #tpu.memory_space<vmem>>, vector<1x1x16xf32>,
    %234 = vector.extract_strided_slice %223 {offsets = [2, 0], sizes = [1, 16], strides = [1, 1]} : vector<16x16xf32> to vector<1x16xf32>
    %235 = vector.shape_cast %234 : vector<1x16xf32> to vector<16xf32>
    %c0_101 = arith.constant 0 : index
    %c2_102 = arith.constant 2 : index
    %c32_103 = arith.constant 32 : index
    %236 = vector.load %arg6[%c0_101, %c2_102, %c32_103] : memref<1x8x256xf32, #tpu.memory_space<vmem>>, vector<1x1x16xf32>
    %237 = vector.shape_cast %236 : vector<1x1x16xf32> to vector<16xf32>
    %238 = vector.shape_cast %235 : vector<16xf32> to vector<1x1x16xf32>
    tpu.vector_store %arg6[%c0_101, %c2_102, %c32_103], %238 {strides = array<i32>} : memref<1x8x256xf32, #tpu.memory_space<vmem>>, vector<1x1x16xf32>,
    %239 = vector.extract_strided_slice %223 {offsets = [3, 0], sizes = [1, 16], strides = [1, 1]} : vector<16x16xf32> to vector<1x16xf32>
    %240 = vector.shape_cast %239 : vector<1x16xf32> to vector<16xf32>
    %c0_104 = arith.constant 0 : index
    %c2_105 = arith.constant 2 : index
    %c48_106 = arith.constant 48 : index
    %241 = vector.load %arg6[%c0_104, %c2_105, %c48_106] : memref<1x8x256xf32, #tpu.memory_space<vmem>>, vector<1x1x16xf32>
    %242 = vector.shape_cast %241 : vector<1x1x16xf32> to vector<16xf32>
    %243 = vector.shape_cast %240 : vector<16xf32> to vector<1x1x16xf32>
    tpu.vector_store %arg6[%c0_104, %c2_105, %c48_106], %243 {strides = array<i32>} : memref<1x8x256xf32, #tpu.memory_space<vmem>>, vector<1x1x16xf32>,
    %244 = vector.extract_strided_slice %223 {offsets = [4, 0], sizes = [1, 16], strides = [1, 1]} : vector<16x16xf32> to vector<1x16xf32>
    %245 = vector.shape_cast %244 : vector<1x16xf32> to vector<16xf32>
    %c0_107 = arith.constant 0 : index
    %c2_108 = arith.constant 2 : index
    %c64_109 = arith.constant 64 : index
    %246 = vector.load %arg6[%c0_107, %c2_108, %c64_109] : memref<1x8x256xf32, #tpu.memory_space<vmem>>, vector<1x1x16xf32>
    %247 = vector.shape_cast %246 : vector<1x1x16xf32> to vector<16xf32>
    %248 = vector.shape_cast %245 : vector<16xf32> to vector<1x1x16xf32>
    tpu.vector_store %arg6[%c0_107, %c2_108, %c64_109], %248 {strides = array<i32>} : memref<1x8x256xf32, #tpu.memory_space<vmem>>, vector<1x1x16xf32>,
    %249 = vector.extract_strided_slice %223 {offsets = [5, 0], sizes = [1, 16], strides = [1, 1]} : vector<16x16xf32> to vector<1x16xf32>
    %250 = vector.shape_cast %249 : vector<1x16xf32> to vector<16xf32>
    %c0_110 = arith.constant 0 : index
    %c2_111 = arith.constant 2 : index
    %c80_112 = arith.constant 80 : index
    %251 = vector.load %arg6[%c0_110, %c2_111, %c80_112] : memref<1x8x256xf32, #tpu.memory_space<vmem>>, vector<1x1x16xf32>
    %252 = vector.shape_cast %251 : vector<1x1x16xf32> to vector<16xf32>
    %253 = vector.shape_cast %250 : vector<16xf32> to vector<1x1x16xf32>
    tpu.vector_store %arg6[%c0_110, %c2_111, %c80_112], %253 {strides = array<i32>} : memref<1x8x256xf32, #tpu.memory_space<vmem>>, vector<1x1x16xf32>,
    %254 = vector.extract_strided_slice %223 {offsets = [6, 0], sizes = [1, 16], strides = [1, 1]} : vector<16x16xf32> to vector<1x16xf32>
    %255 = vector.shape_cast %254 : vector<1x16xf32> to vector<16xf32>
    %c0_113 = arith.constant 0 : index
    %c2_114 = arith.constant 2 : index
    %c96_115 = arith.constant 96 : index
    %256 = vector.load %arg6[%c0_113, %c2_114, %c96_115] : memref<1x8x256xf32, #tpu.memory_space<vmem>>, vector<1x1x16xf32>
    %257 = vector.shape_cast %256 : vector<1x1x16xf32> to vector<16xf32>
    %258 = vector.shape_cast %255 : vector<16xf32> to vector<1x1x16xf32>
    tpu.vector_store %arg6[%c0_113, %c2_114, %c96_115], %258 {strides = array<i32>} : memref<1x8x256xf32, #tpu.memory_space<vmem>>, vector<1x1x16xf32>,
    %259 = vector.extract_strided_slice %223 {offsets = [7, 0], sizes = [1, 16], strides = [1, 1]} : vector<16x16xf32> to vector<1x16xf32>
    %260 = vector.shape_cast %259 : vector<1x16xf32> to vector<16xf32>
    %c0_116 = arith.constant 0 : index
    %c2_117 = arith.constant 2 : index
    %c112_118 = arith.constant 112 : index
    %261 = vector.load %arg6[%c0_116, %c2_117, %c112_118] : memref<1x8x256xf32, #tpu.memory_space<vmem>>, vector<1x1x16xf32>
    %262 = vector.shape_cast %261 : vector<1x1x16xf32> to vector<16xf32>
    %263 = vector.shape_cast %260 : vector<16xf32> to vector<1x1x16xf32>
    tpu.vector_store %arg6[%c0_116, %c2_117, %c112_118], %263 {strides = array<i32>} : memref<1x8x256xf32, #tpu.memory_space<vmem>>, vector<1x1x16xf32>,
    %264 = vector.extract_strided_slice %223 {offsets = [8, 0], sizes = [1, 16], strides = [1, 1]} : vector<16x16xf32> to vector<1x16xf32>
    %265 = vector.shape_cast %264 : vector<1x16xf32> to vector<16xf32>
    %c0_119 = arith.constant 0 : index
    %c2_120 = arith.constant 2 : index
    %c128_121 = arith.constant 128 : index
    %266 = vector.load %arg6[%c0_119, %c2_120, %c128_121] : memref<1x8x256xf32, #tpu.memory_space<vmem>>, vector<1x1x16xf32>
    %267 = vector.shape_cast %266 : vector<1x1x16xf32> to vector<16xf32>
    %268 = vector.shape_cast %265 : vector<16xf32> to vector<1x1x16xf32>
    tpu.vector_store %arg6[%c0_119, %c2_120, %c128_121], %268 {strides = array<i32>} : memref<1x8x256xf32, #tpu.memory_space<vmem>>, vector<1x1x16xf32>,
    %269 = vector.extract_strided_slice %223 {offsets = [9, 0], sizes = [1, 16], strides = [1, 1]} : vector<16x16xf32> to vector<1x16xf32>
    %270 = vector.shape_cast %269 : vector<1x16xf32> to vector<16xf32>
    %c0_122 = arith.constant 0 : index
    %c2_123 = arith.constant 2 : index
    %c144_124 = arith.constant 144 : index
    %271 = vector.load %arg6[%c0_122, %c2_123, %c144_124] : memref<1x8x256xf32, #tpu.memory_space<vmem>>, vector<1x1x16xf32>
    %272 = vector.shape_cast %271 : vector<1x1x16xf32> to vector<16xf32>
    %273 = vector.shape_cast %270 : vector<16xf32> to vector<1x1x16xf32>
    tpu.vector_store %arg6[%c0_122, %c2_123, %c144_124], %273 {strides = array<i32>} : memref<1x8x256xf32, #tpu.memory_space<vmem>>, vector<1x1x16xf32>,
    %274 = vector.extract_strided_slice %223 {offsets = [10, 0], sizes = [1, 16], strides = [1, 1]} : vector<16x16xf32> to vector<1x16xf32>
    %275 = vector.shape_cast %274 : vector<1x16xf32> to vector<16xf32>
    %c0_125 = arith.constant 0 : index
    %c2_126 = arith.constant 2 : index
    %c160_127 = arith.constant 160 : index
    %276 = vector.load %arg6[%c0_125, %c2_126, %c160_127] : memref<1x8x256xf32, #tpu.memory_space<vmem>>, vector<1x1x16xf32>
    %277 = vector.shape_cast %276 : vector<1x1x16xf32> to vector<16xf32>
    %278 = vector.shape_cast %275 : vector<16xf32> to vector<1x1x16xf32>
    tpu.vector_store %arg6[%c0_125, %c2_126, %c160_127], %278 {strides = array<i32>} : memref<1x8x256xf32, #tpu.memory_space<vmem>>, vector<1x1x16xf32>,
    %279 = vector.extract_strided_slice %223 {offsets = [11, 0], sizes = [1, 16], strides = [1, 1]} : vector<16x16xf32> to vector<1x16xf32>
    %280 = vector.shape_cast %279 : vector<1x16xf32> to vector<16xf32>
    %c0_128 = arith.constant 0 : index
    %c2_129 = arith.constant 2 : index
    %c176_130 = arith.constant 176 : index
    %281 = vector.load %arg6[%c0_128, %c2_129, %c176_130] : memref<1x8x256xf32, #tpu.memory_space<vmem>>, vector<1x1x16xf32>
    %282 = vector.shape_cast %281 : vector<1x1x16xf32> to vector<16xf32>
    %283 = vector.shape_cast %280 : vector<16xf32> to vector<1x1x16xf32>
    tpu.vector_store %arg6[%c0_128, %c2_129, %c176_130], %283 {strides = array<i32>} : memref<1x8x256xf32, #tpu.memory_space<vmem>>, vector<1x1x16xf32>,
    %284 = vector.extract_strided_slice %223 {offsets = [12, 0], sizes = [1, 16], strides = [1, 1]} : vector<16x16xf32> to vector<1x16xf32>
    %285 = vector.shape_cast %284 : vector<1x16xf32> to vector<16xf32>
    %c0_131 = arith.constant 0 : index
    %c2_132 = arith.constant 2 : index
    %c192_133 = arith.constant 192 : index
    %286 = vector.load %arg6[%c0_131, %c2_132, %c192_133] : memref<1x8x256xf32, #tpu.memory_space<vmem>>, vector<1x1x16xf32>
    %287 = vector.shape_cast %286 : vector<1x1x16xf32> to vector<16xf32>
    %288 = vector.shape_cast %285 : vector<16xf32> to vector<1x1x16xf32>
    tpu.vector_store %arg6[%c0_131, %c2_132, %c192_133], %288 {strides = array<i32>} : memref<1x8x256xf32, #tpu.memory_space<vmem>>, vector<1x1x16xf32>,
    %289 = vector.extract_strided_slice %223 {offsets = [13, 0], sizes = [1, 16], strides = [1, 1]} : vector<16x16xf32> to vector<1x16xf32>
    %290 = vector.shape_cast %289 : vector<1x16xf32> to vector<16xf32>
    %c0_134 = arith.constant 0 : index
    %c2_135 = arith.constant 2 : index
    %c208_136 = arith.constant 208 : index
    %291 = vector.load %arg6[%c0_134, %c2_135, %c208_136] : memref<1x8x256xf32, #tpu.memory_space<vmem>>, vector<1x1x16xf32>
    %292 = vector.shape_cast %291 : vector<1x1x16xf32> to vector<16xf32>
    %293 = vector.shape_cast %290 : vector<16xf32> to vector<1x1x16xf32>
    tpu.vector_store %arg6[%c0_134, %c2_135, %c208_136], %293 {strides = array<i32>} : memref<1x8x256xf32, #tpu.memory_space<vmem>>, vector<1x1x16xf32>,
    %294 = vector.extract_strided_slice %223 {offsets = [14, 0], sizes = [1, 16], strides = [1, 1]} : vector<16x16xf32> to vector<1x16xf32>
    %295 = vector.shape_cast %294 : vector<1x16xf32> to vector<16xf32>
    %c0_137 = arith.constant 0 : index
    %c2_138 = arith.constant 2 : index
    %c224_139 = arith.constant 224 : index
    %296 = vector.load %arg6[%c0_137, %c2_138, %c224_139] : memref<1x8x256xf32, #tpu.memory_space<vmem>>, vector<1x1x16xf32>
    %297 = vector.shape_cast %296 : vector<1x1x16xf32> to vector<16xf32>
    %298 = vector.shape_cast %295 : vector<16xf32> to vector<1x1x16xf32>
    tpu.vector_store %arg6[%c0_137, %c2_138, %c224_139], %298 {strides = array<i32>} : memref<1x8x256xf32, #tpu.memory_space<vmem>>, vector<1x1x16xf32>,
    %299 = vector.extract_strided_slice %223 {offsets = [15, 0], sizes = [1, 16], strides = [1, 1]} : vector<16x16xf32> to vector<1x16xf32>
    %300 = vector.shape_cast %299 : vector<1x16xf32> to vector<16xf32>
    %c0_140 = arith.constant 0 : index
    %c2_141 = arith.constant 2 : index
    %c240_142 = arith.constant 240 : index
    %301 = vector.load %arg6[%c0_140, %c2_141, %c240_142] : memref<1x8x256xf32, #tpu.memory_space<vmem>>, vector<1x1x16xf32>
    %302 = vector.shape_cast %301 : vector<1x1x16xf32> to vector<16xf32>
    %303 = vector.shape_cast %300 : vector<16xf32> to vector<1x1x16xf32>
    tpu.vector_store %arg6[%c0_140, %c2_141, %c240_142], %303 {strides = array<i32>} : memref<1x8x256xf32, #tpu.memory_space<vmem>>, vector<1x1x16xf32>,
    %c3_i32 = arith.constant 3 : i32
    %304 = arith.addi %3, %c3_i32 : i32
    %305 = arith.index_cast %304 : i32 to index
    %306 = memref.load %arg2[%305] : memref<8xi32, #tpu.memory_space<smem>>
    %c3_i32_143 = arith.constant 3 : i32
    %307 = arith.addi %3, %c3_i32_143 : i32
    %308 = arith.index_cast %307 : i32 to index
    %309 = memref.load %arg3[%308] : memref<8xi32, #tpu.memory_space<smem>>
    %c3_i32_144 = arith.constant 3 : i32
    %310 = arith.addi %3, %c3_i32_144 : i32
    %311 = arith.index_cast %310 : i32 to index
    %312 = memref.load %arg4[%311] : memref<8xi32, #tpu.memory_space<smem>>
    %313 = arith.index_cast %306 : i32 to index
    %314 = arith.index_cast %309 : i32 to index
    %c0_145 = arith.constant 0 : index
    %315 = vector.load %arg7[%313, %314, %c0_145] : memref<4x18x18xf32, #tpu.memory_space<vmem>>, vector<1x16x18xf32>
    %316 = vector.shape_cast %315 : vector<1x16x18xf32> to vector<16x18xf32>
    %317 = vector.extract_strided_slice %316 {offsets = [0, 0], sizes = [16, 16], strides = [1, 1]} : vector<16x18xf32> to vector<16x16xf32>
    %c1_i32_146 = arith.constant 1 : i32
    %318 = arith.cmpi eq, %312, %c1_i32_146 : i32
    %319 = vector.extract_strided_slice %316 {offsets = [0, 1], sizes = [16, 16], strides = [1, 1]} : vector<16x18xf32> to vector<16x16xf32>
    %320 = arith.select %318, %319, %317 : vector<16x16xf32>
    %c2_i32_147 = arith.constant 2 : i32
    %321 = arith.cmpi eq, %312, %c2_i32_147 : i32
    %322 = vector.extract_strided_slice %316 {offsets = [0, 2], sizes = [16, 16], strides = [1, 1]} : vector<16x18xf32> to vector<16x16xf32>
    %323 = arith.select %321, %322, %320 : vector<16x16xf32>
    %324 = vector.extract_strided_slice %323 {offsets = [0, 0], sizes = [1, 16], strides = [1, 1]} : vector<16x16xf32> to vector<1x16xf32>
    %325 = vector.shape_cast %324 : vector<1x16xf32> to vector<16xf32>
    %c0_148 = arith.constant 0 : index
    %c3 = arith.constant 3 : index
    %c0_149 = arith.constant 0 : index
    %326 = vector.load %arg6[%c0_148, %c3, %c0_149] : memref<1x8x256xf32, #tpu.memory_space<vmem>>, vector<1x1x16xf32>
    %327 = vector.shape_cast %326 : vector<1x1x16xf32> to vector<16xf32>
    %328 = vector.shape_cast %325 : vector<16xf32> to vector<1x1x16xf32>
    tpu.vector_store %arg6[%c0_148, %c3, %c0_149], %328 {strides = array<i32>} : memref<1x8x256xf32, #tpu.memory_space<vmem>>, vector<1x1x16xf32>,
    %329 = vector.extract_strided_slice %323 {offsets = [1, 0], sizes = [1, 16], strides = [1, 1]} : vector<16x16xf32> to vector<1x16xf32>
    %330 = vector.shape_cast %329 : vector<1x16xf32> to vector<16xf32>
    %c0_150 = arith.constant 0 : index
    %c3_151 = arith.constant 3 : index
    %c16_152 = arith.constant 16 : index
    %331 = vector.load %arg6[%c0_150, %c3_151, %c16_152] : memref<1x8x256xf32, #tpu.memory_space<vmem>>, vector<1x1x16xf32>
    %332 = vector.shape_cast %331 : vector<1x1x16xf32> to vector<16xf32>
    %333 = vector.shape_cast %330 : vector<16xf32> to vector<1x1x16xf32>
    tpu.vector_store %arg6[%c0_150, %c3_151, %c16_152], %333 {strides = array<i32>} : memref<1x8x256xf32, #tpu.memory_space<vmem>>, vector<1x1x16xf32>,
    %334 = vector.extract_strided_slice %323 {offsets = [2, 0], sizes = [1, 16], strides = [1, 1]} : vector<16x16xf32> to vector<1x16xf32>
    %335 = vector.shape_cast %334 : vector<1x16xf32> to vector<16xf32>
    %c0_153 = arith.constant 0 : index
    %c3_154 = arith.constant 3 : index
    %c32_155 = arith.constant 32 : index
    %336 = vector.load %arg6[%c0_153, %c3_154, %c32_155] : memref<1x8x256xf32, #tpu.memory_space<vmem>>, vector<1x1x16xf32>
    %337 = vector.shape_cast %336 : vector<1x1x16xf32> to vector<16xf32>
    %338 = vector.shape_cast %335 : vector<16xf32> to vector<1x1x16xf32>
    tpu.vector_store %arg6[%c0_153, %c3_154, %c32_155], %338 {strides = array<i32>} : memref<1x8x256xf32, #tpu.memory_space<vmem>>, vector<1x1x16xf32>,
    %339 = vector.extract_strided_slice %323 {offsets = [3, 0], sizes = [1, 16], strides = [1, 1]} : vector<16x16xf32> to vector<1x16xf32>
    %340 = vector.shape_cast %339 : vector<1x16xf32> to vector<16xf32>
    %c0_156 = arith.constant 0 : index
    %c3_157 = arith.constant 3 : index
    %c48_158 = arith.constant 48 : index
    %341 = vector.load %arg6[%c0_156, %c3_157, %c48_158] : memref<1x8x256xf32, #tpu.memory_space<vmem>>, vector<1x1x16xf32>
    %342 = vector.shape_cast %341 : vector<1x1x16xf32> to vector<16xf32>
    %343 = vector.shape_cast %340 : vector<16xf32> to vector<1x1x16xf32>
    tpu.vector_store %arg6[%c0_156, %c3_157, %c48_158], %343 {strides = array<i32>} : memref<1x8x256xf32, #tpu.memory_space<vmem>>, vector<1x1x16xf32>,
    %344 = vector.extract_strided_slice %323 {offsets = [4, 0], sizes = [1, 16], strides = [1, 1]} : vector<16x16xf32> to vector<1x16xf32>
    %345 = vector.shape_cast %344 : vector<1x16xf32> to vector<16xf32>
    %c0_159 = arith.constant 0 : index
    %c3_160 = arith.constant 3 : index
    %c64_161 = arith.constant 64 : index
    %346 = vector.load %arg6[%c0_159, %c3_160, %c64_161] : memref<1x8x256xf32, #tpu.memory_space<vmem>>, vector<1x1x16xf32>
    %347 = vector.shape_cast %346 : vector<1x1x16xf32> to vector<16xf32>
    %348 = vector.shape_cast %345 : vector<16xf32> to vector<1x1x16xf32>
    tpu.vector_store %arg6[%c0_159, %c3_160, %c64_161], %348 {strides = array<i32>} : memref<1x8x256xf32, #tpu.memory_space<vmem>>, vector<1x1x16xf32>,
    %349 = vector.extract_strided_slice %323 {offsets = [5, 0], sizes = [1, 16], strides = [1, 1]} : vector<16x16xf32> to vector<1x16xf32>
    %350 = vector.shape_cast %349 : vector<1x16xf32> to vector<16xf32>
    %c0_162 = arith.constant 0 : index
    %c3_163 = arith.constant 3 : index
    %c80_164 = arith.constant 80 : index
    %351 = vector.load %arg6[%c0_162, %c3_163, %c80_164] : memref<1x8x256xf32, #tpu.memory_space<vmem>>, vector<1x1x16xf32>
    %352 = vector.shape_cast %351 : vector<1x1x16xf32> to vector<16xf32>
    %353 = vector.shape_cast %350 : vector<16xf32> to vector<1x1x16xf32>
    tpu.vector_store %arg6[%c0_162, %c3_163, %c80_164], %353 {strides = array<i32>} : memref<1x8x256xf32, #tpu.memory_space<vmem>>, vector<1x1x16xf32>,
    %354 = vector.extract_strided_slice %323 {offsets = [6, 0], sizes = [1, 16], strides = [1, 1]} : vector<16x16xf32> to vector<1x16xf32>
    %355 = vector.shape_cast %354 : vector<1x16xf32> to vector<16xf32>
    %c0_165 = arith.constant 0 : index
    %c3_166 = arith.constant 3 : index
    %c96_167 = arith.constant 96 : index
    %356 = vector.load %arg6[%c0_165, %c3_166, %c96_167] : memref<1x8x256xf32, #tpu.memory_space<vmem>>, vector<1x1x16xf32>
    %357 = vector.shape_cast %356 : vector<1x1x16xf32> to vector<16xf32>
    %358 = vector.shape_cast %355 : vector<16xf32> to vector<1x1x16xf32>
    tpu.vector_store %arg6[%c0_165, %c3_166, %c96_167], %358 {strides = array<i32>} : memref<1x8x256xf32, #tpu.memory_space<vmem>>, vector<1x1x16xf32>,
    %359 = vector.extract_strided_slice %323 {offsets = [7, 0], sizes = [1, 16], strides = [1, 1]} : vector<16x16xf32> to vector<1x16xf32>
    %360 = vector.shape_cast %359 : vector<1x16xf32> to vector<16xf32>
    %c0_168 = arith.constant 0 : index
    %c3_169 = arith.constant 3 : index
    %c112_170 = arith.constant 112 : index
    %361 = vector.load %arg6[%c0_168, %c3_169, %c112_170] : memref<1x8x256xf32, #tpu.memory_space<vmem>>, vector<1x1x16xf32>
    %362 = vector.shape_cast %361 : vector<1x1x16xf32> to vector<16xf32>
    %363 = vector.shape_cast %360 : vector<16xf32> to vector<1x1x16xf32>
    tpu.vector_store %arg6[%c0_168, %c3_169, %c112_170], %363 {strides = array<i32>} : memref<1x8x256xf32, #tpu.memory_space<vmem>>, vector<1x1x16xf32>,
    %364 = vector.extract_strided_slice %323 {offsets = [8, 0], sizes = [1, 16], strides = [1, 1]} : vector<16x16xf32> to vector<1x16xf32>
    %365 = vector.shape_cast %364 : vector<1x16xf32> to vector<16xf32>
    %c0_171 = arith.constant 0 : index
    %c3_172 = arith.constant 3 : index
    %c128_173 = arith.constant 128 : index
    %366 = vector.load %arg6[%c0_171, %c3_172, %c128_173] : memref<1x8x256xf32, #tpu.memory_space<vmem>>, vector<1x1x16xf32>
    %367 = vector.shape_cast %366 : vector<1x1x16xf32> to vector<16xf32>
    %368 = vector.shape_cast %365 : vector<16xf32> to vector<1x1x16xf32>
    tpu.vector_store %arg6[%c0_171, %c3_172, %c128_173], %368 {strides = array<i32>} : memref<1x8x256xf32, #tpu.memory_space<vmem>>, vector<1x1x16xf32>,
    %369 = vector.extract_strided_slice %323 {offsets = [9, 0], sizes = [1, 16], strides = [1, 1]} : vector<16x16xf32> to vector<1x16xf32>
    %370 = vector.shape_cast %369 : vector<1x16xf32> to vector<16xf32>
    %c0_174 = arith.constant 0 : index
    %c3_175 = arith.constant 3 : index
    %c144_176 = arith.constant 144 : index
    %371 = vector.load %arg6[%c0_174, %c3_175, %c144_176] : memref<1x8x256xf32, #tpu.memory_space<vmem>>, vector<1x1x16xf32>
    %372 = vector.shape_cast %371 : vector<1x1x16xf32> to vector<16xf32>
    %373 = vector.shape_cast %370 : vector<16xf32> to vector<1x1x16xf32>
    tpu.vector_store %arg6[%c0_174, %c3_175, %c144_176], %373 {strides = array<i32>} : memref<1x8x256xf32, #tpu.memory_space<vmem>>, vector<1x1x16xf32>,
    %374 = vector.extract_strided_slice %323 {offsets = [10, 0], sizes = [1, 16], strides = [1, 1]} : vector<16x16xf32> to vector<1x16xf32>
    %375 = vector.shape_cast %374 : vector<1x16xf32> to vector<16xf32>
    %c0_177 = arith.constant 0 : index
    %c3_178 = arith.constant 3 : index
    %c160_179 = arith.constant 160 : index
    %376 = vector.load %arg6[%c0_177, %c3_178, %c160_179] : memref<1x8x256xf32, #tpu.memory_space<vmem>>, vector<1x1x16xf32>
    %377 = vector.shape_cast %376 : vector<1x1x16xf32> to vector<16xf32>
    %378 = vector.shape_cast %375 : vector<16xf32> to vector<1x1x16xf32>
    tpu.vector_store %arg6[%c0_177, %c3_178, %c160_179], %378 {strides = array<i32>} : memref<1x8x256xf32, #tpu.memory_space<vmem>>, vector<1x1x16xf32>,
    %379 = vector.extract_strided_slice %323 {offsets = [11, 0], sizes = [1, 16], strides = [1, 1]} : vector<16x16xf32> to vector<1x16xf32>
    %380 = vector.shape_cast %379 : vector<1x16xf32> to vector<16xf32>
    %c0_180 = arith.constant 0 : index
    %c3_181 = arith.constant 3 : index
    %c176_182 = arith.constant 176 : index
    %381 = vector.load %arg6[%c0_180, %c3_181, %c176_182] : memref<1x8x256xf32, #tpu.memory_space<vmem>>, vector<1x1x16xf32>
    %382 = vector.shape_cast %381 : vector<1x1x16xf32> to vector<16xf32>
    %383 = vector.shape_cast %380 : vector<16xf32> to vector<1x1x16xf32>
    tpu.vector_store %arg6[%c0_180, %c3_181, %c176_182], %383 {strides = array<i32>} : memref<1x8x256xf32, #tpu.memory_space<vmem>>, vector<1x1x16xf32>,
    %384 = vector.extract_strided_slice %323 {offsets = [12, 0], sizes = [1, 16], strides = [1, 1]} : vector<16x16xf32> to vector<1x16xf32>
    %385 = vector.shape_cast %384 : vector<1x16xf32> to vector<16xf32>
    %c0_183 = arith.constant 0 : index
    %c3_184 = arith.constant 3 : index
    %c192_185 = arith.constant 192 : index
    %386 = vector.load %arg6[%c0_183, %c3_184, %c192_185] : memref<1x8x256xf32, #tpu.memory_space<vmem>>, vector<1x1x16xf32>
    %387 = vector.shape_cast %386 : vector<1x1x16xf32> to vector<16xf32>
    %388 = vector.shape_cast %385 : vector<16xf32> to vector<1x1x16xf32>
    tpu.vector_store %arg6[%c0_183, %c3_184, %c192_185], %388 {strides = array<i32>} : memref<1x8x256xf32, #tpu.memory_space<vmem>>, vector<1x1x16xf32>,
    %389 = vector.extract_strided_slice %323 {offsets = [13, 0], sizes = [1, 16], strides = [1, 1]} : vector<16x16xf32> to vector<1x16xf32>
    %390 = vector.shape_cast %389 : vector<1x16xf32> to vector<16xf32>
    %c0_186 = arith.constant 0 : index
    %c3_187 = arith.constant 3 : index
    %c208_188 = arith.constant 208 : index
    %391 = vector.load %arg6[%c0_186, %c3_187, %c208_188] : memref<1x8x256xf32, #tpu.memory_space<vmem>>, vector<1x1x16xf32>
    %392 = vector.shape_cast %391 : vector<1x1x16xf32> to vector<16xf32>
    %393 = vector.shape_cast %390 : vector<16xf32> to vector<1x1x16xf32>
    tpu.vector_store %arg6[%c0_186, %c3_187, %c208_188], %393 {strides = array<i32>} : memref<1x8x256xf32, #tpu.memory_space<vmem>>, vector<1x1x16xf32>,
    %394 = vector.extract_strided_slice %323 {offsets = [14, 0], sizes = [1, 16], strides = [1, 1]} : vector<16x16xf32> to vector<1x16xf32>
    %395 = vector.shape_cast %394 : vector<1x16xf32> to vector<16xf32>
    %c0_189 = arith.constant 0 : index
    %c3_190 = arith.constant 3 : index
    %c224_191 = arith.constant 224 : index
    %396 = vector.load %arg6[%c0_189, %c3_190, %c224_191] : memref<1x8x256xf32, #tpu.memory_space<vmem>>, vector<1x1x16xf32>
    %397 = vector.shape_cast %396 : vector<1x1x16xf32> to vector<16xf32>
    %398 = vector.shape_cast %395 : vector<16xf32> to vector<1x1x16xf32>
    tpu.vector_store %arg6[%c0_189, %c3_190, %c224_191], %398 {strides = array<i32>} : memref<1x8x256xf32, #tpu.memory_space<vmem>>, vector<1x1x16xf32>,
    %399 = vector.extract_strided_slice %323 {offsets = [15, 0], sizes = [1, 16], strides = [1, 1]} : vector<16x16xf32> to vector<1x16xf32>
    %400 = vector.shape_cast %399 : vector<1x16xf32> to vector<16xf32>
    %c0_192 = arith.constant 0 : index
    %c3_193 = arith.constant 3 : index
    %c240_194 = arith.constant 240 : index
    %401 = vector.load %arg6[%c0_192, %c3_193, %c240_194] : memref<1x8x256xf32, #tpu.memory_space<vmem>>, vector<1x1x16xf32>
    %402 = vector.shape_cast %401 : vector<1x1x16xf32> to vector<16xf32>
    %403 = vector.shape_cast %400 : vector<16xf32> to vector<1x1x16xf32>
    tpu.vector_store %arg6[%c0_192, %c3_193, %c240_194], %403 {strides = array<i32>} : memref<1x8x256xf32, #tpu.memory_space<vmem>>, vector<1x1x16xf32>,
    %c4_i32 = arith.constant 4 : i32
    %404 = arith.addi %3, %c4_i32 : i32
    %405 = arith.index_cast %404 : i32 to index
    %406 = memref.load %arg2[%405] : memref<8xi32, #tpu.memory_space<smem>>
    %c4_i32_195 = arith.constant 4 : i32
    %407 = arith.addi %3, %c4_i32_195 : i32
    %408 = arith.index_cast %407 : i32 to index
    %409 = memref.load %arg3[%408] : memref<8xi32, #tpu.memory_space<smem>>
    %c4_i32_196 = arith.constant 4 : i32
    %410 = arith.addi %3, %c4_i32_196 : i32
    %411 = arith.index_cast %410 : i32 to index
    %412 = memref.load %arg4[%411] : memref<8xi32, #tpu.memory_space<smem>>
    %413 = arith.index_cast %406 : i32 to index
    %414 = arith.index_cast %409 : i32 to index
    %c0_197 = arith.constant 0 : index
    %415 = vector.load %arg7[%413, %414, %c0_197] : memref<4x18x18xf32, #tpu.memory_space<vmem>>, vector<1x16x18xf32>
    %416 = vector.shape_cast %415 : vector<1x16x18xf32> to vector<16x18xf32>
    %417 = vector.extract_strided_slice %416 {offsets = [0, 0], sizes = [16, 16], strides = [1, 1]} : vector<16x18xf32> to vector<16x16xf32>
    %c1_i32_198 = arith.constant 1 : i32
    %418 = arith.cmpi eq, %412, %c1_i32_198 : i32
    %419 = vector.extract_strided_slice %416 {offsets = [0, 1], sizes = [16, 16], strides = [1, 1]} : vector<16x18xf32> to vector<16x16xf32>
    %420 = arith.select %418, %419, %417 : vector<16x16xf32>
    %c2_i32_199 = arith.constant 2 : i32
    %421 = arith.cmpi eq, %412, %c2_i32_199 : i32
    %422 = vector.extract_strided_slice %416 {offsets = [0, 2], sizes = [16, 16], strides = [1, 1]} : vector<16x18xf32> to vector<16x16xf32>
    %423 = arith.select %421, %422, %420 : vector<16x16xf32>
    %424 = vector.extract_strided_slice %423 {offsets = [0, 0], sizes = [1, 16], strides = [1, 1]} : vector<16x16xf32> to vector<1x16xf32>
    %425 = vector.shape_cast %424 : vector<1x16xf32> to vector<16xf32>
    %c0_200 = arith.constant 0 : index
    %c4 = arith.constant 4 : index
    %c0_201 = arith.constant 0 : index
    %426 = vector.load %arg6[%c0_200, %c4, %c0_201] : memref<1x8x256xf32, #tpu.memory_space<vmem>>, vector<1x1x16xf32>
    %427 = vector.shape_cast %426 : vector<1x1x16xf32> to vector<16xf32>
    %428 = vector.shape_cast %425 : vector<16xf32> to vector<1x1x16xf32>
    tpu.vector_store %arg6[%c0_200, %c4, %c0_201], %428 {strides = array<i32>} : memref<1x8x256xf32, #tpu.memory_space<vmem>>, vector<1x1x16xf32>,
    %429 = vector.extract_strided_slice %423 {offsets = [1, 0], sizes = [1, 16], strides = [1, 1]} : vector<16x16xf32> to vector<1x16xf32>
    %430 = vector.shape_cast %429 : vector<1x16xf32> to vector<16xf32>
    %c0_202 = arith.constant 0 : index
    %c4_203 = arith.constant 4 : index
    %c16_204 = arith.constant 16 : index
    %431 = vector.load %arg6[%c0_202, %c4_203, %c16_204] : memref<1x8x256xf32, #tpu.memory_space<vmem>>, vector<1x1x16xf32>
    %432 = vector.shape_cast %431 : vector<1x1x16xf32> to vector<16xf32>
    %433 = vector.shape_cast %430 : vector<16xf32> to vector<1x1x16xf32>
    tpu.vector_store %arg6[%c0_202, %c4_203, %c16_204], %433 {strides = array<i32>} : memref<1x8x256xf32, #tpu.memory_space<vmem>>, vector<1x1x16xf32>,
    %434 = vector.extract_strided_slice %423 {offsets = [2, 0], sizes = [1, 16], strides = [1, 1]} : vector<16x16xf32> to vector<1x16xf32>
    %435 = vector.shape_cast %434 : vector<1x16xf32> to vector<16xf32>
    %c0_205 = arith.constant 0 : index
    %c4_206 = arith.constant 4 : index
    %c32_207 = arith.constant 32 : index
    %436 = vector.load %arg6[%c0_205, %c4_206, %c32_207] : memref<1x8x256xf32, #tpu.memory_space<vmem>>, vector<1x1x16xf32>
    %437 = vector.shape_cast %436 : vector<1x1x16xf32> to vector<16xf32>
    %438 = vector.shape_cast %435 : vector<16xf32> to vector<1x1x16xf32>
    tpu.vector_store %arg6[%c0_205, %c4_206, %c32_207], %438 {strides = array<i32>} : memref<1x8x256xf32, #tpu.memory_space<vmem>>, vector<1x1x16xf32>,
    %439 = vector.extract_strided_slice %423 {offsets = [3, 0], sizes = [1, 16], strides = [1, 1]} : vector<16x16xf32> to vector<1x16xf32>
    %440 = vector.shape_cast %439 : vector<1x16xf32> to vector<16xf32>
    %c0_208 = arith.constant 0 : index
    %c4_209 = arith.constant 4 : index
    %c48_210 = arith.constant 48 : index
    %441 = vector.load %arg6[%c0_208, %c4_209, %c48_210] : memref<1x8x256xf32, #tpu.memory_space<vmem>>, vector<1x1x16xf32>
    %442 = vector.shape_cast %441 : vector<1x1x16xf32> to vector<16xf32>
    %443 = vector.shape_cast %440 : vector<16xf32> to vector<1x1x16xf32>
    tpu.vector_store %arg6[%c0_208, %c4_209, %c48_210], %443 {strides = array<i32>} : memref<1x8x256xf32, #tpu.memory_space<vmem>>, vector<1x1x16xf32>,
    %444 = vector.extract_strided_slice %423 {offsets = [4, 0], sizes = [1, 16], strides = [1, 1]} : vector<16x16xf32> to vector<1x16xf32>
    %445 = vector.shape_cast %444 : vector<1x16xf32> to vector<16xf32>
    %c0_211 = arith.constant 0 : index
    %c4_212 = arith.constant 4 : index
    %c64_213 = arith.constant 64 : index
    %446 = vector.load %arg6[%c0_211, %c4_212, %c64_213] : memref<1x8x256xf32, #tpu.memory_space<vmem>>, vector<1x1x16xf32>
    %447 = vector.shape_cast %446 : vector<1x1x16xf32> to vector<16xf32>
    %448 = vector.shape_cast %445 : vector<16xf32> to vector<1x1x16xf32>
    tpu.vector_store %arg6[%c0_211, %c4_212, %c64_213], %448 {strides = array<i32>} : memref<1x8x256xf32, #tpu.memory_space<vmem>>, vector<1x1x16xf32>,
    %449 = vector.extract_strided_slice %423 {offsets = [5, 0], sizes = [1, 16], strides = [1, 1]} : vector<16x16xf32> to vector<1x16xf32>
    %450 = vector.shape_cast %449 : vector<1x16xf32> to vector<16xf32>
    %c0_214 = arith.constant 0 : index
    %c4_215 = arith.constant 4 : index
    %c80_216 = arith.constant 80 : index
    %451 = vector.load %arg6[%c0_214, %c4_215, %c80_216] : memref<1x8x256xf32, #tpu.memory_space<vmem>>, vector<1x1x16xf32>
    %452 = vector.shape_cast %451 : vector<1x1x16xf32> to vector<16xf32>
    %453 = vector.shape_cast %450 : vector<16xf32> to vector<1x1x16xf32>
    tpu.vector_store %arg6[%c0_214, %c4_215, %c80_216], %453 {strides = array<i32>} : memref<1x8x256xf32, #tpu.memory_space<vmem>>, vector<1x1x16xf32>,
    %454 = vector.extract_strided_slice %423 {offsets = [6, 0], sizes = [1, 16], strides = [1, 1]} : vector<16x16xf32> to vector<1x16xf32>
    %455 = vector.shape_cast %454 : vector<1x16xf32> to vector<16xf32>
    %c0_217 = arith.constant 0 : index
    %c4_218 = arith.constant 4 : index
    %c96_219 = arith.constant 96 : index
    %456 = vector.load %arg6[%c0_217, %c4_218, %c96_219] : memref<1x8x256xf32, #tpu.memory_space<vmem>>, vector<1x1x16xf32>
    %457 = vector.shape_cast %456 : vector<1x1x16xf32> to vector<16xf32>
    %458 = vector.shape_cast %455 : vector<16xf32> to vector<1x1x16xf32>
    tpu.vector_store %arg6[%c0_217, %c4_218, %c96_219], %458 {strides = array<i32>} : memref<1x8x256xf32, #tpu.memory_space<vmem>>, vector<1x1x16xf32>,
    %459 = vector.extract_strided_slice %423 {offsets = [7, 0], sizes = [1, 16], strides = [1, 1]} : vector<16x16xf32> to vector<1x16xf32>
    %460 = vector.shape_cast %459 : vector<1x16xf32> to vector<16xf32>
    %c0_220 = arith.constant 0 : index
    %c4_221 = arith.constant 4 : index
    %c112_222 = arith.constant 112 : index
    %461 = vector.load %arg6[%c0_220, %c4_221, %c112_222] : memref<1x8x256xf32, #tpu.memory_space<vmem>>, vector<1x1x16xf32>
    %462 = vector.shape_cast %461 : vector<1x1x16xf32> to vector<16xf32>
    %463 = vector.shape_cast %460 : vector<16xf32> to vector<1x1x16xf32>
    tpu.vector_store %arg6[%c0_220, %c4_221, %c112_222], %463 {strides = array<i32>} : memref<1x8x256xf32, #tpu.memory_space<vmem>>, vector<1x1x16xf32>,
    %464 = vector.extract_strided_slice %423 {offsets = [8, 0], sizes = [1, 16], strides = [1, 1]} : vector<16x16xf32> to vector<1x16xf32>
    %465 = vector.shape_cast %464 : vector<1x16xf32> to vector<16xf32>
    %c0_223 = arith.constant 0 : index
    %c4_224 = arith.constant 4 : index
    %c128_225 = arith.constant 128 : index
    %466 = vector.load %arg6[%c0_223, %c4_224, %c128_225] : memref<1x8x256xf32, #tpu.memory_space<vmem>>, vector<1x1x16xf32>
    %467 = vector.shape_cast %466 : vector<1x1x16xf32> to vector<16xf32>
    %468 = vector.shape_cast %465 : vector<16xf32> to vector<1x1x16xf32>
    tpu.vector_store %arg6[%c0_223, %c4_224, %c128_225], %468 {strides = array<i32>} : memref<1x8x256xf32, #tpu.memory_space<vmem>>, vector<1x1x16xf32>,
    %469 = vector.extract_strided_slice %423 {offsets = [9, 0], sizes = [1, 16], strides = [1, 1]} : vector<16x16xf32> to vector<1x16xf32>
    %470 = vector.shape_cast %469 : vector<1x16xf32> to vector<16xf32>
    %c0_226 = arith.constant 0 : index
    %c4_227 = arith.constant 4 : index
    %c144_228 = arith.constant 144 : index
    %471 = vector.load %arg6[%c0_226, %c4_227, %c144_228] : memref<1x8x256xf32, #tpu.memory_space<vmem>>, vector<1x1x16xf32>
    %472 = vector.shape_cast %471 : vector<1x1x16xf32> to vector<16xf32>
    %473 = vector.shape_cast %470 : vector<16xf32> to vector<1x1x16xf32>
    tpu.vector_store %arg6[%c0_226, %c4_227, %c144_228], %473 {strides = array<i32>} : memref<1x8x256xf32, #tpu.memory_space<vmem>>, vector<1x1x16xf32>,
    %474 = vector.extract_strided_slice %423 {offsets = [10, 0], sizes = [1, 16], strides = [1, 1]} : vector<16x16xf32> to vector<1x16xf32>
    %475 = vector.shape_cast %474 : vector<1x16xf32> to vector<16xf32>
    %c0_229 = arith.constant 0 : index
    %c4_230 = arith.constant 4 : index
    %c160_231 = arith.constant 160 : index
    %476 = vector.load %arg6[%c0_229, %c4_230, %c160_231] : memref<1x8x256xf32, #tpu.memory_space<vmem>>, vector<1x1x16xf32>
    %477 = vector.shape_cast %476 : vector<1x1x16xf32> to vector<16xf32>
    %478 = vector.shape_cast %475 : vector<16xf32> to vector<1x1x16xf32>
    tpu.vector_store %arg6[%c0_229, %c4_230, %c160_231], %478 {strides = array<i32>} : memref<1x8x256xf32, #tpu.memory_space<vmem>>, vector<1x1x16xf32>,
    %479 = vector.extract_strided_slice %423 {offsets = [11, 0], sizes = [1, 16], strides = [1, 1]} : vector<16x16xf32> to vector<1x16xf32>
    %480 = vector.shape_cast %479 : vector<1x16xf32> to vector<16xf32>
    %c0_232 = arith.constant 0 : index
    %c4_233 = arith.constant 4 : index
    %c176_234 = arith.constant 176 : index
    %481 = vector.load %arg6[%c0_232, %c4_233, %c176_234] : memref<1x8x256xf32, #tpu.memory_space<vmem>>, vector<1x1x16xf32>
    %482 = vector.shape_cast %481 : vector<1x1x16xf32> to vector<16xf32>
    %483 = vector.shape_cast %480 : vector<16xf32> to vector<1x1x16xf32>
    tpu.vector_store %arg6[%c0_232, %c4_233, %c176_234], %483 {strides = array<i32>} : memref<1x8x256xf32, #tpu.memory_space<vmem>>, vector<1x1x16xf32>,
    %484 = vector.extract_strided_slice %423 {offsets = [12, 0], sizes = [1, 16], strides = [1, 1]} : vector<16x16xf32> to vector<1x16xf32>
    %485 = vector.shape_cast %484 : vector<1x16xf32> to vector<16xf32>
    %c0_235 = arith.constant 0 : index
    %c4_236 = arith.constant 4 : index
    %c192_237 = arith.constant 192 : index
    %486 = vector.load %arg6[%c0_235, %c4_236, %c192_237] : memref<1x8x256xf32, #tpu.memory_space<vmem>>, vector<1x1x16xf32>
    %487 = vector.shape_cast %486 : vector<1x1x16xf32> to vector<16xf32>
    %488 = vector.shape_cast %485 : vector<16xf32> to vector<1x1x16xf32>
    tpu.vector_store %arg6[%c0_235, %c4_236, %c192_237], %488 {strides = array<i32>} : memref<1x8x256xf32, #tpu.memory_space<vmem>>, vector<1x1x16xf32>,
    %489 = vector.extract_strided_slice %423 {offsets = [13, 0], sizes = [1, 16], strides = [1, 1]} : vector<16x16xf32> to vector<1x16xf32>
    %490 = vector.shape_cast %489 : vector<1x16xf32> to vector<16xf32>
    %c0_238 = arith.constant 0 : index
    %c4_239 = arith.constant 4 : index
    %c208_240 = arith.constant 208 : index
    %491 = vector.load %arg6[%c0_238, %c4_239, %c208_240] : memref<1x8x256xf32, #tpu.memory_space<vmem>>, vector<1x1x16xf32>
    %492 = vector.shape_cast %491 : vector<1x1x16xf32> to vector<16xf32>
    %493 = vector.shape_cast %490 : vector<16xf32> to vector<1x1x16xf32>
    tpu.vector_store %arg6[%c0_238, %c4_239, %c208_240], %493 {strides = array<i32>} : memref<1x8x256xf32, #tpu.memory_space<vmem>>, vector<1x1x16xf32>,
    %494 = vector.extract_strided_slice %423 {offsets = [14, 0], sizes = [1, 16], strides = [1, 1]} : vector<16x16xf32> to vector<1x16xf32>
    %495 = vector.shape_cast %494 : vector<1x16xf32> to vector<16xf32>
    %c0_241 = arith.constant 0 : index
    %c4_242 = arith.constant 4 : index
    %c224_243 = arith.constant 224 : index
    %496 = vector.load %arg6[%c0_241, %c4_242, %c224_243] : memref<1x8x256xf32, #tpu.memory_space<vmem>>, vector<1x1x16xf32>
    %497 = vector.shape_cast %496 : vector<1x1x16xf32> to vector<16xf32>
    %498 = vector.shape_cast %495 : vector<16xf32> to vector<1x1x16xf32>
    tpu.vector_store %arg6[%c0_241, %c4_242, %c224_243], %498 {strides = array<i32>} : memref<1x8x256xf32, #tpu.memory_space<vmem>>, vector<1x1x16xf32>,
    %499 = vector.extract_strided_slice %423 {offsets = [15, 0], sizes = [1, 16], strides = [1, 1]} : vector<16x16xf32> to vector<1x16xf32>
    %500 = vector.shape_cast %499 : vector<1x16xf32> to vector<16xf32>
    %c0_244 = arith.constant 0 : index
    %c4_245 = arith.constant 4 : index
    %c240_246 = arith.constant 240 : index
    %501 = vector.load %arg6[%c0_244, %c4_245, %c240_246] : memref<1x8x256xf32, #tpu.memory_space<vmem>>, vector<1x1x16xf32>
    %502 = vector.shape_cast %501 : vector<1x1x16xf32> to vector<16xf32>
    %503 = vector.shape_cast %500 : vector<16xf32> to vector<1x1x16xf32>
    tpu.vector_store %arg6[%c0_244, %c4_245, %c240_246], %503 {strides = array<i32>} : memref<1x8x256xf32, #tpu.memory_space<vmem>>, vector<1x1x16xf32>,
    %c5_i32 = arith.constant 5 : i32
    %504 = arith.addi %3, %c5_i32 : i32
    %505 = arith.index_cast %504 : i32 to index
    %506 = memref.load %arg2[%505] : memref<8xi32, #tpu.memory_space<smem>>
    %c5_i32_247 = arith.constant 5 : i32
    %507 = arith.addi %3, %c5_i32_247 : i32
    %508 = arith.index_cast %507 : i32 to index
    %509 = memref.load %arg3[%508] : memref<8xi32, #tpu.memory_space<smem>>
    %c5_i32_248 = arith.constant 5 : i32
    %510 = arith.addi %3, %c5_i32_248 : i32
    %511 = arith.index_cast %510 : i32 to index
    %512 = memref.load %arg4[%511] : memref<8xi32, #tpu.memory_space<smem>>
    %513 = arith.index_cast %506 : i32 to index
    %514 = arith.index_cast %509 : i32 to index
    %c0_249 = arith.constant 0 : index
    %515 = vector.load %arg7[%513, %514, %c0_249] : memref<4x18x18xf32, #tpu.memory_space<vmem>>, vector<1x16x18xf32>
    %516 = vector.shape_cast %515 : vector<1x16x18xf32> to vector<16x18xf32>
    %517 = vector.extract_strided_slice %516 {offsets = [0, 0], sizes = [16, 16], strides = [1, 1]} : vector<16x18xf32> to vector<16x16xf32>
    %c1_i32_250 = arith.constant 1 : i32
    %518 = arith.cmpi eq, %512, %c1_i32_250 : i32
    %519 = vector.extract_strided_slice %516 {offsets = [0, 1], sizes = [16, 16], strides = [1, 1]} : vector<16x18xf32> to vector<16x16xf32>
    %520 = arith.select %518, %519, %517 : vector<16x16xf32>
    %c2_i32_251 = arith.constant 2 : i32
    %521 = arith.cmpi eq, %512, %c2_i32_251 : i32
    %522 = vector.extract_strided_slice %516 {offsets = [0, 2], sizes = [16, 16], strides = [1, 1]} : vector<16x18xf32> to vector<16x16xf32>
    %523 = arith.select %521, %522, %520 : vector<16x16xf32>
    %524 = vector.extract_strided_slice %523 {offsets = [0, 0], sizes = [1, 16], strides = [1, 1]} : vector<16x16xf32> to vector<1x16xf32>
    %525 = vector.shape_cast %524 : vector<1x16xf32> to vector<16xf32>
    %c0_252 = arith.constant 0 : index
    %c5 = arith.constant 5 : index
    %c0_253 = arith.constant 0 : index
    %526 = vector.load %arg6[%c0_252, %c5, %c0_253] : memref<1x8x256xf32, #tpu.memory_space<vmem>>, vector<1x1x16xf32>
    %527 = vector.shape_cast %526 : vector<1x1x16xf32> to vector<16xf32>
    %528 = vector.shape_cast %525 : vector<16xf32> to vector<1x1x16xf32>
    tpu.vector_store %arg6[%c0_252, %c5, %c0_253], %528 {strides = array<i32>} : memref<1x8x256xf32, #tpu.memory_space<vmem>>, vector<1x1x16xf32>,
    %529 = vector.extract_strided_slice %523 {offsets = [1, 0], sizes = [1, 16], strides = [1, 1]} : vector<16x16xf32> to vector<1x16xf32>
    %530 = vector.shape_cast %529 : vector<1x16xf32> to vector<16xf32>
    %c0_254 = arith.constant 0 : index
    %c5_255 = arith.constant 5 : index
    %c16_256 = arith.constant 16 : index
    %531 = vector.load %arg6[%c0_254, %c5_255, %c16_256] : memref<1x8x256xf32, #tpu.memory_space<vmem>>, vector<1x1x16xf32>
    %532 = vector.shape_cast %531 : vector<1x1x16xf32> to vector<16xf32>
    %533 = vector.shape_cast %530 : vector<16xf32> to vector<1x1x16xf32>
    tpu.vector_store %arg6[%c0_254, %c5_255, %c16_256], %533 {strides = array<i32>} : memref<1x8x256xf32, #tpu.memory_space<vmem>>, vector<1x1x16xf32>,
    %534 = vector.extract_strided_slice %523 {offsets = [2, 0], sizes = [1, 16], strides = [1, 1]} : vector<16x16xf32> to vector<1x16xf32>
    %535 = vector.shape_cast %534 : vector<1x16xf32> to vector<16xf32>
    %c0_257 = arith.constant 0 : index
    %c5_258 = arith.constant 5 : index
    %c32_259 = arith.constant 32 : index
    %536 = vector.load %arg6[%c0_257, %c5_258, %c32_259] : memref<1x8x256xf32, #tpu.memory_space<vmem>>, vector<1x1x16xf32>
    %537 = vector.shape_cast %536 : vector<1x1x16xf32> to vector<16xf32>
    %538 = vector.shape_cast %535 : vector<16xf32> to vector<1x1x16xf32>
    tpu.vector_store %arg6[%c0_257, %c5_258, %c32_259], %538 {strides = array<i32>} : memref<1x8x256xf32, #tpu.memory_space<vmem>>, vector<1x1x16xf32>,
    %539 = vector.extract_strided_slice %523 {offsets = [3, 0], sizes = [1, 16], strides = [1, 1]} : vector<16x16xf32> to vector<1x16xf32>
    %540 = vector.shape_cast %539 : vector<1x16xf32> to vector<16xf32>
    %c0_260 = arith.constant 0 : index
    %c5_261 = arith.constant 5 : index
    %c48_262 = arith.constant 48 : index
    %541 = vector.load %arg6[%c0_260, %c5_261, %c48_262] : memref<1x8x256xf32, #tpu.memory_space<vmem>>, vector<1x1x16xf32>
    %542 = vector.shape_cast %541 : vector<1x1x16xf32> to vector<16xf32>
    %543 = vector.shape_cast %540 : vector<16xf32> to vector<1x1x16xf32>
    tpu.vector_store %arg6[%c0_260, %c5_261, %c48_262], %543 {strides = array<i32>} : memref<1x8x256xf32, #tpu.memory_space<vmem>>, vector<1x1x16xf32>,
    %544 = vector.extract_strided_slice %523 {offsets = [4, 0], sizes = [1, 16], strides = [1, 1]} : vector<16x16xf32> to vector<1x16xf32>
    %545 = vector.shape_cast %544 : vector<1x16xf32> to vector<16xf32>
    %c0_263 = arith.constant 0 : index
    %c5_264 = arith.constant 5 : index
    %c64_265 = arith.constant 64 : index
    %546 = vector.load %arg6[%c0_263, %c5_264, %c64_265] : memref<1x8x256xf32, #tpu.memory_space<vmem>>, vector<1x1x16xf32>
    %547 = vector.shape_cast %546 : vector<1x1x16xf32> to vector<16xf32>
    %548 = vector.shape_cast %545 : vector<16xf32> to vector<1x1x16xf32>
    tpu.vector_store %arg6[%c0_263, %c5_264, %c64_265], %548 {strides = array<i32>} : memref<1x8x256xf32, #tpu.memory_space<vmem>>, vector<1x1x16xf32>,
    %549 = vector.extract_strided_slice %523 {offsets = [5, 0], sizes = [1, 16], strides = [1, 1]} : vector<16x16xf32> to vector<1x16xf32>
    %550 = vector.shape_cast %549 : vector<1x16xf32> to vector<16xf32>
    %c0_266 = arith.constant 0 : index
    %c5_267 = arith.constant 5 : index
    %c80_268 = arith.constant 80 : index
    %551 = vector.load %arg6[%c0_266, %c5_267, %c80_268] : memref<1x8x256xf32, #tpu.memory_space<vmem>>, vector<1x1x16xf32>
    %552 = vector.shape_cast %551 : vector<1x1x16xf32> to vector<16xf32>
    %553 = vector.shape_cast %550 : vector<16xf32> to vector<1x1x16xf32>
    tpu.vector_store %arg6[%c0_266, %c5_267, %c80_268], %553 {strides = array<i32>} : memref<1x8x256xf32, #tpu.memory_space<vmem>>, vector<1x1x16xf32>,
    %554 = vector.extract_strided_slice %523 {offsets = [6, 0], sizes = [1, 16], strides = [1, 1]} : vector<16x16xf32> to vector<1x16xf32>
    %555 = vector.shape_cast %554 : vector<1x16xf32> to vector<16xf32>
    %c0_269 = arith.constant 0 : index
    %c5_270 = arith.constant 5 : index
    %c96_271 = arith.constant 96 : index
    %556 = vector.load %arg6[%c0_269, %c5_270, %c96_271] : memref<1x8x256xf32, #tpu.memory_space<vmem>>, vector<1x1x16xf32>
    %557 = vector.shape_cast %556 : vector<1x1x16xf32> to vector<16xf32>
    %558 = vector.shape_cast %555 : vector<16xf32> to vector<1x1x16xf32>
    tpu.vector_store %arg6[%c0_269, %c5_270, %c96_271], %558 {strides = array<i32>} : memref<1x8x256xf32, #tpu.memory_space<vmem>>, vector<1x1x16xf32>,
    %559 = vector.extract_strided_slice %523 {offsets = [7, 0], sizes = [1, 16], strides = [1, 1]} : vector<16x16xf32> to vector<1x16xf32>
    %560 = vector.shape_cast %559 : vector<1x16xf32> to vector<16xf32>
    %c0_272 = arith.constant 0 : index
    %c5_273 = arith.constant 5 : index
    %c112_274 = arith.constant 112 : index
    %561 = vector.load %arg6[%c0_272, %c5_273, %c112_274] : memref<1x8x256xf32, #tpu.memory_space<vmem>>, vector<1x1x16xf32>
    %562 = vector.shape_cast %561 : vector<1x1x16xf32> to vector<16xf32>
    %563 = vector.shape_cast %560 : vector<16xf32> to vector<1x1x16xf32>
    tpu.vector_store %arg6[%c0_272, %c5_273, %c112_274], %563 {strides = array<i32>} : memref<1x8x256xf32, #tpu.memory_space<vmem>>, vector<1x1x16xf32>,
    %564 = vector.extract_strided_slice %523 {offsets = [8, 0], sizes = [1, 16], strides = [1, 1]} : vector<16x16xf32> to vector<1x16xf32>
    %565 = vector.shape_cast %564 : vector<1x16xf32> to vector<16xf32>
    %c0_275 = arith.constant 0 : index
    %c5_276 = arith.constant 5 : index
    %c128_277 = arith.constant 128 : index
    %566 = vector.load %arg6[%c0_275, %c5_276, %c128_277] : memref<1x8x256xf32, #tpu.memory_space<vmem>>, vector<1x1x16xf32>
    %567 = vector.shape_cast %566 : vector<1x1x16xf32> to vector<16xf32>
    %568 = vector.shape_cast %565 : vector<16xf32> to vector<1x1x16xf32>
    tpu.vector_store %arg6[%c0_275, %c5_276, %c128_277], %568 {strides = array<i32>} : memref<1x8x256xf32, #tpu.memory_space<vmem>>, vector<1x1x16xf32>,
    %569 = vector.extract_strided_slice %523 {offsets = [9, 0], sizes = [1, 16], strides = [1, 1]} : vector<16x16xf32> to vector<1x16xf32>
    %570 = vector.shape_cast %569 : vector<1x16xf32> to vector<16xf32>
    %c0_278 = arith.constant 0 : index
    %c5_279 = arith.constant 5 : index
    %c144_280 = arith.constant 144 : index
    %571 = vector.load %arg6[%c0_278, %c5_279, %c144_280] : memref<1x8x256xf32, #tpu.memory_space<vmem>>, vector<1x1x16xf32>
    %572 = vector.shape_cast %571 : vector<1x1x16xf32> to vector<16xf32>
    %573 = vector.shape_cast %570 : vector<16xf32> to vector<1x1x16xf32>
    tpu.vector_store %arg6[%c0_278, %c5_279, %c144_280], %573 {strides = array<i32>} : memref<1x8x256xf32, #tpu.memory_space<vmem>>, vector<1x1x16xf32>,
    %574 = vector.extract_strided_slice %523 {offsets = [10, 0], sizes = [1, 16], strides = [1, 1]} : vector<16x16xf32> to vector<1x16xf32>
    %575 = vector.shape_cast %574 : vector<1x16xf32> to vector<16xf32>
    %c0_281 = arith.constant 0 : index
    %c5_282 = arith.constant 5 : index
    %c160_283 = arith.constant 160 : index
    %576 = vector.load %arg6[%c0_281, %c5_282, %c160_283] : memref<1x8x256xf32, #tpu.memory_space<vmem>>, vector<1x1x16xf32>
    %577 = vector.shape_cast %576 : vector<1x1x16xf32> to vector<16xf32>
    %578 = vector.shape_cast %575 : vector<16xf32> to vector<1x1x16xf32>
    tpu.vector_store %arg6[%c0_281, %c5_282, %c160_283], %578 {strides = array<i32>} : memref<1x8x256xf32, #tpu.memory_space<vmem>>, vector<1x1x16xf32>,
    %579 = vector.extract_strided_slice %523 {offsets = [11, 0], sizes = [1, 16], strides = [1, 1]} : vector<16x16xf32> to vector<1x16xf32>
    %580 = vector.shape_cast %579 : vector<1x16xf32> to vector<16xf32>
    %c0_284 = arith.constant 0 : index
    %c5_285 = arith.constant 5 : index
    %c176_286 = arith.constant 176 : index
    %581 = vector.load %arg6[%c0_284, %c5_285, %c176_286] : memref<1x8x256xf32, #tpu.memory_space<vmem>>, vector<1x1x16xf32>
    %582 = vector.shape_cast %581 : vector<1x1x16xf32> to vector<16xf32>
    %583 = vector.shape_cast %580 : vector<16xf32> to vector<1x1x16xf32>
    tpu.vector_store %arg6[%c0_284, %c5_285, %c176_286], %583 {strides = array<i32>} : memref<1x8x256xf32, #tpu.memory_space<vmem>>, vector<1x1x16xf32>,
    %584 = vector.extract_strided_slice %523 {offsets = [12, 0], sizes = [1, 16], strides = [1, 1]} : vector<16x16xf32> to vector<1x16xf32>
    %585 = vector.shape_cast %584 : vector<1x16xf32> to vector<16xf32>
    %c0_287 = arith.constant 0 : index
    %c5_288 = arith.constant 5 : index
    %c192_289 = arith.constant 192 : index
    %586 = vector.load %arg6[%c0_287, %c5_288, %c192_289] : memref<1x8x256xf32, #tpu.memory_space<vmem>>, vector<1x1x16xf32>
    %587 = vector.shape_cast %586 : vector<1x1x16xf32> to vector<16xf32>
    %588 = vector.shape_cast %585 : vector<16xf32> to vector<1x1x16xf32>
    tpu.vector_store %arg6[%c0_287, %c5_288, %c192_289], %588 {strides = array<i32>} : memref<1x8x256xf32, #tpu.memory_space<vmem>>, vector<1x1x16xf32>,
    %589 = vector.extract_strided_slice %523 {offsets = [13, 0], sizes = [1, 16], strides = [1, 1]} : vector<16x16xf32> to vector<1x16xf32>
    %590 = vector.shape_cast %589 : vector<1x16xf32> to vector<16xf32>
    %c0_290 = arith.constant 0 : index
    %c5_291 = arith.constant 5 : index
    %c208_292 = arith.constant 208 : index
    %591 = vector.load %arg6[%c0_290, %c5_291, %c208_292] : memref<1x8x256xf32, #tpu.memory_space<vmem>>, vector<1x1x16xf32>
    %592 = vector.shape_cast %591 : vector<1x1x16xf32> to vector<16xf32>
    %593 = vector.shape_cast %590 : vector<16xf32> to vector<1x1x16xf32>
    tpu.vector_store %arg6[%c0_290, %c5_291, %c208_292], %593 {strides = array<i32>} : memref<1x8x256xf32, #tpu.memory_space<vmem>>, vector<1x1x16xf32>,
    %594 = vector.extract_strided_slice %523 {offsets = [14, 0], sizes = [1, 16], strides = [1, 1]} : vector<16x16xf32> to vector<1x16xf32>
    %595 = vector.shape_cast %594 : vector<1x16xf32> to vector<16xf32>
    %c0_293 = arith.constant 0 : index
    %c5_294 = arith.constant 5 : index
    %c224_295 = arith.constant 224 : index
    %596 = vector.load %arg6[%c0_293, %c5_294, %c224_295] : memref<1x8x256xf32, #tpu.memory_space<vmem>>, vector<1x1x16xf32>
    %597 = vector.shape_cast %596 : vector<1x1x16xf32> to vector<16xf32>
    %598 = vector.shape_cast %595 : vector<16xf32> to vector<1x1x16xf32>
    tpu.vector_store %arg6[%c0_293, %c5_294, %c224_295], %598 {strides = array<i32>} : memref<1x8x256xf32, #tpu.memory_space<vmem>>, vector<1x1x16xf32>,
    %599 = vector.extract_strided_slice %523 {offsets = [15, 0], sizes = [1, 16], strides = [1, 1]} : vector<16x16xf32> to vector<1x16xf32>
    %600 = vector.shape_cast %599 : vector<1x16xf32> to vector<16xf32>
    %c0_296 = arith.constant 0 : index
    %c5_297 = arith.constant 5 : index
    %c240_298 = arith.constant 240 : index
    %601 = vector.load %arg6[%c0_296, %c5_297, %c240_298] : memref<1x8x256xf32, #tpu.memory_space<vmem>>, vector<1x1x16xf32>
    %602 = vector.shape_cast %601 : vector<1x1x16xf32> to vector<16xf32>
    %603 = vector.shape_cast %600 : vector<16xf32> to vector<1x1x16xf32>
    tpu.vector_store %arg6[%c0_296, %c5_297, %c240_298], %603 {strides = array<i32>} : memref<1x8x256xf32, #tpu.memory_space<vmem>>, vector<1x1x16xf32>,
    %c6_i32 = arith.constant 6 : i32
    %604 = arith.addi %3, %c6_i32 : i32
    %605 = arith.index_cast %604 : i32 to index
    %606 = memref.load %arg2[%605] : memref<8xi32, #tpu.memory_space<smem>>
    %c6_i32_299 = arith.constant 6 : i32
    %607 = arith.addi %3, %c6_i32_299 : i32
    %608 = arith.index_cast %607 : i32 to index
    %609 = memref.load %arg3[%608] : memref<8xi32, #tpu.memory_space<smem>>
    %c6_i32_300 = arith.constant 6 : i32
    %610 = arith.addi %3, %c6_i32_300 : i32
    %611 = arith.index_cast %610 : i32 to index
    %612 = memref.load %arg4[%611] : memref<8xi32, #tpu.memory_space<smem>>
    %613 = arith.index_cast %606 : i32 to index
    %614 = arith.index_cast %609 : i32 to index
    %c0_301 = arith.constant 0 : index
    %615 = vector.load %arg7[%613, %614, %c0_301] : memref<4x18x18xf32, #tpu.memory_space<vmem>>, vector<1x16x18xf32>
    %616 = vector.shape_cast %615 : vector<1x16x18xf32> to vector<16x18xf32>
    %617 = vector.extract_strided_slice %616 {offsets = [0, 0], sizes = [16, 16], strides = [1, 1]} : vector<16x18xf32> to vector<16x16xf32>
    %c1_i32_302 = arith.constant 1 : i32
    %618 = arith.cmpi eq, %612, %c1_i32_302 : i32
    %619 = vector.extract_strided_slice %616 {offsets = [0, 1], sizes = [16, 16], strides = [1, 1]} : vector<16x18xf32> to vector<16x16xf32>
    %620 = arith.select %618, %619, %617 : vector<16x16xf32>
    %c2_i32_303 = arith.constant 2 : i32
    %621 = arith.cmpi eq, %612, %c2_i32_303 : i32
    %622 = vector.extract_strided_slice %616 {offsets = [0, 2], sizes = [16, 16], strides = [1, 1]} : vector<16x18xf32> to vector<16x16xf32>
    %623 = arith.select %621, %622, %620 : vector<16x16xf32>
    %624 = vector.extract_strided_slice %623 {offsets = [0, 0], sizes = [1, 16], strides = [1, 1]} : vector<16x16xf32> to vector<1x16xf32>
    %625 = vector.shape_cast %624 : vector<1x16xf32> to vector<16xf32>
    %c0_304 = arith.constant 0 : index
    %c6 = arith.constant 6 : index
    %c0_305 = arith.constant 0 : index
    %626 = vector.load %arg6[%c0_304, %c6, %c0_305] : memref<1x8x256xf32, #tpu.memory_space<vmem>>, vector<1x1x16xf32>
    %627 = vector.shape_cast %626 : vector<1x1x16xf32> to vector<16xf32>
    %628 = vector.shape_cast %625 : vector<16xf32> to vector<1x1x16xf32>
    tpu.vector_store %arg6[%c0_304, %c6, %c0_305], %628 {strides = array<i32>} : memref<1x8x256xf32, #tpu.memory_space<vmem>>, vector<1x1x16xf32>,
    %629 = vector.extract_strided_slice %623 {offsets = [1, 0], sizes = [1, 16], strides = [1, 1]} : vector<16x16xf32> to vector<1x16xf32>
    %630 = vector.shape_cast %629 : vector<1x16xf32> to vector<16xf32>
    %c0_306 = arith.constant 0 : index
    %c6_307 = arith.constant 6 : index
    %c16_308 = arith.constant 16 : index
    %631 = vector.load %arg6[%c0_306, %c6_307, %c16_308] : memref<1x8x256xf32, #tpu.memory_space<vmem>>, vector<1x1x16xf32>
    %632 = vector.shape_cast %631 : vector<1x1x16xf32> to vector<16xf32>
    %633 = vector.shape_cast %630 : vector<16xf32> to vector<1x1x16xf32>
    tpu.vector_store %arg6[%c0_306, %c6_307, %c16_308], %633 {strides = array<i32>} : memref<1x8x256xf32, #tpu.memory_space<vmem>>, vector<1x1x16xf32>,
    %634 = vector.extract_strided_slice %623 {offsets = [2, 0], sizes = [1, 16], strides = [1, 1]} : vector<16x16xf32> to vector<1x16xf32>
    %635 = vector.shape_cast %634 : vector<1x16xf32> to vector<16xf32>
    %c0_309 = arith.constant 0 : index
    %c6_310 = arith.constant 6 : index
    %c32_311 = arith.constant 32 : index
    %636 = vector.load %arg6[%c0_309, %c6_310, %c32_311] : memref<1x8x256xf32, #tpu.memory_space<vmem>>, vector<1x1x16xf32>
    %637 = vector.shape_cast %636 : vector<1x1x16xf32> to vector<16xf32>
    %638 = vector.shape_cast %635 : vector<16xf32> to vector<1x1x16xf32>
    tpu.vector_store %arg6[%c0_309, %c6_310, %c32_311], %638 {strides = array<i32>} : memref<1x8x256xf32, #tpu.memory_space<vmem>>, vector<1x1x16xf32>,
    %639 = vector.extract_strided_slice %623 {offsets = [3, 0], sizes = [1, 16], strides = [1, 1]} : vector<16x16xf32> to vector<1x16xf32>
    %640 = vector.shape_cast %639 : vector<1x16xf32> to vector<16xf32>
    %c0_312 = arith.constant 0 : index
    %c6_313 = arith.constant 6 : index
    %c48_314 = arith.constant 48 : index
    %641 = vector.load %arg6[%c0_312, %c6_313, %c48_314] : memref<1x8x256xf32, #tpu.memory_space<vmem>>, vector<1x1x16xf32>
    %642 = vector.shape_cast %641 : vector<1x1x16xf32> to vector<16xf32>
    %643 = vector.shape_cast %640 : vector<16xf32> to vector<1x1x16xf32>
    tpu.vector_store %arg6[%c0_312, %c6_313, %c48_314], %643 {strides = array<i32>} : memref<1x8x256xf32, #tpu.memory_space<vmem>>, vector<1x1x16xf32>,
    %644 = vector.extract_strided_slice %623 {offsets = [4, 0], sizes = [1, 16], strides = [1, 1]} : vector<16x16xf32> to vector<1x16xf32>
    %645 = vector.shape_cast %644 : vector<1x16xf32> to vector<16xf32>
    %c0_315 = arith.constant 0 : index
    %c6_316 = arith.constant 6 : index
    %c64_317 = arith.constant 64 : index
    %646 = vector.load %arg6[%c0_315, %c6_316, %c64_317] : memref<1x8x256xf32, #tpu.memory_space<vmem>>, vector<1x1x16xf32>
    %647 = vector.shape_cast %646 : vector<1x1x16xf32> to vector<16xf32>
    %648 = vector.shape_cast %645 : vector<16xf32> to vector<1x1x16xf32>
    tpu.vector_store %arg6[%c0_315, %c6_316, %c64_317], %648 {strides = array<i32>} : memref<1x8x256xf32, #tpu.memory_space<vmem>>, vector<1x1x16xf32>,
    %649 = vector.extract_strided_slice %623 {offsets = [5, 0], sizes = [1, 16], strides = [1, 1]} : vector<16x16xf32> to vector<1x16xf32>
    %650 = vector.shape_cast %649 : vector<1x16xf32> to vector<16xf32>
    %c0_318 = arith.constant 0 : index
    %c6_319 = arith.constant 6 : index
    %c80_320 = arith.constant 80 : index
    %651 = vector.load %arg6[%c0_318, %c6_319, %c80_320] : memref<1x8x256xf32, #tpu.memory_space<vmem>>, vector<1x1x16xf32>
    %652 = vector.shape_cast %651 : vector<1x1x16xf32> to vector<16xf32>
    %653 = vector.shape_cast %650 : vector<16xf32> to vector<1x1x16xf32>
    tpu.vector_store %arg6[%c0_318, %c6_319, %c80_320], %653 {strides = array<i32>} : memref<1x8x256xf32, #tpu.memory_space<vmem>>, vector<1x1x16xf32>,
    %654 = vector.extract_strided_slice %623 {offsets = [6, 0], sizes = [1, 16], strides = [1, 1]} : vector<16x16xf32> to vector<1x16xf32>
    %655 = vector.shape_cast %654 : vector<1x16xf32> to vector<16xf32>
    %c0_321 = arith.constant 0 : index
    %c6_322 = arith.constant 6 : index
    %c96_323 = arith.constant 96 : index
    %656 = vector.load %arg6[%c0_321, %c6_322, %c96_323] : memref<1x8x256xf32, #tpu.memory_space<vmem>>, vector<1x1x16xf32>
    %657 = vector.shape_cast %656 : vector<1x1x16xf32> to vector<16xf32>
    %658 = vector.shape_cast %655 : vector<16xf32> to vector<1x1x16xf32>
    tpu.vector_store %arg6[%c0_321, %c6_322, %c96_323], %658 {strides = array<i32>} : memref<1x8x256xf32, #tpu.memory_space<vmem>>, vector<1x1x16xf32>,
    %659 = vector.extract_strided_slice %623 {offsets = [7, 0], sizes = [1, 16], strides = [1, 1]} : vector<16x16xf32> to vector<1x16xf32>
    %660 = vector.shape_cast %659 : vector<1x16xf32> to vector<16xf32>
    %c0_324 = arith.constant 0 : index
    %c6_325 = arith.constant 6 : index
    %c112_326 = arith.constant 112 : index
    %661 = vector.load %arg6[%c0_324, %c6_325, %c112_326] : memref<1x8x256xf32, #tpu.memory_space<vmem>>, vector<1x1x16xf32>
    %662 = vector.shape_cast %661 : vector<1x1x16xf32> to vector<16xf32>
    %663 = vector.shape_cast %660 : vector<16xf32> to vector<1x1x16xf32>
    tpu.vector_store %arg6[%c0_324, %c6_325, %c112_326], %663 {strides = array<i32>} : memref<1x8x256xf32, #tpu.memory_space<vmem>>, vector<1x1x16xf32>,
    %664 = vector.extract_strided_slice %623 {offsets = [8, 0], sizes = [1, 16], strides = [1, 1]} : vector<16x16xf32> to vector<1x16xf32>
    %665 = vector.shape_cast %664 : vector<1x16xf32> to vector<16xf32>
    %c0_327 = arith.constant 0 : index
    %c6_328 = arith.constant 6 : index
    %c128_329 = arith.constant 128 : index
    %666 = vector.load %arg6[%c0_327, %c6_328, %c128_329] : memref<1x8x256xf32, #tpu.memory_space<vmem>>, vector<1x1x16xf32>
    %667 = vector.shape_cast %666 : vector<1x1x16xf32> to vector<16xf32>
    %668 = vector.shape_cast %665 : vector<16xf32> to vector<1x1x16xf32>
    tpu.vector_store %arg6[%c0_327, %c6_328, %c128_329], %668 {strides = array<i32>} : memref<1x8x256xf32, #tpu.memory_space<vmem>>, vector<1x1x16xf32>,
    %669 = vector.extract_strided_slice %623 {offsets = [9, 0], sizes = [1, 16], strides = [1, 1]} : vector<16x16xf32> to vector<1x16xf32>
    %670 = vector.shape_cast %669 : vector<1x16xf32> to vector<16xf32>
    %c0_330 = arith.constant 0 : index
    %c6_331 = arith.constant 6 : index
    %c144_332 = arith.constant 144 : index
    %671 = vector.load %arg6[%c0_330, %c6_331, %c144_332] : memref<1x8x256xf32, #tpu.memory_space<vmem>>, vector<1x1x16xf32>
    %672 = vector.shape_cast %671 : vector<1x1x16xf32> to vector<16xf32>
    %673 = vector.shape_cast %670 : vector<16xf32> to vector<1x1x16xf32>
    tpu.vector_store %arg6[%c0_330, %c6_331, %c144_332], %673 {strides = array<i32>} : memref<1x8x256xf32, #tpu.memory_space<vmem>>, vector<1x1x16xf32>,
    %674 = vector.extract_strided_slice %623 {offsets = [10, 0], sizes = [1, 16], strides = [1, 1]} : vector<16x16xf32> to vector<1x16xf32>
    %675 = vector.shape_cast %674 : vector<1x16xf32> to vector<16xf32>
    %c0_333 = arith.constant 0 : index
    %c6_334 = arith.constant 6 : index
    %c160_335 = arith.constant 160 : index
    %676 = vector.load %arg6[%c0_333, %c6_334, %c160_335] : memref<1x8x256xf32, #tpu.memory_space<vmem>>, vector<1x1x16xf32>
    %677 = vector.shape_cast %676 : vector<1x1x16xf32> to vector<16xf32>
    %678 = vector.shape_cast %675 : vector<16xf32> to vector<1x1x16xf32>
    tpu.vector_store %arg6[%c0_333, %c6_334, %c160_335], %678 {strides = array<i32>} : memref<1x8x256xf32, #tpu.memory_space<vmem>>, vector<1x1x16xf32>,
    %679 = vector.extract_strided_slice %623 {offsets = [11, 0], sizes = [1, 16], strides = [1, 1]} : vector<16x16xf32> to vector<1x16xf32>
    %680 = vector.shape_cast %679 : vector<1x16xf32> to vector<16xf32>
    %c0_336 = arith.constant 0 : index
    %c6_337 = arith.constant 6 : index
    %c176_338 = arith.constant 176 : index
    %681 = vector.load %arg6[%c0_336, %c6_337, %c176_338] : memref<1x8x256xf32, #tpu.memory_space<vmem>>, vector<1x1x16xf32>
    %682 = vector.shape_cast %681 : vector<1x1x16xf32> to vector<16xf32>
    %683 = vector.shape_cast %680 : vector<16xf32> to vector<1x1x16xf32>
    tpu.vector_store %arg6[%c0_336, %c6_337, %c176_338], %683 {strides = array<i32>} : memref<1x8x256xf32, #tpu.memory_space<vmem>>, vector<1x1x16xf32>,
    %684 = vector.extract_strided_slice %623 {offsets = [12, 0], sizes = [1, 16], strides = [1, 1]} : vector<16x16xf32> to vector<1x16xf32>
    %685 = vector.shape_cast %684 : vector<1x16xf32> to vector<16xf32>
    %c0_339 = arith.constant 0 : index
    %c6_340 = arith.constant 6 : index
    %c192_341 = arith.constant 192 : index
    %686 = vector.load %arg6[%c0_339, %c6_340, %c192_341] : memref<1x8x256xf32, #tpu.memory_space<vmem>>, vector<1x1x16xf32>
    %687 = vector.shape_cast %686 : vector<1x1x16xf32> to vector<16xf32>
    %688 = vector.shape_cast %685 : vector<16xf32> to vector<1x1x16xf32>
    tpu.vector_store %arg6[%c0_339, %c6_340, %c192_341], %688 {strides = array<i32>} : memref<1x8x256xf32, #tpu.memory_space<vmem>>, vector<1x1x16xf32>,
    %689 = vector.extract_strided_slice %623 {offsets = [13, 0], sizes = [1, 16], strides = [1, 1]} : vector<16x16xf32> to vector<1x16xf32>
    %690 = vector.shape_cast %689 : vector<1x16xf32> to vector<16xf32>
    %c0_342 = arith.constant 0 : index
    %c6_343 = arith.constant 6 : index
    %c208_344 = arith.constant 208 : index
    %691 = vector.load %arg6[%c0_342, %c6_343, %c208_344] : memref<1x8x256xf32, #tpu.memory_space<vmem>>, vector<1x1x16xf32>
    %692 = vector.shape_cast %691 : vector<1x1x16xf32> to vector<16xf32>
    %693 = vector.shape_cast %690 : vector<16xf32> to vector<1x1x16xf32>
    tpu.vector_store %arg6[%c0_342, %c6_343, %c208_344], %693 {strides = array<i32>} : memref<1x8x256xf32, #tpu.memory_space<vmem>>, vector<1x1x16xf32>,
    %694 = vector.extract_strided_slice %623 {offsets = [14, 0], sizes = [1, 16], strides = [1, 1]} : vector<16x16xf32> to vector<1x16xf32>
    %695 = vector.shape_cast %694 : vector<1x16xf32> to vector<16xf32>
    %c0_345 = arith.constant 0 : index
    %c6_346 = arith.constant 6 : index
    %c224_347 = arith.constant 224 : index
    %696 = vector.load %arg6[%c0_345, %c6_346, %c224_347] : memref<1x8x256xf32, #tpu.memory_space<vmem>>, vector<1x1x16xf32>
    %697 = vector.shape_cast %696 : vector<1x1x16xf32> to vector<16xf32>
    %698 = vector.shape_cast %695 : vector<16xf32> to vector<1x1x16xf32>
    tpu.vector_store %arg6[%c0_345, %c6_346, %c224_347], %698 {strides = array<i32>} : memref<1x8x256xf32, #tpu.memory_space<vmem>>, vector<1x1x16xf32>,
    %699 = vector.extract_strided_slice %623 {offsets = [15, 0], sizes = [1, 16], strides = [1, 1]} : vector<16x16xf32> to vector<1x16xf32>
    %700 = vector.shape_cast %699 : vector<1x16xf32> to vector<16xf32>
    %c0_348 = arith.constant 0 : index
    %c6_349 = arith.constant 6 : index
    %c240_350 = arith.constant 240 : index
    %701 = vector.load %arg6[%c0_348, %c6_349, %c240_350] : memref<1x8x256xf32, #tpu.memory_space<vmem>>, vector<1x1x16xf32>
    %702 = vector.shape_cast %701 : vector<1x1x16xf32> to vector<16xf32>
    %703 = vector.shape_cast %700 : vector<16xf32> to vector<1x1x16xf32>
    tpu.vector_store %arg6[%c0_348, %c6_349, %c240_350], %703 {strides = array<i32>} : memref<1x8x256xf32, #tpu.memory_space<vmem>>, vector<1x1x16xf32>,
    %c7_i32 = arith.constant 7 : i32
    %704 = arith.addi %3, %c7_i32 : i32
    %705 = arith.index_cast %704 : i32 to index
    %706 = memref.load %arg2[%705] : memref<8xi32, #tpu.memory_space<smem>>
    %c7_i32_351 = arith.constant 7 : i32
    %707 = arith.addi %3, %c7_i32_351 : i32
    %708 = arith.index_cast %707 : i32 to index
    %709 = memref.load %arg3[%708] : memref<8xi32, #tpu.memory_space<smem>>
    %c7_i32_352 = arith.constant 7 : i32
    %710 = arith.addi %3, %c7_i32_352 : i32
    %711 = arith.index_cast %710 : i32 to index
    %712 = memref.load %arg4[%711] : memref<8xi32, #tpu.memory_space<smem>>
    %713 = arith.index_cast %706 : i32 to index
    %714 = arith.index_cast %709 : i32 to index
    %c0_353 = arith.constant 0 : index
    %715 = vector.load %arg7[%713, %714, %c0_353] : memref<4x18x18xf32, #tpu.memory_space<vmem>>, vector<1x16x18xf32>
    %716 = vector.shape_cast %715 : vector<1x16x18xf32> to vector<16x18xf32>
    %717 = vector.extract_strided_slice %716 {offsets = [0, 0], sizes = [16, 16], strides = [1, 1]} : vector<16x18xf32> to vector<16x16xf32>
    %c1_i32_354 = arith.constant 1 : i32
    %718 = arith.cmpi eq, %712, %c1_i32_354 : i32
    %719 = vector.extract_strided_slice %716 {offsets = [0, 1], sizes = [16, 16], strides = [1, 1]} : vector<16x18xf32> to vector<16x16xf32>
    %720 = arith.select %718, %719, %717 : vector<16x16xf32>
    %c2_i32_355 = arith.constant 2 : i32
    %721 = arith.cmpi eq, %712, %c2_i32_355 : i32
    %722 = vector.extract_strided_slice %716 {offsets = [0, 2], sizes = [16, 16], strides = [1, 1]} : vector<16x18xf32> to vector<16x16xf32>
    %723 = arith.select %721, %722, %720 : vector<16x16xf32>
    %724 = vector.extract_strided_slice %723 {offsets = [0, 0], sizes = [1, 16], strides = [1, 1]} : vector<16x16xf32> to vector<1x16xf32>
    %725 = vector.shape_cast %724 : vector<1x16xf32> to vector<16xf32>
    %c0_356 = arith.constant 0 : index
    %c7 = arith.constant 7 : index
    %c0_357 = arith.constant 0 : index
    %726 = vector.load %arg6[%c0_356, %c7, %c0_357] : memref<1x8x256xf32, #tpu.memory_space<vmem>>, vector<1x1x16xf32>
    %727 = vector.shape_cast %726 : vector<1x1x16xf32> to vector<16xf32>
    %728 = vector.shape_cast %725 : vector<16xf32> to vector<1x1x16xf32>
    tpu.vector_store %arg6[%c0_356, %c7, %c0_357], %728 {strides = array<i32>} : memref<1x8x256xf32, #tpu.memory_space<vmem>>, vector<1x1x16xf32>,
    %729 = vector.extract_strided_slice %723 {offsets = [1, 0], sizes = [1, 16], strides = [1, 1]} : vector<16x16xf32> to vector<1x16xf32>
    %730 = vector.shape_cast %729 : vector<1x16xf32> to vector<16xf32>
    %c0_358 = arith.constant 0 : index
    %c7_359 = arith.constant 7 : index
    %c16_360 = arith.constant 16 : index
    %731 = vector.load %arg6[%c0_358, %c7_359, %c16_360] : memref<1x8x256xf32, #tpu.memory_space<vmem>>, vector<1x1x16xf32>
    %732 = vector.shape_cast %731 : vector<1x1x16xf32> to vector<16xf32>
    %733 = vector.shape_cast %730 : vector<16xf32> to vector<1x1x16xf32>
    tpu.vector_store %arg6[%c0_358, %c7_359, %c16_360], %733 {strides = array<i32>} : memref<1x8x256xf32, #tpu.memory_space<vmem>>, vector<1x1x16xf32>,
    %734 = vector.extract_strided_slice %723 {offsets = [2, 0], sizes = [1, 16], strides = [1, 1]} : vector<16x16xf32> to vector<1x16xf32>
    %735 = vector.shape_cast %734 : vector<1x16xf32> to vector<16xf32>
    %c0_361 = arith.constant 0 : index
    %c7_362 = arith.constant 7 : index
    %c32_363 = arith.constant 32 : index
    %736 = vector.load %arg6[%c0_361, %c7_362, %c32_363] : memref<1x8x256xf32, #tpu.memory_space<vmem>>, vector<1x1x16xf32>
    %737 = vector.shape_cast %736 : vector<1x1x16xf32> to vector<16xf32>
    %738 = vector.shape_cast %735 : vector<16xf32> to vector<1x1x16xf32>
    tpu.vector_store %arg6[%c0_361, %c7_362, %c32_363], %738 {strides = array<i32>} : memref<1x8x256xf32, #tpu.memory_space<vmem>>, vector<1x1x16xf32>,
    %739 = vector.extract_strided_slice %723 {offsets = [3, 0], sizes = [1, 16], strides = [1, 1]} : vector<16x16xf32> to vector<1x16xf32>
    %740 = vector.shape_cast %739 : vector<1x16xf32> to vector<16xf32>
    %c0_364 = arith.constant 0 : index
    %c7_365 = arith.constant 7 : index
    %c48_366 = arith.constant 48 : index
    %741 = vector.load %arg6[%c0_364, %c7_365, %c48_366] : memref<1x8x256xf32, #tpu.memory_space<vmem>>, vector<1x1x16xf32>
    %742 = vector.shape_cast %741 : vector<1x1x16xf32> to vector<16xf32>
    %743 = vector.shape_cast %740 : vector<16xf32> to vector<1x1x16xf32>
    tpu.vector_store %arg6[%c0_364, %c7_365, %c48_366], %743 {strides = array<i32>} : memref<1x8x256xf32, #tpu.memory_space<vmem>>, vector<1x1x16xf32>,
    %744 = vector.extract_strided_slice %723 {offsets = [4, 0], sizes = [1, 16], strides = [1, 1]} : vector<16x16xf32> to vector<1x16xf32>
    %745 = vector.shape_cast %744 : vector<1x16xf32> to vector<16xf32>
    %c0_367 = arith.constant 0 : index
    %c7_368 = arith.constant 7 : index
    %c64_369 = arith.constant 64 : index
    %746 = vector.load %arg6[%c0_367, %c7_368, %c64_369] : memref<1x8x256xf32, #tpu.memory_space<vmem>>, vector<1x1x16xf32>
    %747 = vector.shape_cast %746 : vector<1x1x16xf32> to vector<16xf32>
    %748 = vector.shape_cast %745 : vector<16xf32> to vector<1x1x16xf32>
    tpu.vector_store %arg6[%c0_367, %c7_368, %c64_369], %748 {strides = array<i32>} : memref<1x8x256xf32, #tpu.memory_space<vmem>>, vector<1x1x16xf32>,
    %749 = vector.extract_strided_slice %723 {offsets = [5, 0], sizes = [1, 16], strides = [1, 1]} : vector<16x16xf32> to vector<1x16xf32>
    %750 = vector.shape_cast %749 : vector<1x16xf32> to vector<16xf32>
    %c0_370 = arith.constant 0 : index
    %c7_371 = arith.constant 7 : index
    %c80_372 = arith.constant 80 : index
    %751 = vector.load %arg6[%c0_370, %c7_371, %c80_372] : memref<1x8x256xf32, #tpu.memory_space<vmem>>, vector<1x1x16xf32>
    %752 = vector.shape_cast %751 : vector<1x1x16xf32> to vector<16xf32>
    %753 = vector.shape_cast %750 : vector<16xf32> to vector<1x1x16xf32>
    tpu.vector_store %arg6[%c0_370, %c7_371, %c80_372], %753 {strides = array<i32>} : memref<1x8x256xf32, #tpu.memory_space<vmem>>, vector<1x1x16xf32>,
    %754 = vector.extract_strided_slice %723 {offsets = [6, 0], sizes = [1, 16], strides = [1, 1]} : vector<16x16xf32> to vector<1x16xf32>
    %755 = vector.shape_cast %754 : vector<1x16xf32> to vector<16xf32>
    %c0_373 = arith.constant 0 : index
    %c7_374 = arith.constant 7 : index
    %c96_375 = arith.constant 96 : index
    %756 = vector.load %arg6[%c0_373, %c7_374, %c96_375] : memref<1x8x256xf32, #tpu.memory_space<vmem>>, vector<1x1x16xf32>
    %757 = vector.shape_cast %756 : vector<1x1x16xf32> to vector<16xf32>
    %758 = vector.shape_cast %755 : vector<16xf32> to vector<1x1x16xf32>
    tpu.vector_store %arg6[%c0_373, %c7_374, %c96_375], %758 {strides = array<i32>} : memref<1x8x256xf32, #tpu.memory_space<vmem>>, vector<1x1x16xf32>,
    %759 = vector.extract_strided_slice %723 {offsets = [7, 0], sizes = [1, 16], strides = [1, 1]} : vector<16x16xf32> to vector<1x16xf32>
    %760 = vector.shape_cast %759 : vector<1x16xf32> to vector<16xf32>
    %c0_376 = arith.constant 0 : index
    %c7_377 = arith.constant 7 : index
    %c112_378 = arith.constant 112 : index
    %761 = vector.load %arg6[%c0_376, %c7_377, %c112_378] : memref<1x8x256xf32, #tpu.memory_space<vmem>>, vector<1x1x16xf32>
    %762 = vector.shape_cast %761 : vector<1x1x16xf32> to vector<16xf32>
    %763 = vector.shape_cast %760 : vector<16xf32> to vector<1x1x16xf32>
    tpu.vector_store %arg6[%c0_376, %c7_377, %c112_378], %763 {strides = array<i32>} : memref<1x8x256xf32, #tpu.memory_space<vmem>>, vector<1x1x16xf32>,
    %764 = vector.extract_strided_slice %723 {offsets = [8, 0], sizes = [1, 16], strides = [1, 1]} : vector<16x16xf32> to vector<1x16xf32>
    %765 = vector.shape_cast %764 : vector<1x16xf32> to vector<16xf32>
    %c0_379 = arith.constant 0 : index
    %c7_380 = arith.constant 7 : index
    %c128_381 = arith.constant 128 : index
    %766 = vector.load %arg6[%c0_379, %c7_380, %c128_381] : memref<1x8x256xf32, #tpu.memory_space<vmem>>, vector<1x1x16xf32>
    %767 = vector.shape_cast %766 : vector<1x1x16xf32> to vector<16xf32>
    %768 = vector.shape_cast %765 : vector<16xf32> to vector<1x1x16xf32>
    tpu.vector_store %arg6[%c0_379, %c7_380, %c128_381], %768 {strides = array<i32>} : memref<1x8x256xf32, #tpu.memory_space<vmem>>, vector<1x1x16xf32>,
    %769 = vector.extract_strided_slice %723 {offsets = [9, 0], sizes = [1, 16], strides = [1, 1]} : vector<16x16xf32> to vector<1x16xf32>
    %770 = vector.shape_cast %769 : vector<1x16xf32> to vector<16xf32>
    %c0_382 = arith.constant 0 : index
    %c7_383 = arith.constant 7 : index
    %c144_384 = arith.constant 144 : index
    %771 = vector.load %arg6[%c0_382, %c7_383, %c144_384] : memref<1x8x256xf32, #tpu.memory_space<vmem>>, vector<1x1x16xf32>
    %772 = vector.shape_cast %771 : vector<1x1x16xf32> to vector<16xf32>
    %773 = vector.shape_cast %770 : vector<16xf32> to vector<1x1x16xf32>
    tpu.vector_store %arg6[%c0_382, %c7_383, %c144_384], %773 {strides = array<i32>} : memref<1x8x256xf32, #tpu.memory_space<vmem>>, vector<1x1x16xf32>,
    %774 = vector.extract_strided_slice %723 {offsets = [10, 0], sizes = [1, 16], strides = [1, 1]} : vector<16x16xf32> to vector<1x16xf32>
    %775 = vector.shape_cast %774 : vector<1x16xf32> to vector<16xf32>
    %c0_385 = arith.constant 0 : index
    %c7_386 = arith.constant 7 : index
    %c160_387 = arith.constant 160 : index
    %776 = vector.load %arg6[%c0_385, %c7_386, %c160_387] : memref<1x8x256xf32, #tpu.memory_space<vmem>>, vector<1x1x16xf32>
    %777 = vector.shape_cast %776 : vector<1x1x16xf32> to vector<16xf32>
    %778 = vector.shape_cast %775 : vector<16xf32> to vector<1x1x16xf32>
    tpu.vector_store %arg6[%c0_385, %c7_386, %c160_387], %778 {strides = array<i32>} : memref<1x8x256xf32, #tpu.memory_space<vmem>>, vector<1x1x16xf32>,
    %779 = vector.extract_strided_slice %723 {offsets = [11, 0], sizes = [1, 16], strides = [1, 1]} : vector<16x16xf32> to vector<1x16xf32>
    %780 = vector.shape_cast %779 : vector<1x16xf32> to vector<16xf32>
    %c0_388 = arith.constant 0 : index
    %c7_389 = arith.constant 7 : index
    %c176_390 = arith.constant 176 : index
    %781 = vector.load %arg6[%c0_388, %c7_389, %c176_390] : memref<1x8x256xf32, #tpu.memory_space<vmem>>, vector<1x1x16xf32>
    %782 = vector.shape_cast %781 : vector<1x1x16xf32> to vector<16xf32>
    %783 = vector.shape_cast %780 : vector<16xf32> to vector<1x1x16xf32>
    tpu.vector_store %arg6[%c0_388, %c7_389, %c176_390], %783 {strides = array<i32>} : memref<1x8x256xf32, #tpu.memory_space<vmem>>, vector<1x1x16xf32>,
    %784 = vector.extract_strided_slice %723 {offsets = [12, 0], sizes = [1, 16], strides = [1, 1]} : vector<16x16xf32> to vector<1x16xf32>
    %785 = vector.shape_cast %784 : vector<1x16xf32> to vector<16xf32>
    %c0_391 = arith.constant 0 : index
    %c7_392 = arith.constant 7 : index
    %c192_393 = arith.constant 192 : index
    %786 = vector.load %arg6[%c0_391, %c7_392, %c192_393] : memref<1x8x256xf32, #tpu.memory_space<vmem>>, vector<1x1x16xf32>
    %787 = vector.shape_cast %786 : vector<1x1x16xf32> to vector<16xf32>
    %788 = vector.shape_cast %785 : vector<16xf32> to vector<1x1x16xf32>
    tpu.vector_store %arg6[%c0_391, %c7_392, %c192_393], %788 {strides = array<i32>} : memref<1x8x256xf32, #tpu.memory_space<vmem>>, vector<1x1x16xf32>,
    %789 = vector.extract_strided_slice %723 {offsets = [13, 0], sizes = [1, 16], strides = [1, 1]} : vector<16x16xf32> to vector<1x16xf32>
    %790 = vector.shape_cast %789 : vector<1x16xf32> to vector<16xf32>
    %c0_394 = arith.constant 0 : index
    %c7_395 = arith.constant 7 : index
    %c208_396 = arith.constant 208 : index
    %791 = vector.load %arg6[%c0_394, %c7_395, %c208_396] : memref<1x8x256xf32, #tpu.memory_space<vmem>>, vector<1x1x16xf32>
    %792 = vector.shape_cast %791 : vector<1x1x16xf32> to vector<16xf32>
    %793 = vector.shape_cast %790 : vector<16xf32> to vector<1x1x16xf32>
    tpu.vector_store %arg6[%c0_394, %c7_395, %c208_396], %793 {strides = array<i32>} : memref<1x8x256xf32, #tpu.memory_space<vmem>>, vector<1x1x16xf32>,
    %794 = vector.extract_strided_slice %723 {offsets = [14, 0], sizes = [1, 16], strides = [1, 1]} : vector<16x16xf32> to vector<1x16xf32>
    %795 = vector.shape_cast %794 : vector<1x16xf32> to vector<16xf32>
    %c0_397 = arith.constant 0 : index
    %c7_398 = arith.constant 7 : index
    %c224_399 = arith.constant 224 : index
    %796 = vector.load %arg6[%c0_397, %c7_398, %c224_399] : memref<1x8x256xf32, #tpu.memory_space<vmem>>, vector<1x1x16xf32>
    %797 = vector.shape_cast %796 : vector<1x1x16xf32> to vector<16xf32>
    %798 = vector.shape_cast %795 : vector<16xf32> to vector<1x1x16xf32>
    tpu.vector_store %arg6[%c0_397, %c7_398, %c224_399], %798 {strides = array<i32>} : memref<1x8x256xf32, #tpu.memory_space<vmem>>, vector<1x1x16xf32>,
    %799 = vector.extract_strided_slice %723 {offsets = [15, 0], sizes = [1, 16], strides = [1, 1]} : vector<16x16xf32> to vector<1x16xf32>
    %800 = vector.shape_cast %799 : vector<1x16xf32> to vector<16xf32>
    %c0_400 = arith.constant 0 : index
    %c7_401 = arith.constant 7 : index
    %c240_402 = arith.constant 240 : index
    %801 = vector.load %arg6[%c0_400, %c7_401, %c240_402] : memref<1x8x256xf32, #tpu.memory_space<vmem>>, vector<1x1x16xf32>
    %802 = vector.shape_cast %801 : vector<1x1x16xf32> to vector<16xf32>
    %803 = vector.shape_cast %800 : vector<16xf32> to vector<1x1x16xf32>
    tpu.vector_store %arg6[%c0_400, %c7_401, %c240_402], %803 {strides = array<i32>} : memref<1x8x256xf32, #tpu.memory_space<vmem>>, vector<1x1x16xf32>,
    return
  }
  func.func @transform_0(%arg0: i32, %arg1: i32, %arg2: memref<8xi32, #tpu.memory_space<smem>>, %arg3: memref<8xi32, #tpu.memory_space<smem>>, %arg4: memref<8xi32, #tpu.memory_space<smem>>) -> (i32, i32, i32, i32) {
    %c0_i32 = arith.constant 0 : i32
    %c0_i32_0 = arith.constant 0 : i32
    %c0_i32_1 = arith.constant 0 : i32
    %c0_i32_2 = arith.constant 0 : i32
    return %arg0, %c0_i32, %c0_i32_0, %c0_i32_1 : i32, i32, i32, i32
  }
  func.func @transform_1(%arg0: i32, %arg1: i32, %arg2: memref<8xi32, #tpu.memory_space<smem>>, %arg3: memref<8xi32, #tpu.memory_space<smem>>, %arg4: memref<8xi32, #tpu.memory_space<smem>>) -> (i32, i32, i32) {
    %c0_i32 = arith.constant 0 : i32
    %c0_i32_0 = arith.constant 0 : i32
    return %arg0, %arg1, %c0_i32 : i32, i32, i32
  }
}

</mosaic_0001>

<bundles_post_ra>
// kernel: tpu_custom_call.1
= control target key start
LH: loop header
LB: loop body
LE: loop exit
PB: predicated region body
PF: predicated region fallthrough
CT: control target
= control target key end

     0   :  { %s2535_s0 = inlined_call_operand.hbm [shape: s32[8], index: 0, kind: input, shape index: {}]   ;;  %s2536_s3 = inlined_call_operand.hbm [shape: f32[2,4,16,16], index: 3, kind: input, shape index: {}]   ;;  %s2537_s4 = inlined_call_operand.hbm [shape: f32[2,8,256], index: 4, kind: output, shape index: {}]   ;;  %s2538_s1 = inlined_call_operand.vmem [shape: s32[8], index: 1, kind: input, shape index: {}]   ;;  %s2539_s2 = inlined_call_operand.vmem [shape: s32[8], index: 2, kind: input, shape index: {}]  }
   0x1   :  { %s1412_s17 = scalar_lea.hbm %s2535_s0, 16 }
   0x2   :  { %p1413_p0 = scmp.ne.s32.totalorder %s2535_s0, %s1412_s17  ;;  %p1416_p1 = scmp.lt.u32.totalorder %s1412_s17, %s2535_s0 }
   0x4   :  { %p1418_p2 = pnand %p1416_p1, %p1413_p0 }
   0x6   :  { %1421 = shalt.err (!%p1418_p2)  }
   0x7   :  { %s1562_s22 = smov [#allocation4]   ;;  %s11_s27 = sshll.u32 %s2538_s1, 4  ;;  %s12_s27 = int_to_ptr.vmem [resolvable:$true] %s11_s27 }
   0x8   :  { %10 = dma.hbm_to_smem %s2535_s0, 16, %s1562_s22, [#allocation3] }
   0x9   :  { %s15_s30 = sshll.u32 %s2539_s2, 4  ;;  %s1422_s5 = scalar_lea.vmem %s12_s27, 16  ;;  %s16_s30 = int_to_ptr.vmem [resolvable:$true] %s15_s30 }
   0xa   :  { %p1423_p3 = scmp.ne.s32.totalorder %s12_s27, %s1422_s5  ;;  %p1427_p4 = scmp.lt.s32.totalorder %s12_s27, %s12_s27 }
   0xb   :  { %p1428_p5 = scmp.lt.s32.totalorder %s1422_s5, %s1422_s5 }
   0xd   :  { %p1429_p6 = por %p1428_p5, %p1427_p4 }
   0xf   :  { %p1430_p7 = pnand %p1429_p6, %p1423_p3 }
  0x11   :  { %1433 = shalt.err (!%p1430_p7)  }
  0x12   :  { %s1563_s6 = smov [#allocation5]   ;;  %s1434_s0 = scalar_lea.vmem %s16_s30, 16 }
  0x13   :  { %14 = dma.vmem_to_smem %s12_s27, 16, %s1563_s6, [#allocation3] }
  0x14   :  { %p1435_p8 = scmp.ne.s32.totalorder %s16_s30, %s1434_s0  ;;  %p1439_p9 = scmp.lt.s32.totalorder %s16_s30, %s16_s30 }
  0x15   :  { %p1440_p10 = scmp.lt.s32.totalorder %s1434_s0, %s1434_s0 }
  0x17   :  { %p1441_p11 = por %p1440_p10, %p1439_p9 }
  0x19   :  { %p1442_p12 = pnand %p1441_p11, %p1435_p8 }
  0x1b   :  { %1445 = shalt.err (!%p1442_p12)  }
  0x1c   :  { %s1564_s1 = smov [#allocation6]  }
  0x1d   :  { %18 = dma.vmem_to_smem %s16_s30, 16, %s1564_s1, [#allocation3] }
  0x1e   :  { %1528 = dma.done.wait [#allocation3], 48 }
  0x1f   :  { %1529 = vsyncadd [#allocation3], 4294967248 }
  0x20   :  { %20 = sfence }
  0x21   :  { %21 = vsyncpa [#allocation8], 0 }
  0x22   :  { %23 = vsyncpa [#allocation8 + $0x1], 0 }
  0x23   :  { %24 = vsyncpa [#allocation9], 0 }
  0x24   :  { %26 = vsyncpa [#allocation9 + $0x1], 0  ;;  %s1622_s2 = smov 0   ;;  %s1624_s7 = smov 0  }
  0x25   :  { %s1626_s8 = smov 0   ;;  %s1628_s9 = smov 0  }
  0x26   :  { %s1630_s10 = smov 0   ;;  %s1632_s11 = smov 0  }
  0x27 LB: > { %s1297_s12 = sadd.s32 4294967295, %s1560_s11   ;;  %s1298_s13 = sadd.s32 4294967294, %s1560_s11   ;;  %s1560_s11 = sphi %s1632_s11, %s32_s11   ;;  %s1556_s10 = sphi %s1630_s10, %s2558_s10   ;;  %s1552_s9 = sphi %s1628_s9, %s2557_s9   ;;  %s1548_s8 = sphi %s1626_s8, %s2556_s8   ;;  %s1544_s7 = sphi %s1624_s7, %s2555_s7   ;;  %s1540_s2 = sphi %s1622_s2, %s2554_s2  }
  0x28   : > { %s44_s14 = sadd.s32 1, %s1556_s10  ;;  %s51_s15 = sadd.s32 1, %s1548_s8 }
  0x29   : > { %p46_p13 = scmp.ge.s32.totalorder %s44_s14, 2  ;;  %p58_p0 = scmp.ne.s32.totalorder %s1548_s8, %s1544_s7 }
  0x2a   : > { %p59_p1 = scmp.eq.s32.totalorder %s1560_s11, 0  ;;  %p64_p2 = scmp.ne.s32.totalorder %s1544_s7, %s1540_s2 }
  0x2b   : > { %s2560_s14 = smov (%p46_p13, %s44_s14), 0  ;;  %p65_p4 = scmp.eq.s32.totalorder %s1297_s12, 0 }
  0x2c   : > { %p1663_p3 = por %p59_p1, %p58_p0  ;;  %s48_s17 = ssub.s32 %s1556_s10, %s2560_s14 }
  0x2d   : > { %p90_p5 = scmp.eq.s32.totalorder %s1297_s12, 1  ;;  %p49_p6 = scmp.eq.s32.totalorder %s48_s17, 0 }
  0x2e   : > { %p1669_p7 = por %p65_p4, %p64_p2  ;;  %p96_p9 = scmp.eq.s32.totalorder %s1298_s13, 1 }
  0x2f   : > { %p1673_p8 = por %p90_p5, %p58_p0  ;;  %p1347_p12 = scmp.lt.s32.totalorder %s1560_s11, 2 }
  0x30   : > { %s1678_s20 = scalar_select %p49_p6, %s1548_s8, %s51_s15  }
  0x31   : > { %s2543_s19 = scalar_select %p1673_p8, 1, 0 }
  0x32   : > { %p1680_p10 = por %p96_p9, %p64_p2  ;;  %s116_s22 = sand.u32 1, %s1548_s8  }
  0x33   : > { %s1301_s23 = sshll.u32 %s116_s22, 6  ;;  %s1333_s24 = sshll.u32 %s1556_s10, 10 }
  0x34   : > { %s2544_s21 = scalar_select %p1680_p10, 1, 0 }
  0x35   : > { %s1691_s27 = scalar_lea.hbm %s2536_s3, %s1333_s24  ;;  %s120_s28 = scalar_lea.vmem [#allocation7], %s1301_s23 }
  0x36   : > { %s127_s29 = sshll.u32 %s120_s28, 4  ;;  %p1697_p13 = pnand %p1347_p12, %p1663_p3  ;;  %s1693_s29 = int_to_ptr.vmem [resolvable:$true] %s127_s29 }
  0x37   : > { %s1702_s5 = scalar_lea.sflag [#allocation8], %s116_s22  ;;  %s1446_s6 = scalar_lea.hbm %s1691_s27, 1024 }
  0x38   : > { %p1447_p1 = scmp.ne.s32.totalorder %s1691_s27, %s1446_s6  ;;  %p1448_p2 = pneg %p1697_p13 }
  0x39   : > { %s1451_s12 = scalar_lea.hbm %s2536_s3, 2048  ;;  %p1452_p3 = scmp.lt.u32.totalorder %s1691_s27, %s2536_s3 }
  0x3a   : > { %p1449_p4 = pnand %p1448_p2, %p1447_p1  ;;  %p1453_p6 = scmp.lt.u32.totalorder %s1451_s12, %s1446_s6 }
  0x3b   : > { %p1455_p12 = scmp.lt.u32.totalorder %s1446_s6, %s1691_s27 }
  0x3c   : > { %p1450_p5 = pneg %p1449_p4  ;;  %p1454_p9 = por %p1453_p6, %p1452_p3 }
  0x3e   : > { %p1456_p11 = por %p1455_p12, %p1454_p9 }
  0x40   : > { %p1457_p0 = pnand %p1456_p11, %p1450_p5 }
  0x42   : > { %1460 = shalt.err (!%p1457_p0)
}
  0x43   : > { %s1461_s16 = scalar_lea.vmem %s1693_s29, 1024  ;;  %s1565_s17 = smov [#allocation7]  }
  0x44   : > { %p1462_p1 = scmp.ne.s32.totalorder %s1693_s29, %s1461_s16  ;;  %s1466_s22 = sshll.u32 %s1565_s17, 4  ;;  %s1467_s22 = int_to_ptr.vmem [resolvable:$false] %s1466_s22 }
  0x45   : > { %s1468_s23 = scalar_lea.vmem %s1467_s22, 2048  ;;  %p1469_p8 = scmp.lt.s32.totalorder %s1693_s29, %s1467_s22 }
  0x46   : > { %p1464_p4 = pnand %p1462_p1, %p1448_p2  ;;  %p1470_p3 = scmp.lt.s32.totalorder %s1468_s23, %s1461_s16 }
  0x48   : > { %p1465_p10 = pneg %p1464_p4  ;;  %p1471_p6 = por %p1470_p3, %p1469_p8 }
  0x4a   : > { %p1472_p9 = pnand %p1471_p6, %p1465_p10 }
  0x4c   : > { %1475 = shalt.err (!%p1472_p9)
}
  0x4d   : > { %s1566_s24 = smov 128   ;;  %s1567_s25 = smov 8  }
  0x4e   : > { %1342 = dma.hbm_to_vmem [thread:$0]  (!%p1697_p13), %s1691_s27, 1024, %s1693_s29, %s1702_s5, %s1566_s24, %s1566_s24, %s1567_s25  }
  0x4f   : > { %p135_p11 = scmp.lt.s32.totalorder %s1560_s11, 3  ;;  %p2546_p0 = scmp.ge.s32.totalorder %s1560_s11, 1 }
  0x51   : > { %p136_p2 = pnand %p2546_p0, %p135_p11 }
  0x52   : > { %s1734_s26 = sand.u32 (!%p136_p2), 1, %s1544_s7  }
  0x53   : > { %139 = sbr.rel (%p136_p2) target bundleno = 865 (0x361), region = 24  ;;  %s1305_s28 = sshll.u32 (!%p136_p2), %s1734_s26, 6 }
  0x54   : > { %s142_s6 = scalar_lea.sflag (!%p136_p2), [#allocation8], %s1734_s26  ;;  %s1738_s0 = scalar_lea.vmem (!%p136_p2), [#allocation7], %s1305_s28 }
  0x5a   : > { %1531 = dma.done.wait (%p1669_p7), %s142_s6, 1024  }
  0x5b   : > { %1533 = vsyncadd (%p1669_p7), %s142_s6, 4294966272  ;;  %vm168_vm0 = vcmask 146432   ;;  %vm171_vm1 = vcmask 140288   ;;  %v1568_v0 = vmov -1.0   ;;  %v184_v1 = vld [vmem:[%s1738_s0 + $0x10] sm:$0xff]  ;;  %v182_v2 = vld [vmem:[%s1738_s0] sm:$0xff] }
  0x5c   : > { %169 = vst.msk [vmem:[#allocation2] sm:$0xff] %vm168_vm0, %v1568_v0  ;;  %173 = vst.msk [vmem:[#allocation2 + $0x18] sm:$0xff] %vm168_vm0, %v1568_v0  ;;  %s1569_s18 = smov 1   ;;  %v185_v3 = vld [vmem:[%s1738_s0 + $0x18] sm:$0xff]  ;;  %v183_v4 = vld [vmem:[%s1738_s0 + $0x8] sm:$0xff]  ;;  %vm222_vm2 = vcmask 138248  }
  0x5d   : > { %174 = vst.msk [vmem:[#allocation2 + $0x20] sm:$0xff] %vm168_vm0, %v1568_v0  ;;  %176 = vst.msk [vmem:[#allocation2 + $0x30] sm:$0xff] %vm168_vm0, %v1568_v0  ;;  %202 = vrot.lane.b32.xlu1 %v184_v1, %s1569_s18  ;;  %198 = vrot.lane.b32.xlu0 %v182_v2, %s1569_s18  ;;  %v187_v5 = vld [vmem:[%s1738_s0 + $0x28] sm:$0xff]  ;;  %v186_v6 = vld [vmem:[%s1738_s0 + $0x20] sm:$0xff]  ;;  %s232_s27 = sld [smem:[#allocation4]]  ;;  %s1307_s30 = sld [smem:[#allocation4 + $0x1]] }
  0x5e   : > { %179 = vst.msk [vmem:[#allocation2 + $0x48] sm:$0xff] %vm168_vm0, %v1568_v0  ;;  %170 = vst.msk [vmem:[#allocation2 + $0x8] sm:$0xff] %vm168_vm0, %v1568_v0  ;;  %v189_v7 = vld [vmem:[%s1738_s0 + $0x38] sm:$0xff]  ;;  %v188_v8 = vld [vmem:[%s1738_s0 + $0x30] sm:$0xff]  ;;  %s233_s29 = sld [smem:[#allocation5]]  ;;  %s1310_s5 = sld [smem:[#allocation4 + $0x2]] }
  0x5f   : > { %177 = vst.msk [vmem:[#allocation2 + $0x38] sm:$0xff] %vm168_vm0, %v1568_v0  ;;  %180 = vst.msk [vmem:[#allocation2 + $0x50] sm:$0xff] %vm168_vm0, %v1568_v0  ;;  %s1308_s12 = sld [smem:[#allocation5 + $0x1]]  ;;  %s1311_s13 = sld [smem:[#allocation5 + $0x2]] }
  0x60   : > { %175 = vst.msk [vmem:[#allocation2 + $0x28] sm:$0x3] %vm171_vm1, %v1568_v0  ;;  %172 = vst.msk [vmem:[#allocation2 + $0x10] sm:$0x3] %vm171_vm1, %v1568_v0  ;;  %s1313_s15 = sld [smem:[#allocation4 + $0x3]]  ;;  %s1768_s22 = sld [smem:[#allocation4 + $0x4]] }
  0x61   : > { %178 = vst.msk [vmem:[#allocation2 + $0x40] sm:$0x3] %vm171_vm1, %v1568_v0  ;;  %181 = vst.msk [vmem:[#allocation2 + $0x58] sm:$0x3] %vm171_vm1, %v1568_v0  ;;  %204 = vrot.lane.b32.xlu1 %v185_v3, %s1569_s18  ;;  %200 = vrot.lane.b32.xlu0 %v183_v4, %s1569_s18  ;;  %s1314_s25 = sld [smem:[#allocation5 + $0x3]]  ;;  %s1317_s6 = sld [smem:[#allocation5 + $0x4]] }
  0x62   : > { %s1774_s0 = sld [smem:[#allocation4 + $0x5]] }
  0x63   : > { %s235_s1 = smul.u32 24, %s232_s27 }
  0x64   : > { %s360_s17 = smul.u32 24, %s1307_s30 }
  0x65   : > { %208 = vrot.lane.b32.xlu1 %v187_v5, %s1569_s18  ;;  %206 = vrot.lane.b32.xlu0 %v186_v6, %s1569_s18  ;;  %s236_s16 = sadd.s32 %s235_s1, %s233_s29  ;;  %s477_s23 = smul.u32 24, %s1310_s5 }
  0x66   : > { %s361_s24 = sadd.s32 %s1308_s12, %s360_s17  ;;  %s237_s28 = scalar_lea.vmem [#allocation2], %s236_s16 }
  0x67   : > { %s478_s27 = sadd.s32 %s1311_s13, %s477_s23  ;;  %s594_s29 = smul.u32 24, %s1313_s15 }
  0x68   : > { %s362_s30 = scalar_lea.vmem [#allocation2], %s361_s24  ;;  %s711_s5 = smul.u32 24, %s1768_s22 }
  0x69   : > { %212 = vrot.lane.b32.xlu1 %v189_v7, %s1569_s18  ;;  %210 = vrot.lane.b32.xlu0 %v188_v8, %s1569_s18  ;;  %s1320_s1 = sld [smem:[#allocation5 + $0x5]]  ;;  %s595_s12 = sadd.s32 %s1314_s25, %s594_s29 }
  0x6a   : > { %s1322_s16 = sld [smem:[#allocation4 + $0x6]]  ;;  %s479_s17 = scalar_lea.vmem [#allocation2], %s478_s27 }
  0x6b   : > { %s828_s13 = smul.u32 24, %s1774_s0  ;;  %s712_s15 = sadd.s32 %s1317_s6, %s711_s5 }
  0x6c   : > { %s1323_s23 = sld [smem:[#allocation5 + $0x6]]  ;;  %s1325_s24 = sld [smem:[#allocation4 + $0x7]] }
  0x6d   : > { %s1326_s22 = sld [smem:[#allocation5 + $0x7]]  ;;  %s713_s27 = scalar_lea.vmem [#allocation2], %s712_s15 }
  0x6f   : > { %s829_s25 = sadd.s32 %s1320_s1, %s828_s13  ;;  %s1843_s13 = sld [smem:[#allocation6 + $0x2]] }
  0x70   : > { %s945_s0 = smul.u32 24, %s1322_s16  ;;  %s1838_s16 = sld [smem:[#allocation6]] }
  0x72   : > { %s946_s6 = sadd.s32 %s1323_s23, %s945_s0  ;;  %s1062_s29 = smul.u32 24, %s1325_s24 }
  0x73   : > { %s947_s1 = scalar_lea.vmem [#allocation2], %s946_s6  ;;  %s1846_s23 = sld [smem:[#allocation6 + $0x3]] }
  0x74   : > { %s1063_s5 = sadd.s32 %s1326_s22, %s1062_s29  ;;  %s1849_s24 = sld [smem:[#allocation6 + $0x4]] }
  0x75   : > { %p482_p10 = scmp.eq.s32.totalorder %s1843_s13, 1  ;;  %s1859_s0 = sld [smem:[#allocation6 + $0x6]] }
  0x76   : > { %p240_p7 = scmp.eq.s32.totalorder %s1838_s16, 1  ;;  %s1866_s29 = sld [smem:[#allocation6 + $0x7]] }
  0x77   : > { %s483_s22 = scalar_select %p482_p10, 1, 0 }
  0x78   : > { %s241_s15 = scalar_select %p240_p7, 1, 0 }
  0x79   : > { %p599_p13 = scmp.eq.s32.totalorder %s1846_s23, 1  ;;  %v484_v39 = vstv %s483_s22  ;;  %p254_p3 = scmp.eq.s32.totalorder %s1838_s16, 2 }
  0x7a   : > { %v242_v33 = vstv %s241_s15  ;;  %p716_p5 = scmp.eq.s32.totalorder %s1849_s24, 1  ;;  %vm485_vm5 = vcmp.eq.s32.totalorder %v484_v39, 1  ;;  %p496_p9 = scmp.eq.s32.totalorder %s1843_s13, 2 }
  0x7b   : > { %vm243_vm3 = vcmp.eq.s32.totalorder %v242_v33, 1  ;;  %p950_p1 = scmp.eq.s32.totalorder %s1859_s0, 1  ;;  %p613_p11 = scmp.eq.s32.totalorder %s1846_s23, 2 }
  0x7c   : > { %s717_s6 = scalar_select %p716_p5, 1, 0 }
  0x7d   : > { %p1067_p4 = scmp.eq.s32.totalorder %s1866_s29, 1  ;;  %p964_p0 = scmp.eq.s32.totalorder %s1859_s0, 2 }
  0x7e   : > { %v718_v49 = vstv %s717_s6  ;;  %s614_s16 = scalar_select %p613_p11, 1, 0 }
  0x7f   : > { %vm719_vm7 = vcmp.eq.s32.totalorder %v718_v49, 1  ;;  %p1081_p2 = scmp.eq.s32.totalorder %s1866_s29, 2  ;;  %p730_p7 = scmp.eq.s32.totalorder %s1849_s24, 2 }
  0x80   : > { %s1571_s22 = smov 14   ;;  %s1573_s0 = smov 78  }
  0x81   : > { %s1082_s13 = scalar_select %p1081_p2, 1, 0 }
  0x82   : > { %s731_s23 = scalar_select %p730_p7, 1, 0 }
  0x83   : > { %s1575_s6 = smov 30   ;;  %s1576_s29 = smov 62  }
  0xcf   : > { %v203_v9 = vpop.permute.xlu1 %202  ;;  %v199_v10 = vpop.permute.xlu0 %198 }
  0xd0   : > { %225 = vst.msk [vmem:[#allocation2 + $0x19] sm:$0xff] %vm222_vm2, %v203_v9  ;;  %223 = vst.msk [vmem:[#allocation2 + $0x1] sm:$0xff] %vm222_vm2, %v199_v10 }
  0xd3   : > { %v205_v11 = vpop.permute.xlu1 %204  ;;  %v201_v12 = vpop.permute.xlu0 %200 }
  0xd4   : > { %226 = vst.msk [vmem:[#allocation2 + $0x21] sm:$0xff] %vm222_vm2, %v205_v11  ;;  %224 = vst.msk [vmem:[#allocation2 + $0x9] sm:$0xff] %vm222_vm2, %v201_v12 }
  0xd7   : > { %v209_v13 = vpop.permute.xlu1 %208  ;;  %v207_v14 = vpop.permute.xlu0 %206 }
  0xd8   : > { %228 = vst.msk [vmem:[#allocation2 + $0x39] sm:$0xff] %vm222_vm2, %v209_v13  ;;  %227 = vst.msk [vmem:[#allocation2 + $0x31] sm:$0xff] %vm222_vm2, %v207_v14 }
  0xdb   : > { %v213_v15 = vpop.permute.xlu1 %212  ;;  %v211_v16 = vpop.permute.xlu0 %210 }
  0xdc   : > { %230 = vst.msk [vmem:[#allocation2 + $0x51] sm:$0xff] %vm222_vm2, %v213_v15  ;;  %229 = vst.msk [vmem:[#allocation2 + $0x49] sm:$0xff] %vm222_vm2, %v211_v16 }
  0xe3   : > { %v1770_v17 = vld [vmem:[%s237_s28 + $0x8] sm:$0xff]  ;;  %v1772_v18 = vld [vmem:[%s237_s28] sm:$0xff]  ;;  %s596_s28 = scalar_lea.vmem [#allocation2], %s595_s12  ;;  %s1064_s12 = scalar_lea.vmem [#allocation2], %s1063_s5 }
  0xe4   : > { %248 = vrot.lane.b32.xlu1 %v1770_v17, %s1569_s18  ;;  %246 = vrot.lane.b32.xlu0 %v1772_v18, %s1569_s18  ;;  %v1780_v19 = vld [vmem:[%s362_s30 + $0x8] sm:$0xff]  ;;  %v1782_v20 = vld [vmem:[%s362_s30] sm:$0xff]  ;;  %s830_s30 = scalar_lea.vmem [#allocation2], %s829_s25  ;;  %s1852_s25 = sld [smem:[#allocation6 + $0x5]] }
  0xe5   : > { %v1789_v21 = vld [vmem:[%s479_s17 + $0x8] sm:$0xff]  ;;  %v1791_v22 = vld [vmem:[%s479_s17] sm:$0xff]  ;;  %s1840_s17 = sld [smem:[#allocation6 + $0x1]] }
  0xe6   : > { %v1798_v23 = vld [vmem:[%s596_s28 + $0x8] sm:$0xff]  ;;  %v1800_v24 = vld [vmem:[%s596_s28] sm:$0xff]  ;;  %s951_s5 = scalar_select %p950_p1, 1, 0 }
  0xe7   : > { %v1806_v25 = vld [vmem:[%s713_s27 + $0x8] sm:$0xff]  ;;  %v1808_v26 = vld [vmem:[%s713_s27] sm:$0xff]  ;;  %s600_s27 = scalar_select %p599_p13, 1, 0 }
  0xe8   : > { %373 = vrot.lane.b32.xlu1 %v1780_v19, %s1569_s18  ;;  %371 = vrot.lane.b32.xlu0 %v1782_v20, %s1569_s18  ;;  %v1814_v27 = vld [vmem:[%s830_s30 + $0x8] sm:$0xff]  ;;  %v1816_v28 = vld [vmem:[%s830_s30] sm:$0xff]  ;;  %p2551_p13 = scmp.ne.s32.totalorder %s2543_s19, 0 }
  0xe9   : > { %v1822_v29 = vld [vmem:[%s947_s1 + $0x8] sm:$0xff]  ;;  %v1824_v30 = vld [vmem:[%s947_s1] sm:$0xff]  ;;  %v601_v44 = vstv %s600_s27  ;;  %v952_v59 = vstv %s951_s5  ;;  %s1068_s1 = scalar_select %p1067_p4, 1, 0 }
  0xea   : > { %v1830_v31 = vld [vmem:[%s1064_s12 + $0x8] sm:$0xff]  ;;  %v1832_v32 = vld [vmem:[%s1064_s12] sm:$0xff]  ;;  %p833_p12 = scmp.eq.s32.totalorder %s1852_s25, 1  ;;  %vm602_vm6 = vcmp.eq.s32.totalorder %v601_v44, 1  ;;  %vm953_vm9 = vcmp.eq.s32.totalorder %v952_v59, 1  ;;  %s1574_s27 = smov 110  }
  0xeb   : > { %p365_p8 = scmp.eq.s32.totalorder %s1840_s17, 1  ;;  %v1069_v0 = vstv %s1068_s1  ;;  %p379_p6 = scmp.eq.s32.totalorder %s1840_s17, 2 }
  0xec   : > { %490 = vrot.lane.b32.xlu1 %v1789_v21, %s1569_s18  ;;  %488 = vrot.lane.b32.xlu0 %v1791_v22, %s1569_s18  ;;  %s834_s30 = scalar_select %p833_p12, 1, 0  ;;  %vm1070_vm10 = vcmp.eq.s32.totalorder %v1069_v0, 1 }
  0xed   : > { %s366_s28 = scalar_select %p365_p8, 1, 0 }
  0xee   : > { %v835_v54 = vstv %s834_s30  ;;  %s255_s12 = scalar_select %p254_p3, 1, 0 }
  0xef   : > { %v367_v34 = vstv %s366_s28  ;;  %vm836_vm8 = vcmp.eq.s32.totalorder %v835_v54, 1  ;;  %s380_s15 = scalar_select %p379_p6, 1, 0 }
  0xf0   : > { %607 = vrot.lane.b32.xlu1 %v1798_v23, %s1569_s18  ;;  %605 = vrot.lane.b32.xlu0 %v1800_v24, %s1569_s18  ;;  %vm368_vm4 = vcmp.eq.s32.totalorder %v367_v34, 1  ;;  %v256_v9 = vstv %s255_s12  ;;  %s1570_s28 = smov 126   ;;  %p847_p8 = scmp.eq.s32.totalorder %s1852_s25, 2 }
  0xf1   : > { %vm257_vm11 = vcmp.eq.s32.totalorder %v256_v9, 1  ;;  %v381_v13 = vstv %s380_s15  ;;  %s965_s17 = scalar_select %p964_p0, 1, 0 }
  0xf2   : > { %vm382_vm12 = vcmp.eq.s32.totalorder %v381_v13, 1  ;;  %s848_s24 = scalar_select %p847_p8, 1, 0 }
  0xf3   : > { %s1572_s25 = smov 46   ;;  %s1577_s30 = smov 94  }
  0xf4   : > { %724 = vrot.lane.b32.xlu1 %v1806_v25, %s1569_s18  ;;  %722 = vrot.lane.b32.xlu0 %v1808_v26, %s1569_s18  ;;  %s1306_s5 = sshll.u32 %s1734_s26, 4  ;;  %s1334_s12 = sshll.u32 %s1552_s9, 8 }
  0xf5   : > { %s2073_s1 = scalar_lea.vmem [#allocation10], %s1306_s5  ;;  %s1578_s9 = smov [#allocation10]  }
  0xf6   : > { %s1192_s15 = sshll.u32 %s2073_s1, 4  ;;  %s2486_s15 = int_to_ptr.vmem [resolvable:$true] %s1192_s15 }
  0xf8   : > { %841 = vrot.lane.b32.xlu1 %v1814_v27, %s1569_s18  ;;  %839 = vrot.lane.b32.xlu0 %v1816_v28, %s1569_s18 }
  0xfc   : > { %958 = vrot.lane.b32.xlu1 %v1822_v29, %s1569_s18  ;;  %956 = vrot.lane.b32.xlu0 %v1824_v30, %s1569_s18 }
 0x100   : > { %1075 = vrot.lane.b32.xlu1 %v1830_v31, %s1569_s18  ;;  %1073 = vrot.lane.b32.xlu0 %v1832_v32, %s1569_s18 }
 0x156   : > { %v249_v35 = vpop.permute.xlu1 %248  ;;  %v247_v36 = vpop.permute.xlu0 %246 }
 0x157   : > { %v253_v37 = vsel %vm243_vm3, %v1770_v17, %v249_v35  ;;  %v252_v38 = vsel %vm243_vm3, %v1772_v18, %v247_v36  ;;  %vm272_vm3 = vcmask 122880  }
 0x158   : > { %262 = vrot.lane.b32.xlu1 %v253_v37, %s1569_s18  ;;  %260 = vrot.lane.b32.xlu0 %v252_v38, %s1569_s18  ;;  %v615_v38 = vstv %s614_s16  ;;  %s2484_s16 = scalar_lea.hbm %s2537_s4, %s1334_s12 }
 0x159   : > { %vm616_vm14 = vcmp.eq.s32.totalorder %v615_v38, 1 }
 0x15a   : > { %v374_v40 = vpop.permute.xlu1 %373  ;;  %v372_v41 = vpop.permute.xlu0 %371 }
 0x15b   : > { %v378_v42 = vsel %vm368_vm4, %v1780_v19, %v374_v40  ;;  %v377_v43 = vsel %vm368_vm4, %v1782_v20, %v372_v41  ;;  %vm278_vm4 = vcmask 254080  }
 0x15c   : > { %387 = vrot.lane.b32.xlu1 %v378_v42, %s1569_s18  ;;  %385 = vrot.lane.b32.xlu0 %v377_v43, %s1569_s18  ;;  %v1083_v42 = vstv %s1082_s13  ;;  %s1476_s13 = scalar_lea.vmem %s2486_s15, 256 }
 0x15d   : > { %vm1948_vm0 = vcmp.eq.s32.totalorder %v1083_v42, 1  ;;  %p1477_p10 = scmp.ne.s32.totalorder %s2486_s15, %s1476_s13 }
 0x15e   : > { %v491_v45 = vpop.permute.xlu1 %490  ;;  %v489_v46 = vpop.permute.xlu0 %488 }
 0x15f   : > { %v495_v47 = vsel %vm485_vm5, %v1789_v21, %v491_v45  ;;  %v494_v48 = vsel %vm485_vm5, %v1791_v22, %v489_v46  ;;  %v732_v46 = vstv %s731_s23  ;;  %vm284_vm5 = vcmask 385280   ;;  %p1478_p5 = pnand %p1477_p10, %p2551_p13  ;;  %s1480_s23 = sshll.u32 %s1578_s9, 4  ;;  %s1481_s23 = int_to_ptr.vmem [resolvable:$false] %s1480_s23 }
 0x160   : > { %504 = vrot.lane.b32.xlu1 %v495_v47, %s1569_s18  ;;  %502 = vrot.lane.b32.xlu0 %v494_v48, %s1569_s18  ;;  %vm733_vm1 = vcmp.eq.s32.totalorder %v732_v46, 1  ;;  %p1483_p1 = scmp.lt.s32.totalorder %s2486_s15, %s1481_s23 }
 0x161   : > { %p1479_p12 = pneg %p1478_p5 }
 0x162   : > { %v608_v50 = vpop.permute.xlu1 %607  ;;  %v606_v51 = vpop.permute.xlu0 %605 }
 0x163   : > { %v612_v52 = vsel %vm602_vm6, %v1798_v23, %v608_v50  ;;  %v611_v53 = vsel %vm602_vm6, %v1800_v24, %v606_v51  ;;  %vm290_vm6 = vcmask 516480  }
 0x164   : > { %621 = vrot.lane.b32.xlu1 %v612_v52, %s1569_s18  ;;  %619 = vrot.lane.b32.xlu0 %v611_v53, %s1569_s18 }
 0x166   : > { %v725_v55 = vpop.permute.xlu1 %724  ;;  %v723_v56 = vpop.permute.xlu0 %722 }
 0x167   : > { %v729_v57 = vsel %vm719_vm7, %v1806_v25, %v725_v55  ;;  %v728_v58 = vsel %vm719_vm7, %v1808_v26, %v723_v56  ;;  %vm296_vm7 = vcmask 647680  }
 0x168   : > { %738 = vrot.lane.b32.xlu1 %v729_v57, %s1569_s18  ;;  %736 = vrot.lane.b32.xlu0 %v728_v58, %s1569_s18 }
 0x16a   : > { %v842_v60 = vpop.permute.xlu1 %841  ;;  %v840_v61 = vpop.permute.xlu0 %839 }
 0x16b   : > { %v846_v62 = vsel %vm836_vm8, %v1814_v27, %v842_v60  ;;  %v845_v63 = vsel %vm836_vm8, %v1816_v28, %v840_v61  ;;  %vm302_vm8 = vcmask 778880  }
 0x16c   : > { %855 = vrot.lane.b32.xlu0 %v846_v62, %s1569_s18  ;;  %853 = vrot.lane.b32.xlu1 %v845_v63, %s1569_s18 }
 0x16e   : > { %v959_v1 = vpop.permute.xlu1 %958  ;;  %v957_v2 = vpop.permute.xlu0 %956 }
 0x16f   : > { %v963_v3 = vsel %vm953_vm9, %v1822_v29, %v959_v1  ;;  %v962_v4 = vsel %vm953_vm9, %v1824_v30, %v957_v2  ;;  %vm308_vm9 = vcmask 910080  }
 0x170   : > { %972 = vrot.lane.b32.xlu0 %v963_v3, %s1569_s18  ;;  %970 = vrot.lane.b32.xlu1 %v962_v4, %s1569_s18 }
 0x172   : > { %v1076_v5 = vpop.permute.xlu1 %1075  ;;  %v1074_v6 = vpop.permute.xlu0 %1073 }
 0x173   : > { %v1080_v7 = vsel %vm1070_vm10, %v1830_v31, %v1076_v5  ;;  %v1079_v8 = vsel %vm1070_vm10, %v1832_v32, %v1074_v6  ;;  %vm314_vm10 = vcmask 1041280  }
 0x174   : > { %1089 = vrot.lane.b32.xlu0 %v1080_v7, %s1569_s18  ;;  %1087 = vrot.lane.b32.xlu1 %v1079_v8, %s1569_s18  ;;  %s497_s18 = scalar_select %p496_p9, 1, 0 }
 0x176   : > { %v498_v34 = vstv %s497_s18 }
 0x177   : > { %vm499_vm13 = vcmp.eq.s32.totalorder %v498_v34, 1 }
 0x1ca   : > { %v263_v10 = vpop.permute.xlu1 %262  ;;  %v261_v11 = vpop.permute.xlu0 %260 }
 0x1cb   : > { %v1897_v12 = vsel %vm257_vm11, %v1772_v18, %v261_v11  ;;  %v1903_v15 = vsel %vm257_vm11, %v1770_v17, %v263_v10 }
 0x1cc   : > { %269 = vrot.lane.b32.xlu0 %v1897_v12, %s1570_s28  ;;  %v274_v49 = vrot.slane %v1897_v12, 1  ;;  %v310_v54 = vrot.slane %v1897_v12, 7  ;;  %v280_v59 = vrot.slane %v1897_v12, 2  ;;  %v351_v60 = vrot.slane %v1903_v15, 7 }
 0x1cd   : > { %v292_v61 = vrot.slane %v1897_v12, 4  ;;  %v304_v62 = vrot.slane %v1897_v12, 6  ;;  %v326_v0 = vrot.slane %v1903_v15, 2  ;;  %v336_v2 = vrot.slane %v1903_v15, 4 }
 0x1ce   : > { %v388_v14 = vpop.permute.xlu1 %387  ;;  %v386_v16 = vpop.permute.xlu0 %385  ;;  %v346_v4 = vrot.slane %v1903_v15, 6 }
 0x1cf   : > { %v1908_v18 = vsel %vm382_vm12, %v1782_v20, %v386_v16  ;;  %v1915_v35 = vsel %vm382_vm12, %v1780_v19, %v388_v14  ;;  %v966_v19 = vstv %s965_s17  ;;  %s1176_s17 = scalar_lea.sflag [#allocation9], %s1734_s26 }
 0x1d0   : > { %317 = vrot.lane.b32.xlu0 %v1903_v15, %s1570_s28  ;;  %vm1931_vm15 = vcmp.eq.s32.totalorder %v966_v19, 1  ;;  %v408_v63 = vrot.slane %v1908_v18, 3  ;;  %v418_v1 = vrot.slane %v1908_v18, 5  ;;  %v428_v3 = vrot.slane %v1908_v18, 7 }
 0x1d1   : > { %v438_v5 = vrot.slane %v1915_v35, 1  ;;  %v403_v6 = vrot.slane %v1908_v18, 2  ;;  %v448_v7 = vrot.slane %v1915_v35, 3  ;;  %v413_v8 = vrot.slane %v1908_v18, 4 }
 0x1d2   : > { %v505_v33 = vpop.permute.xlu1 %504  ;;  %v503_v36 = vpop.permute.xlu0 %502  ;;  %v458_v9 = vrot.slane %v1915_v35, 5  ;;  %v423_v10 = vrot.slane %v1908_v18, 6  ;;  %v468_v11 = vrot.slane %v1915_v35, 7  ;;  %v453_v14 = vrot.slane %v1915_v35, 4 }
 0x1d3   : > { %v1921_v37 = vsel %vm499_vm13, %v1791_v22, %v503_v36  ;;  %v1927_v40 = vsel %vm499_vm13, %v1789_v21, %v505_v33  ;;  %v463_v16 = vrot.slane %v1915_v35, 6 }
 0x1d4   : > { %394 = vrot.lane.b32.xlu0 %v1908_v18, %s1570_s28  ;;  %v515_v13 = vrot.slane %v1921_v37, 1  ;;  %v535_v33 = vrot.slane %v1921_v37, 5  ;;  %v545_v34 = vrot.slane %v1921_v37, 7  ;;  %v540_v36 = vrot.slane %v1921_v37, 6 }
 0x1d5   : > { %v565_v38 = vrot.slane %v1927_v40, 3  ;;  %v560_v19 = vrot.slane %v1927_v40, 2  ;;  %v585_v42 = vrot.slane %v1927_v40, 7 }
 0x1d6   : > { %v622_v17 = vpop.permute.xlu1 %621  ;;  %v620_v41 = vpop.permute.xlu0 %619 }
 0x1d7   : > { %v1936_v44 = vsel %vm616_vm14, %v1800_v24, %v620_v41  ;;  %v1953_v24 = vsel %vm616_vm14, %v1798_v23, %v622_v17  ;;  %v849_v23 = vstv %s848_s24  ;;  %v530_v17 = vrot.slane %v1921_v37, 4  ;;  %s1482_s24 = scalar_lea.vmem %s1481_s23, 512 }
 0x1d8   : > { %434 = vrot.lane.b32.xlu0 %v1915_v35, %s1570_s28  ;;  %vm850_vm2 = vcmp.eq.s32.totalorder %v849_v23, 1  ;;  %v570_v41 = vrot.slane %v1927_v40, 4  ;;  %v632_v46 = vrot.slane %v1936_v44, 1  ;;  %p1484_p4 = scmp.lt.s32.totalorder %s1482_s24, %s1476_s13 }
 0x1da   : > { %v739_v20 = vpop.permute.xlu1 %738  ;;  %v737_v48 = vpop.permute.xlu0 %736  ;;  %p1485_p3 = por %p1484_p4, %p1483_p1 }
 0x1db   : > { %v1966_v50 = vsel %vm733_vm1, %v1808_v26, %v737_v48  ;;  %v1973_v51 = vsel %vm733_vm1, %v1806_v25, %v739_v20  ;;  %v298_v26 = vrot.slane %v1897_v12, 5 }
 0x1dc   : > { %511 = vrot.lane.b32.xlu0 %v1921_v37, %s1570_s28  ;;  %p1486_p6 = pnand %p1485_p3, %p1479_p12 }
 0x1de   : > { %v854_v39 = vpop.permute.xlu1 %853  ;;  %v856_v52 = vpop.permute.xlu0 %855 }
 0x1df   : > { %v1980_v53 = vsel %vm850_vm2, %v1816_v28, %v854_v39  ;;  %v1987_v55 = vsel %vm850_vm2, %v1814_v27, %v856_v52  ;;  %v321_v28 = vrot.slane %v1903_v15, 1  ;;  %v331_v27 = vrot.slane %v1903_v15, 3 }
 0x1e0   : > { %551 = vrot.lane.b32.xlu0 %v1927_v40, %s1570_s28  ;;  %v575_v39 = vrot.slane %v1927_v40, 5  ;;  %v657_v52 = vrot.slane %v1936_v44, 6 }
 0x1e2   : > { %v971_v43 = vpop.permute.xlu1 %970  ;;  %v973_v25 = vpop.permute.xlu0 %972 }
 0x1e3   : > { %v1941_v21 = vsel %vm1931_vm15, %v1824_v30, %v971_v43  ;;  %v1996_v56 = vsel %vm1931_vm15, %v1822_v29, %v973_v25  ;;  %v341_v29 = vrot.slane %v1903_v15, 5  ;;  %v525_v15 = vrot.slane %v1921_v37, 3 }
 0x1e4   : > { %979 = vrot.lane.b32.xlu1 %v1941_v21, %s1570_s28  ;;  %628 = vrot.lane.b32.xlu0 %v1936_v44, %s1570_s28  ;;  %v580_v43 = vrot.slane %v1927_v40, 6 }
 0x1e6   : > { %v1088_v47 = vpop.permute.xlu1 %1087  ;;  %v1090_v57 = vpop.permute.xlu0 %1089 }
 0x1e7   : > { %v1958_v30 = vsel %vm1948_vm0, %v1832_v32, %v1088_v47  ;;  %v286_v32 = vrot.slane %v1897_v12, 3  ;;  %v2005_v58 = vsel %vm1948_vm0, %v1830_v31, %v1090_v57  ;;  %v398_v31 = vrot.slane %v1908_v18, 1 }
 0x1e8   : > { %1096 = vrot.lane.b32.xlu1 %v1958_v30, %s1570_s28  ;;  %668 = vrot.lane.b32.xlu0 %v1953_v24, %s1570_s28  ;;  %v443_v12 = vrot.slane %v1915_v35, 2  ;;  %v520_v18 = vrot.slane %v1921_v37, 2  ;;  %v555_v35 = vrot.slane %v1927_v40, 1  ;;  %v637_v47 = vrot.slane %v1936_v44, 2 }
 0x1e9   : > { %v642_v40 = vrot.slane %v1936_v44, 3 }
 0x1ec   : > { %275 = vrot.lane.b32.xlu1 %v274_v49, %s1571_s22  ;;  %745 = vrot.lane.b32.xlu0 %v1966_v50, %s1570_s28  ;;  %v647_v49 = vrot.slane %v1936_v44, 4 }
 0x1f0   : > { %287 = vrot.lane.b32.xlu1 %v286_v32, %s1572_s25  ;;  %785 = vrot.lane.b32.xlu0 %v1973_v51, %s1570_s28  ;;  %v652_v32 = vrot.slane %v1936_v44, 5 }
 0x1f4   : > { %299 = vrot.lane.b32.xlu1 %v298_v26, %s1573_s0  ;;  %862 = vrot.lane.b32.xlu0 %v1980_v53, %s1570_s28 }
 0x1f8   : > { %311 = vrot.lane.b32.xlu1 %v310_v54, %s1574_s27  ;;  %902 = vrot.lane.b32.xlu0 %v1987_v55, %s1570_s28  ;;  %v662_v54 = vrot.slane %v1936_v44, 7 }
 0x1fc   : > { %322 = vrot.lane.b32.xlu1 %v321_v28, %s1571_s22  ;;  %1019 = vrot.lane.b32.xlu0 %v1996_v56, %s1570_s28  ;;  %v677_v28 = vrot.slane %v1953_v24, 2 }
 0x200   : > { %332 = vrot.lane.b32.xlu1 %v331_v27, %s1572_s25  ;;  %1136 = vrot.lane.b32.xlu0 %v2005_v58, %s1570_s28 }
 0x204   : > { %342 = vrot.lane.b32.xlu1 %v341_v29, %s1573_s0  ;;  %281 = vrot.lane.b32.xlu0 %v280_v59, %s1575_s6  ;;  %v672_v29 = vrot.slane %v1953_v24, 1  ;;  %v687_v59 = vrot.slane %v1953_v24, 4 }
 0x208   : > { %352 = vrot.lane.b32.xlu1 %v351_v60, %s1574_s27  ;;  %293 = vrot.lane.b32.xlu0 %v292_v61, %s1576_s29  ;;  %v682_v61 = vrot.slane %v1953_v24, 3 }
 0x20c   : > { %399 = vrot.lane.b32.xlu1 %v398_v31, %s1571_s22  ;;  %305 = vrot.lane.b32.xlu0 %v304_v62, %s1577_s30  ;;  %v697_v31 = vrot.slane %v1953_v24, 6 }
 0x210   : > { %409 = vrot.lane.b32.xlu1 %v408_v63, %s1572_s25  ;;  %327 = vrot.lane.b32.xlu0 %v326_v0, %s1575_s6  ;;  %v692_v0 = vrot.slane %v1953_v24, 5 }
 0x214   : > { %419 = vrot.lane.b32.xlu1 %v418_v1, %s1573_s0  ;;  %337 = vrot.lane.b32.xlu0 %v336_v2, %s1576_s29  ;;  %v754_v1 = vrot.slane %v1966_v50, 2 }
 0x218   : > { %429 = vrot.lane.b32.xlu1 %v428_v3, %s1574_s27  ;;  %347 = vrot.lane.b32.xlu0 %v346_v4, %s1577_s30  ;;  %v702_v4 = vrot.slane %v1953_v24, 7 }
 0x21c   : > { %439 = vrot.lane.b32.xlu1 %v438_v5, %s1571_s22  ;;  %404 = vrot.lane.b32.xlu0 %v403_v6, %s1575_s6  ;;  %v764_v5 = vrot.slane %v1966_v50, 4 }
 0x220   : > { %449 = vrot.lane.b32.xlu1 %v448_v7, %s1572_s25  ;;  %414 = vrot.lane.b32.xlu0 %v413_v8, %s1576_s29  ;;  %v749_v8 = vrot.slane %v1966_v50, 1 }
 0x224   : > { %459 = vrot.lane.b32.xlu1 %v458_v9, %s1573_s0  ;;  %424 = vrot.lane.b32.xlu0 %v423_v10, %s1577_s30  ;;  %v774_v9 = vrot.slane %v1966_v50, 6 }
 0x228   : > { %469 = vrot.lane.b32.xlu1 %v468_v11, %s1574_s27  ;;  %444 = vrot.lane.b32.xlu0 %v443_v12, %s1575_s6  ;;  %v759_v11 = vrot.slane %v1966_v50, 3  ;;  %v794_v12 = vrot.slane %v1973_v51, 2 }
 0x22c   : > { %516 = vrot.lane.b32.xlu1 %v515_v13, %s1571_s22  ;;  %454 = vrot.lane.b32.xlu0 %v453_v14, %s1576_s29 }
 0x230   : > { %526 = vrot.lane.b32.xlu1 %v525_v15, %s1572_s25  ;;  %464 = vrot.lane.b32.xlu0 %v463_v16, %s1577_s30  ;;  %v769_v15 = vrot.slane %v1966_v50, 5  ;;  %v804_v16 = vrot.slane %v1973_v51, 4 }
 0x234   : > { %536 = vrot.lane.b32.xlu1 %v535_v33, %s1573_s0  ;;  %521 = vrot.lane.b32.xlu0 %v520_v18, %s1575_s6 }
 0x238   : > { %546 = vrot.lane.b32.xlu1 %v545_v34, %s1574_s27  ;;  %531 = vrot.lane.b32.xlu0 %v530_v17, %s1576_s29  ;;  %v779_v34 = vrot.slane %v1966_v50, 7  ;;  %v814_v17 = vrot.slane %v1973_v51, 6  ;;  %v871_v50 = vrot.slane %v1980_v53, 2 }
 0x23c   : > { %556 = vrot.lane.b32.xlu1 %v555_v35, %s1571_s22  ;;  %541 = vrot.lane.b32.xlu0 %v540_v36, %s1577_s30 }
 0x23e   : > { %v270_v20 = vpop.permute.xlu0 %269 }
 0x23f   : > { %273 = vst.msk [vmem:[%s2073_s1] sm:$0x1] %vm272_vm3, %v270_v20  ;;  %v789_v20 = vrot.slane %v1973_v51, 1 }
 0x240   : > { %566 = vrot.lane.b32.xlu1 %v565_v38, %s1572_s25  ;;  %561 = vrot.lane.b32.xlu0 %v560_v19, %s1575_s6 }
 0x242   : > { %v318_v37 = vpop.permute.xlu0 %317 }
 0x243   : > { %320 = vst.msk [vmem:[%s2073_s1 + $0x8] sm:$0x1] %vm272_vm3, %v318_v37  ;;  %v799_v37 = vrot.slane %v1973_v51, 3 }
 0x244   : > { %576 = vrot.lane.b32.xlu1 %v575_v39, %s1573_s0  ;;  %571 = vrot.lane.b32.xlu0 %v570_v41, %s1576_s29  ;;  %v881_v39 = vrot.slane %v1980_v53, 4 }
 0x246   : > { %v395_v22 = vpop.permute.xlu0 %394 }
 0x247   : > { %397 = vst.msk [vmem:[%s2073_s1 + $0x1] sm:$0x1] %vm272_vm3, %v395_v22 }
 0x248   : > { %586 = vrot.lane.b32.xlu1 %v585_v42, %s1574_s27  ;;  %581 = vrot.lane.b32.xlu0 %v580_v43, %s1577_s30  ;;  %v809_v42 = vrot.slane %v1973_v51, 5  ;;  %v891_v43 = vrot.slane %v1980_v53, 6 }
 0x24a   : > { %v435_v45 = vpop.permute.xlu0 %434 }
 0x24b   : > { %437 = vst.msk [vmem:[%s2073_s1 + $0x9] sm:$0x1] %vm272_vm3, %v435_v45 }
 0x24c   : > { %633 = vrot.lane.b32.xlu1 %v632_v46, %s1571_s22  ;;  %638 = vrot.lane.b32.xlu0 %v637_v47, %s1575_s6  ;;  %v819_v47 = vrot.slane %v1973_v51, 7 }
 0x24e   : > { %v512_v48 = vpop.permute.xlu0 %511 }
 0x24f   : > { %514 = vst.msk [vmem:[%s2073_s1 + $0x2] sm:$0x1] %vm272_vm3, %v512_v48  ;;  %v911_v48 = vrot.slane %v1987_v55, 2 }
 0x250   : > { %643 = vrot.lane.b32.xlu1 %v642_v40, %s1572_s25  ;;  %648 = vrot.lane.b32.xlu0 %v647_v49, %s1576_s29 }
 0x252   : > { %v552_v23 = vpop.permute.xlu0 %551 }
 0x253   : > { %554 = vst.msk [vmem:[%s2073_s1 + $0xa] sm:$0x1] %vm272_vm3, %v552_v23  ;;  %v866_v23 = vrot.slane %v1980_v53, 1 }
 0x254   : > { %653 = vrot.lane.b32.xlu1 %v652_v32, %s1573_s0  ;;  %658 = vrot.lane.b32.xlu0 %v657_v52, %s1577_s30  ;;  %v921_v32 = vrot.slane %v1987_v55, 4 }
 0x256   : > { %v980_v26 = vpop.permute.xlu1 %979  ;;  %v629_v25 = vpop.permute.xlu0 %628 }
 0x257   : > { %982 = vst.msk [vmem:[%s2073_s1 + $0x6] sm:$0x1] %vm272_vm3, %v980_v26  ;;  %631 = vst.msk [vmem:[%s2073_s1 + $0x3] sm:$0x1] %vm272_vm3, %v629_v25  ;;  %v876_v26 = vrot.slane %v1980_v53, 3  ;;  %v931_v25 = vrot.slane %v1987_v55, 6 }
 0x258   : > { %663 = vrot.lane.b32.xlu1 %v662_v54, %s1574_s27  ;;  %678 = vrot.lane.b32.xlu0 %v677_v28, %s1575_s6 }
 0x25a   : > { %v1097_v57 = vpop.permute.xlu1 %1096  ;;  %v669_v27 = vpop.permute.xlu0 %668 }
 0x25b   : > { %1099 = vst.msk [vmem:[%s2073_s1 + $0x7] sm:$0x1] %vm272_vm3, %v1097_v57  ;;  %671 = vst.msk [vmem:[%s2073_s1 + $0xb] sm:$0x1] %vm272_vm3, %v669_v27  ;;  %v886_v57 = vrot.slane %v1980_v53, 5  ;;  %v1023_v27 = vrot.slane %v1996_v56, 1 }
 0x25c   : > { %673 = vrot.lane.b32.xlu1 %v672_v29, %s1571_s22  ;;  %688 = vrot.lane.b32.xlu0 %v687_v59, %s1576_s29 }
 0x25e   : > { %v276_v44 = vpop.permute.xlu1 %275  ;;  %v746_v60 = vpop.permute.xlu0 %745 }
 0x25f   : > { %279 = vst.msk [vmem:[%s2073_s1] sm:$0x1] %vm278_vm4, %v276_v44  ;;  %v896_v44 = vrot.slane %v1980_v53, 7 }
 0x260   : > { %748 = vst.msk [vmem:[%s2073_s1 + $0x4] sm:$0x1] %vm272_vm3, %v746_v60  ;;  %683 = vrot.lane.b32.xlu1 %v682_v61, %s1572_s25  ;;  %698 = vrot.lane.b32.xlu0 %v697_v31, %s1577_s30  ;;  %v1140_v60 = vrot.slane %v2005_v58, 1 }
 0x262   : > { %v288_v62 = vpop.permute.xlu1 %287  ;;  %v786_v63 = vpop.permute.xlu0 %785 }
 0x263   : > { %788 = vst.msk [vmem:[%s2073_s1 + $0xc] sm:$0x1] %vm272_vm3, %v786_v63  ;;  %v1028_v63 = vrot.slane %v1996_v56, 2 }
 0x264   : > { %693 = vrot.lane.b32.xlu1 %v692_v0, %s1573_s0  ;;  %755 = vrot.lane.b32.xlu0 %v754_v1, %s1575_s6  ;;  %v916_v1 = vrot.slane %v1987_v55, 3 }
 0x266   : > { %v300_v2 = vpop.permute.xlu1 %299  ;;  %v863_v3 = vpop.permute.xlu0 %862 }
 0x267   : > { %865 = vst.msk [vmem:[%s2073_s1 + $0x5] sm:$0x1] %vm272_vm3, %v863_v3 }
 0x268   : > { %703 = vrot.lane.b32.xlu1 %v702_v4, %s1574_s27  ;;  %765 = vrot.lane.b32.xlu0 %v764_v5, %s1576_s29  ;;  %v926_v5 = vrot.slane %v1987_v55, 5 }
 0x26a   : > { %v312_v6 = vpop.permute.xlu1 %311  ;;  %v903_v7 = vpop.permute.xlu0 %902 }
 0x26b   : > { %905 = vst.msk [vmem:[%s2073_s1 + $0xd] sm:$0x1] %vm272_vm3, %v903_v7 }
 0x26c   : > { %750 = vrot.lane.b32.xlu1 %v749_v8, %s1571_s22  ;;  %775 = vrot.lane.b32.xlu0 %v774_v9, %s1577_s30  ;;  %v983_v9 = vrot.slane %v1941_v21, 1 }
 0x26e   : > { %v323_v24 = vpop.permute.xlu1 %322  ;;  %v1020_v10 = vpop.permute.xlu0 %1019 }
 0x26f   : > { %325 = vst.msk [vmem:[%s2073_s1 + $0x8] sm:$0x1] %vm278_vm4, %v323_v24  ;;  %v1150_v24 = vrot.slane %v2005_v58, 3 }
 0x270   : > { %1022 = vst.msk [vmem:[%s2073_s1 + $0xe] sm:$0x1] %vm272_vm3, %v1020_v10  ;;  %760 = vrot.lane.b32.xlu1 %v759_v11, %s1572_s25  ;;  %795 = vrot.lane.b32.xlu0 %v794_v12, %s1575_s6  ;;  %v1100_v12 = vrot.slane %v1958_v30, 1 }
 0x272   : > { %v333_v13 = vpop.permute.xlu1 %332  ;;  %v1137_v14 = vpop.permute.xlu0 %1136 }
 0x273   : > { %1139 = vst.msk [vmem:[%s2073_s1 + $0xf] sm:$0x1] %vm272_vm3, %v1137_v14 }
 0x274   : > { %770 = vrot.lane.b32.xlu1 %v769_v15, %s1573_s0  ;;  %805 = vrot.lane.b32.xlu0 %v804_v16, %s1576_s29  ;;  %v988_v16 = vrot.slane %v1941_v21, 2 }
 0x276   : > { %v343_v33 = vpop.permute.xlu1 %342  ;;  %v282_v18 = vpop.permute.xlu0 %281 }
 0x277   : > { %285 = vst.msk [vmem:[%s2073_s1] sm:$0x1] %vm284_vm5, %v282_v18 }
 0x278   : > { %780 = vrot.lane.b32.xlu1 %v779_v34, %s1574_s27  ;;  %815 = vrot.lane.b32.xlu0 %v814_v17, %s1577_s30  ;;  %291 = vst.msk [vmem:[%s2073_s1] sm:$0x1] %vm290_vm6, %v288_v62  ;;  %v906_v62 = vrot.slane %v1987_v55, 1  ;;  %v1105_v17 = vrot.slane %v1958_v30, 2 }
 0x27a   : > { %v353_v35 = vpop.permute.xlu1 %352  ;;  %v294_v36 = vpop.permute.xlu0 %293 }
 0x27b   : > { %297 = vst.msk [vmem:[%s2073_s1] sm:$0x1] %vm296_vm7, %v294_v36 }
 0x27c   : > { %790 = vrot.lane.b32.xlu1 %v789_v20, %s1571_s22  ;;  %872 = vrot.lane.b32.xlu0 %v871_v50, %s1575_s6  ;;  %303 = vst.msk [vmem:[%s2073_s1] sm:$0x1] %vm302_vm8, %v300_v2  ;;  %v1145_v2 = vrot.slane %v2005_v58, 2  ;;  %v993_v50 = vrot.slane %v1941_v21, 3 }
 0x27e   : > { %v400_v38 = vpop.permute.xlu1 %399  ;;  %v306_v19 = vpop.permute.xlu0 %305 }
 0x27f   : > { %402 = vst.msk [vmem:[%s2073_s1 + $0x1] sm:$0x1] %vm278_vm4, %v400_v38  ;;  %v1160_v38 = vrot.slane %v2005_v58, 5 }
 0x280   : > { %309 = vst.msk [vmem:[%s2073_s1] sm:$0x1] %vm308_vm9, %v306_v19  ;;  %800 = vrot.lane.b32.xlu1 %v799_v37, %s1572_s25  ;;  %882 = vrot.lane.b32.xlu0 %v881_v39, %s1576_s29  ;;  %v1110_v39 = vrot.slane %v1958_v30, 3 }
 0x281   : > { %315 = vst.msk [vmem:[%s2073_s1] sm:$0x1] %vm314_vm10, %v312_v6  ;;  %v1033_v6 = vrot.slane %v1996_v56, 3 }
 0x282   : > { %v410_v41 = vpop.permute.xlu1 %409  ;;  %v328_v22 = vpop.permute.xlu0 %327 }
 0x283   : > { %330 = vst.msk [vmem:[%s2073_s1 + $0x8] sm:$0x1] %vm284_vm5, %v328_v22 }
 0x284   : > { %335 = vst.msk [vmem:[%s2073_s1 + $0x8] sm:$0x1] %vm290_vm6, %v333_v13  ;;  %810 = vrot.lane.b32.xlu1 %v809_v42, %s1573_s0  ;;  %892 = vrot.lane.b32.xlu0 %v891_v43, %s1577_s30  ;;  %v1038_v13 = vrot.slane %v1996_v56, 4  ;;  %v998_v43 = vrot.slane %v1941_v21, 4 }
 0x286   : > { %v420_v45 = vpop.permute.xlu1 %419  ;;  %v338_v46 = vpop.permute.xlu0 %337 }
 0x287   : > { %340 = vst.msk [vmem:[%s2073_s1 + $0x8] sm:$0x1] %vm296_vm7, %v338_v46 }
 0x288   : > { %345 = vst.msk [vmem:[%s2073_s1 + $0x8] sm:$0x1] %vm302_vm8, %v343_v33  ;;  %820 = vrot.lane.b32.xlu1 %v819_v47, %s1574_s27  ;;  %912 = vrot.lane.b32.xlu0 %v911_v48, %s1575_s6  ;;  %v1155_v33 = vrot.slane %v2005_v58, 4  ;;  %v1115_v48 = vrot.slane %v1958_v30, 4 }
 0x28a   : > { %v430_v40 = vpop.permute.xlu1 %429  ;;  %v348_v49 = vpop.permute.xlu0 %347 }
 0x28b   : > { %350 = vst.msk [vmem:[%s2073_s1 + $0x8] sm:$0x1] %vm308_vm9, %v348_v49 }
 0x28c   : > { %355 = vst.msk [vmem:[%s2073_s1 + $0x8] sm:$0x1] %vm314_vm10, %v353_v35  ;;  %867 = vrot.lane.b32.xlu1 %v866_v23, %s1571_s22  ;;  %922 = vrot.lane.b32.xlu0 %v921_v32, %s1576_s29  ;;  %v1043_v35 = vrot.slane %v1996_v56, 5  ;;  %v1003_v32 = vrot.slane %v1941_v21, 5 }
 0x28e   : > { %v440_v51 = vpop.permute.xlu1 %439  ;;  %v405_v52 = vpop.permute.xlu0 %404 }
 0x28f   : > { %442 = vst.msk [vmem:[%s2073_s1 + $0x9] sm:$0x1] %vm278_vm4, %v440_v51  ;;  %v1130_v51 = vrot.slane %v1958_v30, 7 }
 0x290   : > { %407 = vst.msk [vmem:[%s2073_s1 + $0x1] sm:$0x1] %vm284_vm5, %v405_v52  ;;  %877 = vrot.lane.b32.xlu1 %v876_v26, %s1572_s25  ;;  %932 = vrot.lane.b32.xlu0 %v931_v25, %s1577_s30  ;;  %v1120_v25 = vrot.slane %v1958_v30, 5 }
 0x291   : > { %412 = vst.msk [vmem:[%s2073_s1 + $0x1] sm:$0x1] %vm290_vm6, %v410_v41  ;;  %v1048_v41 = vrot.slane %v1996_v56, 6 }
 0x292   : > { %v450_v54 = vpop.permute.xlu1 %449  ;;  %v415_v28 = vpop.permute.xlu0 %414 }
 0x293   : > { %417 = vst.msk [vmem:[%s2073_s1 + $0x1] sm:$0x1] %vm296_vm7, %v415_v28 }
 0x294   : > { %422 = vst.msk [vmem:[%s2073_s1 + $0x1] sm:$0x1] %vm302_vm8, %v420_v45  ;;  %887 = vrot.lane.b32.xlu1 %v886_v57, %s1573_s0  ;;  %1024 = vrot.lane.b32.xlu0 %v1023_v27, %s1571_s22  ;;  %v1165_v45 = vrot.slane %v2005_v58, 6  ;;  %v1008_v57 = vrot.slane %v1941_v21, 6 }
 0x296   : > { %v460_v29 = vpop.permute.xlu1 %459  ;;  %v425_v59 = vpop.permute.xlu0 %424 }
 0x297   : > { %427 = vst.msk [vmem:[%s2073_s1 + $0x1] sm:$0x1] %vm308_vm9, %v425_v59  ;;  %v1125_v59 = vrot.slane %v1958_v30, 6 }
 0x298   : > { %432 = vst.msk [vmem:[%s2073_s1 + $0x1] sm:$0x1] %vm314_vm10, %v430_v40  ;;  %897 = vrot.lane.b32.xlu1 %v896_v44, %s1574_s27  ;;  %1141 = vrot.lane.b32.xlu0 %v1140_v60, %s1571_s22  ;;  %v1013_v40 = vrot.slane %v1941_v21, 7  ;;  %v936_v60 = vrot.slane %v1987_v55, 7 }
 0x29a   : > { %v470_v61 = vpop.permute.xlu1 %469  ;;  %v445_v31 = vpop.permute.xlu0 %444 }
 0x29b   : > { %447 = vst.msk [vmem:[%s2073_s1 + $0x9] sm:$0x1] %vm284_vm5, %v445_v31  ;;  %v1053_v31 = vrot.slane %v1996_v56, 7 }
 0x29c   : > { %452 = vst.msk [vmem:[%s2073_s1 + $0x9] sm:$0x1] %vm290_vm6, %v450_v54  ;;  %907 = vrot.lane.b32.xlu1 %v906_v62, %s1571_s22  ;;  %1029 = vrot.lane.b32.xlu0 %v1028_v63, %s1575_s6  ;;  %v1170_v63 = vrot.slane %v2005_v58, 7 }
 0x29e   : > { %v517_v53 = vpop.permute.xlu1 %516  ;;  %v455_v0 = vpop.permute.xlu0 %454 }
 0x29f   : > { %519 = vst.msk [vmem:[%s2073_s1 + $0x2] sm:$0x1] %vm278_vm4, %v517_v53 }
 0x2a0   : > { %457 = vst.msk [vmem:[%s2073_s1 + $0x9] sm:$0x1] %vm296_vm7, %v455_v0  ;;  %917 = vrot.lane.b32.xlu1 %v916_v1, %s1572_s25  ;;  %1146 = vrot.lane.b32.xlu0 %v1145_v2, %s1575_s6 }
 0x2a1   : > { %462 = vst.msk [vmem:[%s2073_s1 + $0x9] sm:$0x1] %vm302_vm8, %v460_v29 }
 0x2a2   : > { %v527_v3 = vpop.permute.xlu1 %526  ;;  %v465_v4 = vpop.permute.xlu0 %464 }
 0x2a3   : > { %467 = vst.msk [vmem:[%s2073_s1 + $0x9] sm:$0x1] %vm308_vm9, %v465_v4 }
 0x2a4   : > { %472 = vst.msk [vmem:[%s2073_s1 + $0x9] sm:$0x1] %vm314_vm10, %v470_v61  ;;  %927 = vrot.lane.b32.xlu1 %v926_v5, %s1573_s0  ;;  %1034 = vrot.lane.b32.xlu0 %v1033_v6, %s1572_s25 }
 0x2a6   : > { %v537_v7 = vpop.permute.xlu1 %536  ;;  %v522_v8 = vpop.permute.xlu0 %521 }
 0x2a7   : > { %524 = vst.msk [vmem:[%s2073_s1 + $0x2] sm:$0x1] %vm284_vm5, %v522_v8 }
 0x2a8   : > { %529 = vst.msk [vmem:[%s2073_s1 + $0x2] sm:$0x1] %vm290_vm6, %v527_v3  ;;  %984 = vrot.lane.b32.xlu1 %v983_v9, %s1571_s22  ;;  %1151 = vrot.lane.b32.xlu0 %v1150_v24, %s1572_s25 }
 0x2aa   : > { %v547_v10 = vpop.permute.xlu1 %546  ;;  %v532_v11 = vpop.permute.xlu0 %531 }
 0x2ab   : > { %534 = vst.msk [vmem:[%s2073_s1 + $0x2] sm:$0x1] %vm296_vm7, %v532_v11 }
 0x2ac   : > { %539 = vst.msk [vmem:[%s2073_s1 + $0x2] sm:$0x1] %vm302_vm8, %v537_v7  ;;  %1101 = vrot.lane.b32.xlu1 %v1100_v12, %s1571_s22  ;;  %1039 = vrot.lane.b32.xlu0 %v1038_v13, %s1576_s29 }
 0x2ae   : > { %v557_v14 = vpop.permute.xlu1 %556  ;;  %v542_v15 = vpop.permute.xlu0 %541 }
 0x2af   : > { %559 = vst.msk [vmem:[%s2073_s1 + $0xa] sm:$0x1] %vm278_vm4, %v557_v14 }
 0x2b0   : > { %544 = vst.msk [vmem:[%s2073_s1 + $0x2] sm:$0x1] %vm308_vm9, %v542_v15  ;;  %989 = vrot.lane.b32.xlu1 %v988_v16, %s1575_s6  ;;  %1156 = vrot.lane.b32.xlu0 %v1155_v33, %s1576_s29 }
 0x2b1   : > { %549 = vst.msk [vmem:[%s2073_s1 + $0x2] sm:$0x1] %vm314_vm10, %v547_v10 }
 0x2b2   : > { %v567_v18 = vpop.permute.xlu1 %566  ;;  %v562_v34 = vpop.permute.xlu0 %561 }
 0x2b3   : > { %564 = vst.msk [vmem:[%s2073_s1 + $0xa] sm:$0x1] %vm284_vm5, %v562_v34 }
 0x2b4   : > { %569 = vst.msk [vmem:[%s2073_s1 + $0xa] sm:$0x1] %vm290_vm6, %v567_v18  ;;  %1106 = vrot.lane.b32.xlu1 %v1105_v17, %s1575_s6  ;;  %1044 = vrot.lane.b32.xlu0 %v1043_v35, %s1573_s0 }
 0x2b6   : > { %v577_v36 = vpop.permute.xlu1 %576  ;;  %v572_v20 = vpop.permute.xlu0 %571 }
 0x2b7   : > { %574 = vst.msk [vmem:[%s2073_s1 + $0xa] sm:$0x1] %vm296_vm7, %v572_v20 }
 0x2b8   : > { %579 = vst.msk [vmem:[%s2073_s1 + $0xa] sm:$0x1] %vm302_vm8, %v577_v36  ;;  %994 = vrot.lane.b32.xlu1 %v993_v50, %s1572_s25  ;;  %1161 = vrot.lane.b32.xlu0 %v1160_v38, %s1573_s0 }
 0x2ba   : > { %v587_v19 = vpop.permute.xlu1 %586  ;;  %v582_v37 = vpop.permute.xlu0 %581 }
 0x2bb   : > { %584 = vst.msk [vmem:[%s2073_s1 + $0xa] sm:$0x1] %vm308_vm9, %v582_v37 }
 0x2bc   : > { %589 = vst.msk [vmem:[%s2073_s1 + $0xa] sm:$0x1] %vm314_vm10, %v587_v19  ;;  %1111 = vrot.lane.b32.xlu1 %v1110_v39, %s1572_s25  ;;  %1049 = vrot.lane.b32.xlu0 %v1048_v41, %s1577_s30 }
 0x2be   : > { %v634_v22 = vpop.permute.xlu1 %633  ;;  %v639_v42 = vpop.permute.xlu0 %638 }
 0x2bf   : > { %636 = vst.msk [vmem:[%s2073_s1 + $0x3] sm:$0x1] %vm278_vm4, %v634_v22 }
 0x2c0   : > { %641 = vst.msk [vmem:[%s2073_s1 + $0x3] sm:$0x1] %vm284_vm5, %v639_v42  ;;  %999 = vrot.lane.b32.xlu1 %v998_v43, %s1576_s29  ;;  %1166 = vrot.lane.b32.xlu0 %v1165_v45, %s1577_s30 }
 0x2c2   : > { %v644_v46 = vpop.permute.xlu1 %643  ;;  %v649_v47 = vpop.permute.xlu0 %648 }
 0x2c3   : > { %646 = vst.msk [vmem:[%s2073_s1 + $0x3] sm:$0x1] %vm290_vm6, %v644_v46 }
 0x2c4   : > { %651 = vst.msk [vmem:[%s2073_s1 + $0x3] sm:$0x1] %vm296_vm7, %v649_v47  ;;  %1116 = vrot.lane.b32.xlu1 %v1115_v48, %s1576_s29  ;;  %1014 = vrot.lane.b32.xlu0 %v1013_v40, %s1574_s27 }
 0x2c6   : > { %v654_v49 = vpop.permute.xlu1 %653  ;;  %v659_v23 = vpop.permute.xlu0 %658 }
 0x2c7   : > { %656 = vst.msk [vmem:[%s2073_s1 + $0x3] sm:$0x1] %vm302_vm8, %v654_v49 }
 0x2c8   : > { %661 = vst.msk [vmem:[%s2073_s1 + $0x3] sm:$0x1] %vm308_vm9, %v659_v23  ;;  %1004 = vrot.lane.b32.xlu1 %v1003_v32, %s1573_s0  ;;  %1131 = vrot.lane.b32.xlu0 %v1130_v51, %s1574_s27 }
 0x2ca   : > { %v664_v52 = vpop.permute.xlu1 %663  ;;  %v679_v26 = vpop.permute.xlu0 %678 }
 0x2cb   : > { %666 = vst.msk [vmem:[%s2073_s1 + $0x3] sm:$0x1] %vm314_vm10, %v664_v52 }
 0x2cc   : > { %1121 = vrot.lane.b32.xlu1 %v1120_v25, %s1573_s0 }
 0x2ce   : > { %v674_v54 = vpop.permute.xlu1 %673  ;;  %v689_v28 = vpop.permute.xlu0 %688 }
 0x2cf   : > { %676 = vst.msk [vmem:[%s2073_s1 + $0xb] sm:$0x1] %vm278_vm4, %v674_v54 }
 0x2d0   : > { %681 = vst.msk [vmem:[%s2073_s1 + $0xb] sm:$0x1] %vm284_vm5, %v679_v26  ;;  %1009 = vrot.lane.b32.xlu1 %v1008_v57, %s1577_s30 }
 0x2d2   : > { %v684_v27 = vpop.permute.xlu1 %683  ;;  %v699_v29 = vpop.permute.xlu0 %698 }
 0x2d3   : > { %686 = vst.msk [vmem:[%s2073_s1 + $0xb] sm:$0x1] %vm290_vm6, %v684_v27 }
 0x2d4   : > { %691 = vst.msk [vmem:[%s2073_s1 + $0xb] sm:$0x1] %vm296_vm7, %v689_v28  ;;  %1126 = vrot.lane.b32.xlu1 %v1125_v59, %s1577_s30 }
 0x2d6   : > { %v694_v21 = vpop.permute.xlu1 %693  ;;  %v756_v44 = vpop.permute.xlu0 %755 }
 0x2d7   : > { %696 = vst.msk [vmem:[%s2073_s1 + $0xb] sm:$0x1] %vm302_vm8, %v694_v21 }
 0x2d8   : > { %701 = vst.msk [vmem:[%s2073_s1 + $0xb] sm:$0x1] %vm308_vm9, %v699_v29  ;;  %937 = vrot.lane.b32.xlu1 %v936_v60, %s1574_s27 }
 0x2da   : > { %v704_v30 = vpop.permute.xlu1 %703  ;;  %v766_v61 = vpop.permute.xlu0 %765 }
 0x2db   : > { %706 = vst.msk [vmem:[%s2073_s1 + $0xb] sm:$0x1] %vm314_vm10, %v704_v30 }
 0x2dc   : > { %1054 = vrot.lane.b32.xlu1 %v1053_v31, %s1574_s27 }
 0x2de   : > { %v751_v62 = vpop.permute.xlu1 %750  ;;  %v776_v55 = vpop.permute.xlu0 %775 }
 0x2df   : > { %753 = vst.msk [vmem:[%s2073_s1 + $0x4] sm:$0x1] %vm278_vm4, %v751_v62 }
 0x2e0   : > { %758 = vst.msk [vmem:[%s2073_s1 + $0x4] sm:$0x1] %vm284_vm5, %v756_v44  ;;  %1171 = vrot.lane.b32.xlu1 %v1170_v63, %s1574_s27 }
 0x2e2   : > { %v761_v53 = vpop.permute.xlu1 %760  ;;  %v796_v56 = vpop.permute.xlu0 %795 }
 0x2e3   : > { %763 = vst.msk [vmem:[%s2073_s1 + $0x4] sm:$0x1] %vm290_vm6, %v761_v53 }
 0x2e4   : > { %768 = vst.msk [vmem:[%s2073_s1 + $0x4] sm:$0x1] %vm296_vm7, %v766_v61 }
 0x2e6   : > { %v771_v0 = vpop.permute.xlu1 %770  ;;  %v806_v1 = vpop.permute.xlu0 %805 }
 0x2e7   : > { %773 = vst.msk [vmem:[%s2073_s1 + $0x4] sm:$0x1] %vm302_vm8, %v771_v0 }
 0x2e8   : > { %778 = vst.msk [vmem:[%s2073_s1 + $0x4] sm:$0x1] %vm308_vm9, %v776_v55 }
 0x2ea   : > { %v781_v58 = vpop.permute.xlu1 %780  ;;  %v816_v2 = vpop.permute.xlu0 %815 }
 0x2eb   : > { %783 = vst.msk [vmem:[%s2073_s1 + $0x4] sm:$0x1] %vm314_vm10, %v781_v58 }
 0x2ee   : > { %v791_v3 = vpop.permute.xlu1 %790  ;;  %v873_v4 = vpop.permute.xlu0 %872 }
 0x2ef   : > { %793 = vst.msk [vmem:[%s2073_s1 + $0xc] sm:$0x1] %vm278_vm4, %v791_v3 }
 0x2f0   : > { %798 = vst.msk [vmem:[%s2073_s1 + $0xc] sm:$0x1] %vm284_vm5, %v796_v56 }
 0x2f2   : > { %v801_v5 = vpop.permute.xlu1 %800  ;;  %v883_v6 = vpop.permute.xlu0 %882 }
 0x2f3   : > { %803 = vst.msk [vmem:[%s2073_s1 + $0xc] sm:$0x1] %vm290_vm6, %v801_v5 }
 0x2f4   : > { %808 = vst.msk [vmem:[%s2073_s1 + $0xc] sm:$0x1] %vm296_vm7, %v806_v1 }
 0x2f6   : > { %v811_v7 = vpop.permute.xlu1 %810  ;;  %v893_v8 = vpop.permute.xlu0 %892 }
 0x2f7   : > { %813 = vst.msk [vmem:[%s2073_s1 + $0xc] sm:$0x1] %vm302_vm8, %v811_v7 }
 0x2f8   : > { %818 = vst.msk [vmem:[%s2073_s1 + $0xc] sm:$0x1] %vm308_vm9, %v816_v2 }
 0x2fa   : > { %v821_v9 = vpop.permute.xlu1 %820  ;;  %v913_v24 = vpop.permute.xlu0 %912 }
 0x2fb   : > { %823 = vst.msk [vmem:[%s2073_s1 + $0xc] sm:$0x1] %vm314_vm10, %v821_v9 }
 0x2fe   : > { %v868_v10 = vpop.permute.xlu1 %867  ;;  %v923_v11 = vpop.permute.xlu0 %922 }
 0x2ff   : > { %870 = vst.msk [vmem:[%s2073_s1 + $0x5] sm:$0x1] %vm278_vm4, %v868_v10 }
 0x300   : > { %875 = vst.msk [vmem:[%s2073_s1 + $0x5] sm:$0x1] %vm284_vm5, %v873_v4 }
 0x302   : > { %v878_v12 = vpop.permute.xlu1 %877  ;;  %v933_v13 = vpop.permute.xlu0 %932 }
 0x303   : > { %880 = vst.msk [vmem:[%s2073_s1 + $0x5] sm:$0x1] %vm290_vm6, %v878_v12 }
 0x304   : > { %885 = vst.msk [vmem:[%s2073_s1 + $0x5] sm:$0x1] %vm296_vm7, %v883_v6 }
 0x306   : > { %v888_v14 = vpop.permute.xlu1 %887  ;;  %v1025_v15 = vpop.permute.xlu0 %1024 }
 0x307   : > { %890 = vst.msk [vmem:[%s2073_s1 + $0x5] sm:$0x1] %vm302_vm8, %v888_v14 }
 0x308   : > { %1027 = vst.msk [vmem:[%s2073_s1 + $0xe] sm:$0x1] %vm278_vm4, %v1025_v15 }
 0x309   : > { %895 = vst.msk [vmem:[%s2073_s1 + $0x5] sm:$0x1] %vm308_vm9, %v893_v8 }
 0x30a   : > { %v898_v16 = vpop.permute.xlu1 %897  ;;  %v1142_v33 = vpop.permute.xlu0 %1141 }
 0x30b   : > { %900 = vst.msk [vmem:[%s2073_s1 + $0x5] sm:$0x1] %vm314_vm10, %v898_v16 }
 0x30c   : > { %1144 = vst.msk [vmem:[%s2073_s1 + $0xf] sm:$0x1] %vm278_vm4, %v1142_v33 }
 0x30e   : > { %v908_v18 = vpop.permute.xlu1 %907  ;;  %v1030_v34 = vpop.permute.xlu0 %1029 }
 0x30f   : > { %910 = vst.msk [vmem:[%s2073_s1 + $0xd] sm:$0x1] %vm278_vm4, %v908_v18 }
 0x310   : > { %1032 = vst.msk [vmem:[%s2073_s1 + $0xe] sm:$0x1] %vm284_vm5, %v1030_v34  ;;  %915 = vst.msk [vmem:[%s2073_s1 + $0xd] sm:$0x1] %vm284_vm5, %v913_v24 }
 0x312   : > { %v918_v17 = vpop.permute.xlu1 %917  ;;  %v1147_v35 = vpop.permute.xlu0 %1146 }
 0x313   : > { %920 = vst.msk [vmem:[%s2073_s1 + $0xd] sm:$0x1] %vm290_vm6, %v918_v17 }
 0x314   : > { %1149 = vst.msk [vmem:[%s2073_s1 + $0xf] sm:$0x1] %vm284_vm5, %v1147_v35 }
 0x315   : > { %925 = vst.msk [vmem:[%s2073_s1 + $0xd] sm:$0x1] %vm296_vm7, %v923_v11 }
 0x316   : > { %v928_v36 = vpop.permute.xlu1 %927  ;;  %v1035_v20 = vpop.permute.xlu0 %1034 }
 0x317   : > { %930 = vst.msk [vmem:[%s2073_s1 + $0xd] sm:$0x1] %vm302_vm8, %v928_v36 }
 0x318   : > { %1037 = vst.msk [vmem:[%s2073_s1 + $0xe] sm:$0x1] %vm290_vm6, %v1035_v20 }
 0x319   : > { %935 = vst.msk [vmem:[%s2073_s1 + $0xd] sm:$0x1] %vm308_vm9, %v933_v13 }
 0x31a   : > { %v985_v50 = vpop.permute.xlu1 %984  ;;  %v1152_v38 = vpop.permute.xlu0 %1151 }
 0x31b   : > { %987 = vst.msk [vmem:[%s2073_s1 + $0x6] sm:$0x1] %vm278_vm4, %v985_v50 }
 0x31c   : > { %1154 = vst.msk [vmem:[%s2073_s1 + $0xf] sm:$0x1] %vm290_vm6, %v1152_v38 }
 0x31e   : > { %v1102_v19 = vpop.permute.xlu1 %1101  ;;  %v1040_v37 = vpop.permute.xlu0 %1039 }
 0x31f   : > { %1104 = vst.msk [vmem:[%s2073_s1 + $0x7] sm:$0x1] %vm278_vm4, %v1102_v19 }
 0x320   : > { %1042 = vst.msk [vmem:[%s2073_s1 + $0xe] sm:$0x1] %vm296_vm7, %v1040_v37 }
 0x322   : > { %v990_v39 = vpop.permute.xlu1 %989  ;;  %v1157_v41 = vpop.permute.xlu0 %1156 }
 0x323   : > { %992 = vst.msk [vmem:[%s2073_s1 + $0x6] sm:$0x1] %vm284_vm5, %v990_v39 }
 0x324   : > { %1159 = vst.msk [vmem:[%s2073_s1 + $0xf] sm:$0x1] %vm296_vm7, %v1157_v41 }
 0x326   : > { %v1107_v22 = vpop.permute.xlu1 %1106  ;;  %v1045_v42 = vpop.permute.xlu0 %1044 }
 0x327   : > { %1109 = vst.msk [vmem:[%s2073_s1 + $0x7] sm:$0x1] %vm284_vm5, %v1107_v22 }
 0x328   : > { %1047 = vst.msk [vmem:[%s2073_s1 + $0xe] sm:$0x1] %vm302_vm8, %v1045_v42 }
 0x32a   : > { %v995_v43 = vpop.permute.xlu1 %994  ;;  %v1162_v45 = vpop.permute.xlu0 %1161 }
 0x32b   : > { %997 = vst.msk [vmem:[%s2073_s1 + $0x6] sm:$0x1] %vm290_vm6, %v995_v43 }
 0x32c   : > { %1164 = vst.msk [vmem:[%s2073_s1 + $0xf] sm:$0x1] %vm302_vm8, %v1162_v45 }
 0x32e   : > { %v1112_v46 = vpop.permute.xlu1 %1111  ;;  %v1050_v47 = vpop.permute.xlu0 %1049 }
 0x32f   : > { %1114 = vst.msk [vmem:[%s2073_s1 + $0x7] sm:$0x1] %vm290_vm6, %v1112_v46 }
 0x330   : > { %1052 = vst.msk [vmem:[%s2073_s1 + $0xe] sm:$0x1] %vm308_vm9, %v1050_v47 }
 0x332   : > { %v1000_v48 = vpop.permute.xlu1 %999  ;;  %v1167_v40 = vpop.permute.xlu0 %1166 }
 0x333   : > { %1002 = vst.msk [vmem:[%s2073_s1 + $0x6] sm:$0x1] %vm296_vm7, %v1000_v48 }
 0x334   : > { %1169 = vst.msk [vmem:[%s2073_s1 + $0xf] sm:$0x1] %vm308_vm9, %v1167_v40 }
 0x336   : > { %v1117_v49 = vpop.permute.xlu1 %1116  ;;  %v1015_v51 = vpop.permute.xlu0 %1014 }
 0x337   : > { %1119 = vst.msk [vmem:[%s2073_s1 + $0x7] sm:$0x1] %vm296_vm7, %v1117_v49 }
 0x33a   : > { %v1005_v23 = vpop.permute.xlu1 %1004  ;;  %v1132_v25 = vpop.permute.xlu0 %1131 }
 0x33b   : > { %1007 = vst.msk [vmem:[%s2073_s1 + $0x6] sm:$0x1] %vm302_vm8, %v1005_v23 }
 0x33e   : > { %v1122_v32 = vpop.permute.xlu1 %1121 }
 0x33f   : > { %1124 = vst.msk [vmem:[%s2073_s1 + $0x7] sm:$0x1] %vm302_vm8, %v1122_v32 }
 0x342   : > { %v1010_v52 = vpop.permute.xlu1 %1009 }
 0x343   : > { %1012 = vst.msk [vmem:[%s2073_s1 + $0x6] sm:$0x1] %vm308_vm9, %v1010_v52 }
 0x344   : > { %1017 = vst.msk [vmem:[%s2073_s1 + $0x6] sm:$0x1] %vm314_vm10, %v1015_v51 }
 0x346   : > { %v1127_v26 = vpop.permute.xlu1 %1126 }
 0x347   : > { %1129 = vst.msk [vmem:[%s2073_s1 + $0x7] sm:$0x1] %vm308_vm9, %v1127_v26 }
 0x348   : > { %1134 = vst.msk [vmem:[%s2073_s1 + $0x7] sm:$0x1] %vm314_vm10, %v1132_v25 }
 0x34a   : > { %v938_v54 = vpop.permute.xlu1 %937 }
 0x34b   : > { %940 = vst.msk [vmem:[%s2073_s1 + $0xd] sm:$0x1] %vm314_vm10, %v938_v54 }
 0x34e   : > { %v1055_v28 = vpop.permute.xlu1 %1054 }
 0x34f   : > { %1057 = vst.msk [vmem:[%s2073_s1 + $0xe] sm:$0x1] %vm314_vm10, %v1055_v28 }
 0x352   : > { %v1172_v57 = vpop.permute.xlu1 %1171 }
 0x353   : > { %1174 = vst.msk [vmem:[%s2073_s1 + $0xf] sm:$0x1] %vm314_vm10, %v1172_v57 }
 0x354   : > { %1489 = shalt.err (!%p1486_p6)
}
 0x355   : > { %s1490_s26 = scalar_lea.hbm %s2484_s16, 256  ;;  %s1494_s0 = scalar_lea.hbm %s2537_s4, 512 }
 0x356   : > { %p1491_p9 = scmp.ne.s32.totalorder %s2484_s16, %s1490_s26  ;;  %p1495_p2 = scmp.lt.u32.totalorder %s2484_s16, %s2537_s4 }
 0x357   : > { %p1496_p7 = scmp.lt.u32.totalorder %s1494_s0, %s1490_s26  ;;  %p1498_p10 = scmp.lt.u32.totalorder %s1490_s26, %s2484_s16 }
 0x358   : > { %p1492_p11 = pnand %p1491_p9, %p2551_p13 }
 0x359   : > { %p1497_p8 = por %p1496_p7, %p1495_p2 }
 0x35a   : > { %p1493_p0 = pneg %p1492_p11 }
 0x35b   : > { %p1499_p5 = por %p1498_p10, %p1497_p8 }
 0x35d   : > { %p1500_p12 = pnand %p1499_p5, %p1493_p0 }
 0x35f   : > { %1503 = shalt.err (!%p1500_p12)
}
 0x360   : > { %1337 = dma.vmem_to_hbm [thread:$0]  (%p2551_p13), %s2486_s15, 256, %s2484_s16, %s1176_s17  }
 0x361 PF: > { %s1204_s29 = sand.u32 1, %s1540_s2   ;;  %p2552_p1 = scmp.ne.s32.totalorder %s2544_s21, 0 }
 0x362   : > { %p2553_p4 = scmp.ge.s32.totalorder %s1560_s11, 2  ;;  %s1205_s30 = scalar_lea.sflag [#allocation9], %s1204_s29 }
 0x364   : > { %p1344_p3 = pnand %p2553_p4, %p2552_p1 }
 0x366   : > { %1535 = dma.done.wait (!%p1344_p3), %s1205_s30, 256  }
 0x367   : > { %1537 = vsyncadd (!%p1344_p3), %s1205_s30, 4294967040  ;;  %s32_s11 = sadd.s32 1, %s1560_s11   ;;  %s2554_s2 = smov %s1544_s7 }
 0x368   : > { %p29_p6 = scmp.ge.s32.totalorder %s32_s11, 4   ;;  %s2555_s7 = smov %s1548_s8 }
 0x369   : > { %s2556_s8 = smov %s1678_s20  ;;  %s2557_s9 = smov %s1556_s10 }
 0x36a   : > { %s2558_s10 = smov %s2560_s14  ;;  %31 = sbr.rel (!%p29_p6) target bundleno = 39 (0x27), region = 81 }
 0x371   :  { %1210 = vsyncpa [#allocation8], 1 }
 0x372   :  { %1212 = vsyncpa [#allocation8 + $0x1], 1 }
 0x373   :  { %1213 = vsyncpa [#allocation9], 1 }
 0x374   :  { %1215 = vsyncpa [#allocation9 + $0x1], 1 }

</bundles_post_ra>
